<compile_context>
chip_gen: v7x
topology: tpu7x:2x2x1
jax: 0.10.0
libtpu: 0.0.40
codegen_flags: <defaults>
</compile_context>

<pallas_src>
import functools

import jax
import jax.numpy as jnp
from jax.experimental import pallas as pl
from jax.experimental.pallas import tpu as pltpu


def _elu(v):
    # exp only sees the clamped value so the untaken branch cannot overflow.
    return jnp.where(v > 0, v, jnp.exp(jnp.minimum(v, 0.0)) - 1.0)


def _log_softmax(v):
    m = jnp.max(v, axis=-1, keepdims=True)
    s = v - m
    return s - jnp.log(jnp.sum(jnp.exp(s), axis=-1, keepdims=True))


def _gat_attention_layer(xb, w_all, neg_bias, *, heads, out_per_head):
    """One GATConv layer on VMEM-resident values.

    xb      : (N, Fin)            bf16 node features
    w_all   : (Fin, H*C + 2H)     bf16: [per-head proj | folded att_src | folded att_dst]
    neg_bias: (N, N)              f32 additive mask (0 on edge/self-loop, -1e30 elsewhere)
    returns : (N, H*C)            f32, heads concatenated, un-biased / un-activated
    """
    hc = heads * out_per_head
    # Single wide MXU pass: all head projections + both attention scalars.
    proj = jnp.dot(xb, w_all, preferred_element_type=jnp.float32)     # (N, H*C + 2H)
    xp_b = proj[:, :hc].astype(jnp.bfloat16)                          # (N, H*C)
    a_src = proj[:, hc:hc + heads]                                    # (N, H)
    a_dst = proj[:, hc + heads:hc + 2 * heads]                        # (N, H)

    outs = []
    for h in range(heads):
        a_dst_col = a_dst[:, h:h + 1]                                 # (N, 1)
        a_src_row = jnp.transpose(a_src[:, h:h + 1])                  # (1, N)
        # e[i, j] = leaky_relu(a_dst[i] + a_src[j], 0.2), masked by adjacency.
        s = a_dst_col + a_src_row                                     # (N, N)
        s = jnp.where(s > 0, s, 0.2 * s) + neg_bias
        m = jnp.max(s, axis=-1, keepdims=True)
        p = jnp.exp(s - m)                                            # (N, N) f32, >=0
        denom = jnp.sum(p, axis=-1, keepdims=True)                    # (N, 1)
        xp_h = xp_b[:, h * out_per_head:(h + 1) * out_per_head]       # (N, C) bf16
        o = jnp.dot(p.astype(jnp.bfloat16), xp_h,
                    preferred_element_type=jnp.float32)               # (N, C)
        # Normalize AFTER the matmul: N*C multiplies instead of N*N; EUP recip.
        outs.append(o * pl.reciprocal(denom, approx=True))
    return outs[0] if heads == 1 else jnp.concatenate(outs, axis=-1)  # (N, H*C)


def gat2_fused_kernel(x_ref, adj_ref, w1_ref, b1_ref, w2_ref, b2_ref, out_ref,
                      *, heads, c1, c2):
    # x_ref  : (N, F)               f32 node features
    # adj_ref: (N, N)               int8 adjacency A[dst, src] (self-loops included)
    # w1_ref : (F, H*C1 + 2H)       bf16 layer-1 fused weights
    # b1_ref : (1, H*C1)            f32
    # w2_ref : (H*C1, C2 + 2)       bf16 layer-2 fused weights (single head)
    # b2_ref : (1, C2)              f32
    # out_ref: (N, C2)              f32 log-probabilities
    xb = x_ref[...].astype(jnp.bfloat16)

    # Additive mask bias built once, reused by both layers (f32 only).
    neg_bias = jnp.where(adj_ref[...].astype(jnp.float32) > 0.5,
                         jnp.float32(0.0), jnp.float32(-1e30))        # (N, N)

    # Layer 1: H heads concatenated; bias + ELU fused; result stays in VMEM.
    h1 = _gat_attention_layer(xb, w1_ref[...], neg_bias,
                              heads=heads, out_per_head=c1)           # (N, H*C1)
    h1 = _elu(h1 + b1_ref[...]).astype(jnp.bfloat16)

    # Layer 2: single head (concat=False -> mean over 1 head == identity);
    # bias + log_softmax fused.
    h2 = _gat_attention_layer(h1, w2_ref[...], neg_bias,
                              heads=1, out_per_head=c2)               # (N, C2)
    out_ref[...] = _log_softmax(h2 + b2_ref[...]).astype(out_ref.dtype)


def gat_forward(x, adj, params):
    """Full GAT forward (eval mode: dropout is identity), one fused kernel."""
    # TODO(synk): dropout (p=0.5) only applies in training mode; omitted here.
    # TODO(synk): for large graphs, tile dst/src flash-style (online softmax)
    # instead of materializing the full (N, N) score matrix in VMEM.
    H, F, C1 = params["W1"].shape
    _, F2, C2 = params["W2"].shape
    N = x.shape[0]

    # Layer 1 fused weights: [head-major projection | folded att_src | folded att_dst].
    w1_flat = jnp.transpose(params["W1"], (1, 0, 2)).reshape(F, H * C1)
    w1_src = jnp.einsum("hfc,hc->fh", params["W1"], params["asrc1"])        # (F, H)
    w1_dst = jnp.einsum("hfc,hc->fh", params["W1"], params["adst1"])        # (F, H)
    w1_all = jnp.concatenate([w1_flat, w1_src, w1_dst], axis=1).astype(jnp.bfloat16)

    # Layer 2 fused weights (single head).
    w2_flat = params["W2"][0]                                               # (F2, C2)
    w2_src = jnp.einsum("hfc,hc->fh", params["W2"], params["asrc2"])        # (F2, 1)
    w2_dst = jnp.einsum("hfc,hc->fh", params["W2"], params["adst2"])        # (F2, 1)
    w2_all = jnp.concatenate([w2_flat, w2_src, w2_dst], axis=1).astype(jnp.bfloat16)

    b1 = params["b1"].reshape(1, H * C1).astype(jnp.float32)
    b2 = params["b2"].reshape(1, C2).astype(jnp.float32)

    kernel = functools.partial(gat2_fused_kernel, heads=H, c1=C1, c2=C2)
    return pl.pallas_call(
        kernel,
        out_shape=jax.ShapeDtypeStruct((N, C2), jnp.float32),
        grid_spec=pltpu.PrefetchScalarGridSpec(
            num_scalar_prefetch=0,
            grid=(1,),   # single fused step; heads + both layers handled in-kernel
            in_specs=[
                pl.BlockSpec((N, F), lambda i: (0, 0)),
                pl.BlockSpec((N, N), lambda i: (0, 0)),
                pl.BlockSpec((F, H * C1 + 2 * H), lambda i: (0, 0)),
                pl.BlockSpec((1, H * C1), lambda i: (0, 0)),
                pl.BlockSpec((F2, C2 + 2), lambda i: (0, 0)),
                pl.BlockSpec((1, C2), lambda i: (0, 0)),
            ],
            out_specs=pl.BlockSpec((N, C2), lambda i: (0, 0)),
        ),
        compiler_params=pltpu.CompilerParams(
            dimension_semantics=("arbitrary",),
        ),
    )(x, adj, w1_all, b1, w2_all, b2)


def make_params(key, nfeat, nhid, nclass, heads):
    ks = jax.random.split(key, 8)
    glorot = lambda k, shape, fan_in, fan_out: (
        jax.random.uniform(k, shape, jnp.float32, -1.0, 1.0)
        * jnp.sqrt(6.0 / (fan_in + fan_out))
    )
    return {
        "W1": glorot(ks[0], (heads, nfeat, nhid), nfeat, heads * nhid),
        "asrc1": glorot(ks[1], (heads, nhid), nhid, 1),
        "adst1": glorot(ks[2], (heads, nhid), nhid, 1),
        "b1": jnp.zeros((heads * nhid,), jnp.float32),
        "W2": glorot(ks[3], (1, heads * nhid, nclass), heads * nhid, nclass),
        "asrc2": glorot(ks[4], (1, nclass), nclass, 1),
        "adst2": glorot(ks[5], (1, nclass), nclass, 1),
        "b2": jnp.zeros((nclass,), jnp.float32),
    }


def build_adj(edge_index, num_nodes):
    """Dense int8 adjacency mask A[dst, src]=1 per edge src->dst, plus self-loops."""
    src, dst = edge_index
    adj = jnp.zeros((num_nodes, num_nodes), jnp.int8)
    adj = adj.at[dst, src].set(1)
    adj = adj.at[jnp.arange(num_nodes), jnp.arange(num_nodes)].set(1)  # self-loops
    return adj


if __name__ == "__main__":
    key = jax.random.PRNGKey(0)
    N, nfeat, nhid, nclass, heads = 64, 16, 8, 4, 8

    k_x, k_e, k_p = jax.random.split(key, 3)
    x = jax.random.normal(k_x, (N, nfeat), jnp.float32)

    # Deterministic small graph: ring edges + some random edges.
    ring_src = jnp.arange(N, dtype=jnp.int32)
    ring_dst = (ring_src + 1) % N
    rand_src = jax.random.randint(jax.random.fold_in(k_e, 0), (128,), 0, N, jnp.int32)
    rand_dst = jax.random.randint(jax.random.fold_in(k_e, 1), (128,), 0, N, jnp.int32)
    edge_index = (jnp.concatenate([ring_src, rand_src]),
                  jnp.concatenate([ring_dst, rand_dst]))
    adj = build_adj(edge_index, N)

    params = make_params(k_p, nfeat, nhid, nclass, heads)

    out = jax.jit(gat_forward)(x, adj, params)
    out = jax.block_until_ready(out)
    assert out.shape == (N, nclass)
    assert bool(jnp.all(jnp.isfinite(out)))
    print("KERNEL_OK")
</pallas_src>

<mosaic_0001>
module attributes {stable_mosaic.version = 11 : i64} {
  func.func @gat2_fused_kernel(%arg0: i32, %arg1: memref<64x16xf32, #tpu.memory_space<vmem>>, %arg2: memref<64x64xi8, #tpu.memory_space<vmem>>, %arg3: memref<16x80xbf16, #tpu.memory_space<vmem>>, %arg4: memref<1x64xf32, #tpu.memory_space<vmem>>, %arg5: memref<64x6xbf16, #tpu.memory_space<vmem>>, %arg6: memref<1x4xf32, #tpu.memory_space<vmem>>, %arg7: memref<64x4xf32, #tpu.memory_space<vmem>>) attributes {dimension_semantics = [#tpu.dimension_semantics<arbitrary>], iteration_bounds = array<i64: 1>, scalar_prefetch = 0 : i64, scratch_operands = 0 : i64, tpu.core_type = #tpu.core_type<tc>, window_params = [{pipeline_mode = #tpu.pipeline_mode<synchronous>, transform_indices = @transform_0, window_bounds = array<i64: 64, 16>}, {pipeline_mode = #tpu.pipeline_mode<synchronous>, transform_indices = @transform_1, window_bounds = array<i64: 64, 64>}, {pipeline_mode = #tpu.pipeline_mode<synchronous>, transform_indices = @transform_2, window_bounds = array<i64: 16, 80>}, {pipeline_mode = #tpu.pipeline_mode<synchronous>, transform_indices = @transform_3, window_bounds = array<i64: 1, 64>}, {pipeline_mode = #tpu.pipeline_mode<synchronous>, transform_indices = @transform_4, window_bounds = array<i64: 64, 6>}, {pipeline_mode = #tpu.pipeline_mode<synchronous>, transform_indices = @transform_5, window_bounds = array<i64: 1, 4>}, {pipeline_mode = #tpu.pipeline_mode<synchronous>, transform_indices = @transform_6, window_bounds = array<i64: 64, 4>}]} {
    %c0 = arith.constant 0 : index
    %c0_0 = arith.constant 0 : index
    %0 = vector.load %arg1[%c0, %c0_0] : memref<64x16xf32, #tpu.memory_space<vmem>>, vector<64x16xf32>
    %1 = arith.truncf %0 : vector<64x16xf32> to vector<64x16xbf16>
    %c0_1 = arith.constant 0 : index
    %c0_2 = arith.constant 0 : index
    %2 = vector.load %arg2[%c0_1, %c0_2] : memref<64x64xi8, #tpu.memory_space<vmem>>, vector<64x64xi8>
    %3 = arith.sitofp %2 : vector<64x64xi8> to vector<64x64xf32>
    %cst = arith.constant 5.000000e-01 : f32
    %4 = vector.broadcast %cst : f32 to vector<64x64xf32>
    %5 = arith.cmpf ogt, %3, %4 : vector<64x64xf32>
    %cst_3 = arith.constant 0.000000e+00 : f32
    %cst_4 = arith.constant -1.000000e+30 : f32
    %6 = vector.broadcast %cst_3 : f32 to vector<64x64xf32>
    %7 = vector.broadcast %cst_4 : f32 to vector<64x64xf32>
    %8 = arith.select %5, %6, %7 : vector<64x64xi1>, vector<64x64xf32>
    %c0_5 = arith.constant 0 : index
    %c0_6 = arith.constant 0 : index
    %9 = vector.load %arg3[%c0_5, %c0_6] : memref<16x80xbf16, #tpu.memory_space<vmem>>, vector<16x80xbf16>
    %cst_7 = arith.constant dense<0.000000e+00> : vector<64x80xf32>
    %10 = tpu.matmul %1, %9, %cst_7 {dimension_numbers = #tpu.dot_dimension_numbers<[1], [0], [0], [1], [0, 0, 1, 1], [], []>} : vector<64x16xbf16>, vector<16x80xbf16>, vector<64x80xf32> -> vector<64x80xf32>
    %11 = vector.extract_strided_slice %10 {offsets = [0, 0], sizes = [64, 64], strides = [1, 1]} : vector<64x80xf32> to vector<64x64xf32>
    %12 = arith.truncf %11 : vector<64x64xf32> to vector<64x64xbf16>
    %13 = vector.extract_strided_slice %10 {offsets = [0, 64], sizes = [64, 8], strides = [1, 1]} : vector<64x80xf32> to vector<64x8xf32>
    %14 = vector.extract_strided_slice %10 {offsets = [0, 72], sizes = [64, 8], strides = [1, 1]} : vector<64x80xf32> to vector<64x8xf32>
    %15 = vector.extract_strided_slice %14 {offsets = [0, 0], sizes = [64, 1], strides = [1, 1]} : vector<64x8xf32> to vector<64x1xf32>
    %16 = vector.extract_strided_slice %13 {offsets = [0, 0], sizes = [64, 1], strides = [1, 1]} : vector<64x8xf32> to vector<64x1xf32>
    %17 = tpu.transpose %16, [1, 0] : vector<64x1xf32> -> vector<1x64xf32>
    %18 = vector.broadcast %15 : vector<64x1xf32> to vector<64x64xf32>
    %19 = vector.broadcast %17 : vector<1x64xf32> to vector<64x64xf32>
    %20 = arith.addf %18, %19 : vector<64x64xf32>
    %cst_8 = arith.constant 0.000000e+00 : f32
    %21 = vector.broadcast %cst_8 : f32 to vector<64x64xf32>
    %22 = arith.cmpf ogt, %20, %21 : vector<64x64xf32>
    %cst_9 = arith.constant 2.000000e-01 : f32
    %23 = vector.broadcast %cst_9 : f32 to vector<64x64xf32>
    %24 = arith.mulf %23, %20 : vector<64x64xf32>
    %25 = arith.select %22, %20, %24 : vector<64x64xi1>, vector<64x64xf32>
    %26 = arith.addf %25, %8 : vector<64x64xf32>
    %cst_10 = arith.constant dense<0xFF800000> : vector<64xf32>
    %27 = vector.multi_reduction <maximumf>, %26, %cst_10 [1] : vector<64x64xf32> to vector<64xf32>
    %28 = vector.shape_cast %27 : vector<64xf32> to vector<64x1xf32>
    %29 = vector.broadcast %28 : vector<64x1xf32> to vector<64x64xf32>
    %30 = arith.subf %26, %29 : vector<64x64xf32>
    %31 = math.exp %30 : vector<64x64xf32>
    %cst_11 = arith.constant dense<0.000000e+00> : vector<64xf32>
    %32 = vector.multi_reduction <add>, %31, %cst_11 [1] : vector<64x64xf32> to vector<64xf32>
    %33 = vector.shape_cast %32 : vector<64xf32> to vector<64x1xf32>
    %34 = vector.extract_strided_slice %12 {offsets = [0, 0], sizes = [64, 8], strides = [1, 1]} : vector<64x64xbf16> to vector<64x8xbf16>
    %35 = arith.truncf %31 : vector<64x64xf32> to vector<64x64xbf16>
    %cst_12 = arith.constant dense<0.000000e+00> : vector<64x8xf32>
    %36 = tpu.matmul %35, %34, %cst_12 {dimension_numbers = #tpu.dot_dimension_numbers<[1], [0], [0], [1], [0, 0, 1, 1], [], []>} : vector<64x64xbf16>, vector<64x8xbf16>, vector<64x8xf32> -> vector<64x8xf32>
    %37 = tpu.reciprocal %33 {approx = true} : vector<64x1xf32> -> vector<64x1xf32>
    %38 = vector.broadcast %37 : vector<64x1xf32> to vector<64x8xf32>
    %39 = arith.mulf %36, %38 : vector<64x8xf32>
    %40 = vector.extract_strided_slice %14 {offsets = [0, 1], sizes = [64, 1], strides = [1, 1]} : vector<64x8xf32> to vector<64x1xf32>
    %41 = vector.extract_strided_slice %13 {offsets = [0, 1], sizes = [64, 1], strides = [1, 1]} : vector<64x8xf32> to vector<64x1xf32>
    %42 = tpu.transpose %41, [1, 0] : vector<64x1xf32> -> vector<1x64xf32>
    %43 = vector.broadcast %40 : vector<64x1xf32> to vector<64x64xf32>
    %44 = vector.broadcast %42 : vector<1x64xf32> to vector<64x64xf32>
    %45 = arith.addf %43, %44 : vector<64x64xf32>
    %cst_13 = arith.constant 0.000000e+00 : f32
    %46 = vector.broadcast %cst_13 : f32 to vector<64x64xf32>
    %47 = arith.cmpf ogt, %45, %46 : vector<64x64xf32>
    %cst_14 = arith.constant 2.000000e-01 : f32
    %48 = vector.broadcast %cst_14 : f32 to vector<64x64xf32>
    %49 = arith.mulf %48, %45 : vector<64x64xf32>
    %50 = arith.select %47, %45, %49 : vector<64x64xi1>, vector<64x64xf32>
    %51 = arith.addf %50, %8 : vector<64x64xf32>
    %cst_15 = arith.constant dense<0xFF800000> : vector<64xf32>
    %52 = vector.multi_reduction <maximumf>, %51, %cst_15 [1] : vector<64x64xf32> to vector<64xf32>
    %53 = vector.shape_cast %52 : vector<64xf32> to vector<64x1xf32>
    %54 = vector.broadcast %53 : vector<64x1xf32> to vector<64x64xf32>
    %55 = arith.subf %51, %54 : vector<64x64xf32>
    %56 = math.exp %55 : vector<64x64xf32>
    %cst_16 = arith.constant dense<0.000000e+00> : vector<64xf32>
    %57 = vector.multi_reduction <add>, %56, %cst_16 [1] : vector<64x64xf32> to vector<64xf32>
    %58 = vector.shape_cast %57 : vector<64xf32> to vector<64x1xf32>
    %59 = vector.extract_strided_slice %12 {offsets = [0, 8], sizes = [64, 8], strides = [1, 1]} : vector<64x64xbf16> to vector<64x8xbf16>
    %60 = arith.truncf %56 : vector<64x64xf32> to vector<64x64xbf16>
    %cst_17 = arith.constant dense<0.000000e+00> : vector<64x8xf32>
    %61 = tpu.matmul %60, %59, %cst_17 {dimension_numbers = #tpu.dot_dimension_numbers<[1], [0], [0], [1], [0, 0, 1, 1], [], []>} : vector<64x64xbf16>, vector<64x8xbf16>, vector<64x8xf32> -> vector<64x8xf32>
    %62 = tpu.reciprocal %58 {approx = true} : vector<64x1xf32> -> vector<64x1xf32>
    %63 = vector.broadcast %62 : vector<64x1xf32> to vector<64x8xf32>
    %64 = arith.mulf %61, %63 : vector<64x8xf32>
    %65 = vector.extract_strided_slice %14 {offsets = [0, 2], sizes = [64, 1], strides = [1, 1]} : vector<64x8xf32> to vector<64x1xf32>
    %66 = vector.extract_strided_slice %13 {offsets = [0, 2], sizes = [64, 1], strides = [1, 1]} : vector<64x8xf32> to vector<64x1xf32>
    %67 = tpu.transpose %66, [1, 0] : vector<64x1xf32> -> vector<1x64xf32>
    %68 = vector.broadcast %65 : vector<64x1xf32> to vector<64x64xf32>
    %69 = vector.broadcast %67 : vector<1x64xf32> to vector<64x64xf32>
    %70 = arith.addf %68, %69 : vector<64x64xf32>
    %cst_18 = arith.constant 0.000000e+00 : f32
    %71 = vector.broadcast %cst_18 : f32 to vector<64x64xf32>
    %72 = arith.cmpf ogt, %70, %71 : vector<64x64xf32>
    %cst_19 = arith.constant 2.000000e-01 : f32
    %73 = vector.broadcast %cst_19 : f32 to vector<64x64xf32>
    %74 = arith.mulf %73, %70 : vector<64x64xf32>
    %75 = arith.select %72, %70, %74 : vector<64x64xi1>, vector<64x64xf32>
    %76 = arith.addf %75, %8 : vector<64x64xf32>
    %cst_20 = arith.constant dense<0xFF800000> : vector<64xf32>
    %77 = vector.multi_reduction <maximumf>, %76, %cst_20 [1] : vector<64x64xf32> to vector<64xf32>
    %78 = vector.shape_cast %77 : vector<64xf32> to vector<64x1xf32>
    %79 = vector.broadcast %78 : vector<64x1xf32> to vector<64x64xf32>
    %80 = arith.subf %76, %79 : vector<64x64xf32>
    %81 = math.exp %80 : vector<64x64xf32>
    %cst_21 = arith.constant dense<0.000000e+00> : vector<64xf32>
    %82 = vector.multi_reduction <add>, %81, %cst_21 [1] : vector<64x64xf32> to vector<64xf32>
    %83 = vector.shape_cast %82 : vector<64xf32> to vector<64x1xf32>
    %84 = vector.extract_strided_slice %12 {offsets = [0, 16], sizes = [64, 8], strides = [1, 1]} : vector<64x64xbf16> to vector<64x8xbf16>
    %85 = arith.truncf %81 : vector<64x64xf32> to vector<64x64xbf16>
    %cst_22 = arith.constant dense<0.000000e+00> : vector<64x8xf32>
    %86 = tpu.matmul %85, %84, %cst_22 {dimension_numbers = #tpu.dot_dimension_numbers<[1], [0], [0], [1], [0, 0, 1, 1], [], []>} : vector<64x64xbf16>, vector<64x8xbf16>, vector<64x8xf32> -> vector<64x8xf32>
    %87 = tpu.reciprocal %83 {approx = true} : vector<64x1xf32> -> vector<64x1xf32>
    %88 = vector.broadcast %87 : vector<64x1xf32> to vector<64x8xf32>
    %89 = arith.mulf %86, %88 : vector<64x8xf32>
    %90 = vector.extract_strided_slice %14 {offsets = [0, 3], sizes = [64, 1], strides = [1, 1]} : vector<64x8xf32> to vector<64x1xf32>
    %91 = vector.extract_strided_slice %13 {offsets = [0, 3], sizes = [64, 1], strides = [1, 1]} : vector<64x8xf32> to vector<64x1xf32>
    %92 = tpu.transpose %91, [1, 0] : vector<64x1xf32> -> vector<1x64xf32>
    %93 = vector.broadcast %90 : vector<64x1xf32> to vector<64x64xf32>
    %94 = vector.broadcast %92 : vector<1x64xf32> to vector<64x64xf32>
    %95 = arith.addf %93, %94 : vector<64x64xf32>
    %cst_23 = arith.constant 0.000000e+00 : f32
    %96 = vector.broadcast %cst_23 : f32 to vector<64x64xf32>
    %97 = arith.cmpf ogt, %95, %96 : vector<64x64xf32>
    %cst_24 = arith.constant 2.000000e-01 : f32
    %98 = vector.broadcast %cst_24 : f32 to vector<64x64xf32>
    %99 = arith.mulf %98, %95 : vector<64x64xf32>
    %100 = arith.select %97, %95, %99 : vector<64x64xi1>, vector<64x64xf32>
    %101 = arith.addf %100, %8 : vector<64x64xf32>
    %cst_25 = arith.constant dense<0xFF800000> : vector<64xf32>
    %102 = vector.multi_reduction <maximumf>, %101, %cst_25 [1] : vector<64x64xf32> to vector<64xf32>
    %103 = vector.shape_cast %102 : vector<64xf32> to vector<64x1xf32>
    %104 = vector.broadcast %103 : vector<64x1xf32> to vector<64x64xf32>
    %105 = arith.subf %101, %104 : vector<64x64xf32>
    %106 = math.exp %105 : vector<64x64xf32>
    %cst_26 = arith.constant dense<0.000000e+00> : vector<64xf32>
    %107 = vector.multi_reduction <add>, %106, %cst_26 [1] : vector<64x64xf32> to vector<64xf32>
    %108 = vector.shape_cast %107 : vector<64xf32> to vector<64x1xf32>
    %109 = vector.extract_strided_slice %12 {offsets = [0, 24], sizes = [64, 8], strides = [1, 1]} : vector<64x64xbf16> to vector<64x8xbf16>
    %110 = arith.truncf %106 : vector<64x64xf32> to vector<64x64xbf16>
    %cst_27 = arith.constant dense<0.000000e+00> : vector<64x8xf32>
    %111 = tpu.matmul %110, %109, %cst_27 {dimension_numbers = #tpu.dot_dimension_numbers<[1], [0], [0], [1], [0, 0, 1, 1], [], []>} : vector<64x64xbf16>, vector<64x8xbf16>, vector<64x8xf32> -> vector<64x8xf32>
    %112 = tpu.reciprocal %108 {approx = true} : vector<64x1xf32> -> vector<64x1xf32>
    %113 = vector.broadcast %112 : vector<64x1xf32> to vector<64x8xf32>
    %114 = arith.mulf %111, %113 : vector<64x8xf32>
    %115 = vector.extract_strided_slice %14 {offsets = [0, 4], sizes = [64, 1], strides = [1, 1]} : vector<64x8xf32> to vector<64x1xf32>
    %116 = vector.extract_strided_slice %13 {offsets = [0, 4], sizes = [64, 1], strides = [1, 1]} : vector<64x8xf32> to vector<64x1xf32>
    %117 = tpu.transpose %116, [1, 0] : vector<64x1xf32> -> vector<1x64xf32>
    %118 = vector.broadcast %115 : vector<64x1xf32> to vector<64x64xf32>
    %119 = vector.broadcast %117 : vector<1x64xf32> to vector<64x64xf32>
    %120 = arith.addf %118, %119 : vector<64x64xf32>
    %cst_28 = arith.constant 0.000000e+00 : f32
    %121 = vector.broadcast %cst_28 : f32 to vector<64x64xf32>
    %122 = arith.cmpf ogt, %120, %121 : vector<64x64xf32>
    %cst_29 = arith.constant 2.000000e-01 : f32
    %123 = vector.broadcast %cst_29 : f32 to vector<64x64xf32>
    %124 = arith.mulf %123, %120 : vector<64x64xf32>
    %125 = arith.select %122, %120, %124 : vector<64x64xi1>, vector<64x64xf32>
    %126 = arith.addf %125, %8 : vector<64x64xf32>
    %cst_30 = arith.constant dense<0xFF800000> : vector<64xf32>
    %127 = vector.multi_reduction <maximumf>, %126, %cst_30 [1] : vector<64x64xf32> to vector<64xf32>
    %128 = vector.shape_cast %127 : vector<64xf32> to vector<64x1xf32>
    %129 = vector.broadcast %128 : vector<64x1xf32> to vector<64x64xf32>
    %130 = arith.subf %126, %129 : vector<64x64xf32>
    %131 = math.exp %130 : vector<64x64xf32>
    %cst_31 = arith.constant dense<0.000000e+00> : vector<64xf32>
    %132 = vector.multi_reduction <add>, %131, %cst_31 [1] : vector<64x64xf32> to vector<64xf32>
    %133 = vector.shape_cast %132 : vector<64xf32> to vector<64x1xf32>
    %134 = vector.extract_strided_slice %12 {offsets = [0, 32], sizes = [64, 8], strides = [1, 1]} : vector<64x64xbf16> to vector<64x8xbf16>
    %135 = arith.truncf %131 : vector<64x64xf32> to vector<64x64xbf16>
    %cst_32 = arith.constant dense<0.000000e+00> : vector<64x8xf32>
    %136 = tpu.matmul %135, %134, %cst_32 {dimension_numbers = #tpu.dot_dimension_numbers<[1], [0], [0], [1], [0, 0, 1, 1], [], []>} : vector<64x64xbf16>, vector<64x8xbf16>, vector<64x8xf32> -> vector<64x8xf32>
    %137 = tpu.reciprocal %133 {approx = true} : vector<64x1xf32> -> vector<64x1xf32>
    %138 = vector.broadcast %137 : vector<64x1xf32> to vector<64x8xf32>
    %139 = arith.mulf %136, %138 : vector<64x8xf32>
    %140 = vector.extract_strided_slice %14 {offsets = [0, 5], sizes = [64, 1], strides = [1, 1]} : vector<64x8xf32> to vector<64x1xf32>
    %141 = vector.extract_strided_slice %13 {offsets = [0, 5], sizes = [64, 1], strides = [1, 1]} : vector<64x8xf32> to vector<64x1xf32>
    %142 = tpu.transpose %141, [1, 0] : vector<64x1xf32> -> vector<1x64xf32>
    %143 = vector.broadcast %140 : vector<64x1xf32> to vector<64x64xf32>
    %144 = vector.broadcast %142 : vector<1x64xf32> to vector<64x64xf32>
    %145 = arith.addf %143, %144 : vector<64x64xf32>
    %cst_33 = arith.constant 0.000000e+00 : f32
    %146 = vector.broadcast %cst_33 : f32 to vector<64x64xf32>
    %147 = arith.cmpf ogt, %145, %146 : vector<64x64xf32>
    %cst_34 = arith.constant 2.000000e-01 : f32
    %148 = vector.broadcast %cst_34 : f32 to vector<64x64xf32>
    %149 = arith.mulf %148, %145 : vector<64x64xf32>
    %150 = arith.select %147, %145, %149 : vector<64x64xi1>, vector<64x64xf32>
    %151 = arith.addf %150, %8 : vector<64x64xf32>
    %cst_35 = arith.constant dense<0xFF800000> : vector<64xf32>
    %152 = vector.multi_reduction <maximumf>, %151, %cst_35 [1] : vector<64x64xf32> to vector<64xf32>
    %153 = vector.shape_cast %152 : vector<64xf32> to vector<64x1xf32>
    %154 = vector.broadcast %153 : vector<64x1xf32> to vector<64x64xf32>
    %155 = arith.subf %151, %154 : vector<64x64xf32>
    %156 = math.exp %155 : vector<64x64xf32>
    %cst_36 = arith.constant dense<0.000000e+00> : vector<64xf32>
    %157 = vector.multi_reduction <add>, %156, %cst_36 [1] : vector<64x64xf32> to vector<64xf32>
    %158 = vector.shape_cast %157 : vector<64xf32> to vector<64x1xf32>
    %159 = vector.extract_strided_slice %12 {offsets = [0, 40], sizes = [64, 8], strides = [1, 1]} : vector<64x64xbf16> to vector<64x8xbf16>
    %160 = arith.truncf %156 : vector<64x64xf32> to vector<64x64xbf16>
    %cst_37 = arith.constant dense<0.000000e+00> : vector<64x8xf32>
    %161 = tpu.matmul %160, %159, %cst_37 {dimension_numbers = #tpu.dot_dimension_numbers<[1], [0], [0], [1], [0, 0, 1, 1], [], []>} : vector<64x64xbf16>, vector<64x8xbf16>, vector<64x8xf32> -> vector<64x8xf32>
    %162 = tpu.reciprocal %158 {approx = true} : vector<64x1xf32> -> vector<64x1xf32>
    %163 = vector.broadcast %162 : vector<64x1xf32> to vector<64x8xf32>
    %164 = arith.mulf %161, %163 : vector<64x8xf32>
    %165 = vector.extract_strided_slice %14 {offsets = [0, 6], sizes = [64, 1], strides = [1, 1]} : vector<64x8xf32> to vector<64x1xf32>
    %166 = vector.extract_strided_slice %13 {offsets = [0, 6], sizes = [64, 1], strides = [1, 1]} : vector<64x8xf32> to vector<64x1xf32>
    %167 = tpu.transpose %166, [1, 0] : vector<64x1xf32> -> vector<1x64xf32>
    %168 = vector.broadcast %165 : vector<64x1xf32> to vector<64x64xf32>
    %169 = vector.broadcast %167 : vector<1x64xf32> to vector<64x64xf32>
    %170 = arith.addf %168, %169 : vector<64x64xf32>
    %cst_38 = arith.constant 0.000000e+00 : f32
    %171 = vector.broadcast %cst_38 : f32 to vector<64x64xf32>
    %172 = arith.cmpf ogt, %170, %171 : vector<64x64xf32>
    %cst_39 = arith.constant 2.000000e-01 : f32
    %173 = vector.broadcast %cst_39 : f32 to vector<64x64xf32>
    %174 = arith.mulf %173, %170 : vector<64x64xf32>
    %175 = arith.select %172, %170, %174 : vector<64x64xi1>, vector<64x64xf32>
    %176 = arith.addf %175, %8 : vector<64x64xf32>
    %cst_40 = arith.constant dense<0xFF800000> : vector<64xf32>
    %177 = vector.multi_reduction <maximumf>, %176, %cst_40 [1] : vector<64x64xf32> to vector<64xf32>
    %178 = vector.shape_cast %177 : vector<64xf32> to vector<64x1xf32>
    %179 = vector.broadcast %178 : vector<64x1xf32> to vector<64x64xf32>
    %180 = arith.subf %176, %179 : vector<64x64xf32>
    %181 = math.exp %180 : vector<64x64xf32>
    %cst_41 = arith.constant dense<0.000000e+00> : vector<64xf32>
    %182 = vector.multi_reduction <add>, %181, %cst_41 [1] : vector<64x64xf32> to vector<64xf32>
    %183 = vector.shape_cast %182 : vector<64xf32> to vector<64x1xf32>
    %184 = vector.extract_strided_slice %12 {offsets = [0, 48], sizes = [64, 8], strides = [1, 1]} : vector<64x64xbf16> to vector<64x8xbf16>
    %185 = arith.truncf %181 : vector<64x64xf32> to vector<64x64xbf16>
    %cst_42 = arith.constant dense<0.000000e+00> : vector<64x8xf32>
    %186 = tpu.matmul %185, %184, %cst_42 {dimension_numbers = #tpu.dot_dimension_numbers<[1], [0], [0], [1], [0, 0, 1, 1], [], []>} : vector<64x64xbf16>, vector<64x8xbf16>, vector<64x8xf32> -> vector<64x8xf32>
    %187 = tpu.reciprocal %183 {approx = true} : vector<64x1xf32> -> vector<64x1xf32>
    %188 = vector.broadcast %187 : vector<64x1xf32> to vector<64x8xf32>
    %189 = arith.mulf %186, %188 : vector<64x8xf32>
    %190 = vector.extract_strided_slice %14 {offsets = [0, 7], sizes = [64, 1], strides = [1, 1]} : vector<64x8xf32> to vector<64x1xf32>
    %191 = vector.extract_strided_slice %13 {offsets = [0, 7], sizes = [64, 1], strides = [1, 1]} : vector<64x8xf32> to vector<64x1xf32>
    %192 = tpu.transpose %191, [1, 0] : vector<64x1xf32> -> vector<1x64xf32>
    %193 = vector.broadcast %190 : vector<64x1xf32> to vector<64x64xf32>
    %194 = vector.broadcast %192 : vector<1x64xf32> to vector<64x64xf32>
    %195 = arith.addf %193, %194 : vector<64x64xf32>
    %cst_43 = arith.constant 0.000000e+00 : f32
    %196 = vector.broadcast %cst_43 : f32 to vector<64x64xf32>
    %197 = arith.cmpf ogt, %195, %196 : vector<64x64xf32>
    %cst_44 = arith.constant 2.000000e-01 : f32
    %198 = vector.broadcast %cst_44 : f32 to vector<64x64xf32>
    %199 = arith.mulf %198, %195 : vector<64x64xf32>
    %200 = arith.select %197, %195, %199 : vector<64x64xi1>, vector<64x64xf32>
    %201 = arith.addf %200, %8 : vector<64x64xf32>
    %cst_45 = arith.constant dense<0xFF800000> : vector<64xf32>
    %202 = vector.multi_reduction <maximumf>, %201, %cst_45 [1] : vector<64x64xf32> to vector<64xf32>
    %203 = vector.shape_cast %202 : vector<64xf32> to vector<64x1xf32>
    %204 = vector.broadcast %203 : vector<64x1xf32> to vector<64x64xf32>
    %205 = arith.subf %201, %204 : vector<64x64xf32>
    %206 = math.exp %205 : vector<64x64xf32>
    %cst_46 = arith.constant dense<0.000000e+00> : vector<64xf32>
    %207 = vector.multi_reduction <add>, %206, %cst_46 [1] : vector<64x64xf32> to vector<64xf32>
    %208 = vector.shape_cast %207 : vector<64xf32> to vector<64x1xf32>
    %209 = vector.extract_strided_slice %12 {offsets = [0, 56], sizes = [64, 8], strides = [1, 1]} : vector<64x64xbf16> to vector<64x8xbf16>
    %210 = arith.truncf %206 : vector<64x64xf32> to vector<64x64xbf16>
    %cst_47 = arith.constant dense<0.000000e+00> : vector<64x8xf32>
    %211 = tpu.matmul %210, %209, %cst_47 {dimension_numbers = #tpu.dot_dimension_numbers<[1], [0], [0], [1], [0, 0, 1, 1], [], []>} : vector<64x64xbf16>, vector<64x8xbf16>, vector<64x8xf32> -> vector<64x8xf32>
    %212 = tpu.reciprocal %208 {approx = true} : vector<64x1xf32> -> vector<64x1xf32>
    %213 = vector.broadcast %212 : vector<64x1xf32> to vector<64x8xf32>
    %214 = arith.mulf %211, %213 : vector<64x8xf32>
    %215 = tpu.concatenate %39, %64, %89, %114, %139, %164, %189, %214 in 1 : vector<64x8xf32>, vector<64x8xf32>, vector<64x8xf32>, vector<64x8xf32>, vector<64x8xf32>, vector<64x8xf32>, vector<64x8xf32>, vector<64x8xf32> -> vector<64x64xf32>
    %c0_48 = arith.constant 0 : index
    %c0_49 = arith.constant 0 : index
    %216 = vector.load %arg4[%c0_48, %c0_49] : memref<1x64xf32, #tpu.memory_space<vmem>>, vector<1x64xf32>
    %217 = vector.broadcast %216 : vector<1x64xf32> to vector<64x64xf32>
    %218 = arith.addf %215, %217 : vector<64x64xf32>
    %cst_50 = arith.constant 0.000000e+00 : f32
    %219 = vector.broadcast %cst_50 : f32 to vector<64x64xf32>
    %220 = arith.cmpf ogt, %218, %219 : vector<64x64xf32>
    %cst_51 = arith.constant 0.000000e+00 : f32
    %221 = vector.broadcast %cst_51 : f32 to vector<64x64xf32>
    %222 = arith.minimumf %218, %221 : vector<64x64xf32>
    %223 = math.exp %222 : vector<64x64xf32>
    %cst_52 = arith.constant 1.000000e+00 : f32
    %224 = vector.broadcast %cst_52 : f32 to vector<64x64xf32>
    %225 = arith.subf %223, %224 : vector<64x64xf32>
    %226 = arith.select %220, %218, %225 : vector<64x64xi1>, vector<64x64xf32>
    %227 = arith.truncf %226 : vector<64x64xf32> to vector<64x64xbf16>
    %c0_53 = arith.constant 0 : index
    %c0_54 = arith.constant 0 : index
    %228 = vector.load %arg5[%c0_53, %c0_54] : memref<64x6xbf16, #tpu.memory_space<vmem>>, vector<64x6xbf16>
    %cst_55 = arith.constant dense<0.000000e+00> : vector<64x6xf32>
    %229 = tpu.matmul %227, %228, %cst_55 {dimension_numbers = #tpu.dot_dimension_numbers<[1], [0], [0], [1], [0, 0, 1, 1], [], []>} : vector<64x64xbf16>, vector<64x6xbf16>, vector<64x6xf32> -> vector<64x6xf32>
    %230 = vector.extract_strided_slice %229 {offsets = [0, 0], sizes = [64, 4], strides = [1, 1]} : vector<64x6xf32> to vector<64x4xf32>
    %231 = arith.truncf %230 : vector<64x4xf32> to vector<64x4xbf16>
    %232 = vector.extract_strided_slice %229 {offsets = [0, 4], sizes = [64, 1], strides = [1, 1]} : vector<64x6xf32> to vector<64x1xf32>
    %233 = vector.extract_strided_slice %229 {offsets = [0, 5], sizes = [64, 1], strides = [1, 1]} : vector<64x6xf32> to vector<64x1xf32>
    %234 = tpu.transpose %232, [1, 0] : vector<64x1xf32> -> vector<1x64xf32>
    %235 = vector.broadcast %233 : vector<64x1xf32> to vector<64x64xf32>
    %236 = vector.broadcast %234 : vector<1x64xf32> to vector<64x64xf32>
    %237 = arith.addf %235, %236 : vector<64x64xf32>
    %cst_56 = arith.constant 0.000000e+00 : f32
    %238 = vector.broadcast %cst_56 : f32 to vector<64x64xf32>
    %239 = arith.cmpf ogt, %237, %238 : vector<64x64xf32>
    %cst_57 = arith.constant 2.000000e-01 : f32
    %240 = vector.broadcast %cst_57 : f32 to vector<64x64xf32>
    %241 = arith.mulf %240, %237 : vector<64x64xf32>
    %242 = arith.select %239, %237, %241 : vector<64x64xi1>, vector<64x64xf32>
    %243 = arith.addf %242, %8 : vector<64x64xf32>
    %cst_58 = arith.constant dense<0xFF800000> : vector<64xf32>
    %244 = vector.multi_reduction <maximumf>, %243, %cst_58 [1] : vector<64x64xf32> to vector<64xf32>
    %245 = vector.shape_cast %244 : vector<64xf32> to vector<64x1xf32>
    %246 = vector.broadcast %245 : vector<64x1xf32> to vector<64x64xf32>
    %247 = arith.subf %243, %246 : vector<64x64xf32>
    %248 = math.exp %247 : vector<64x64xf32>
    %cst_59 = arith.constant dense<0.000000e+00> : vector<64xf32>
    %249 = vector.multi_reduction <add>, %248, %cst_59 [1] : vector<64x64xf32> to vector<64xf32>
    %250 = vector.shape_cast %249 : vector<64xf32> to vector<64x1xf32>
    %251 = arith.truncf %248 : vector<64x64xf32> to vector<64x64xbf16>
    %cst_60 = arith.constant dense<0.000000e+00> : vector<64x4xf32>
    %252 = tpu.matmul %251, %231, %cst_60 {dimension_numbers = #tpu.dot_dimension_numbers<[1], [0], [0], [1], [0, 0, 1, 1], [], []>} : vector<64x64xbf16>, vector<64x4xbf16>, vector<64x4xf32> -> vector<64x4xf32>
    %253 = tpu.reciprocal %250 {approx = true} : vector<64x1xf32> -> vector<64x1xf32>
    %254 = vector.broadcast %253 : vector<64x1xf32> to vector<64x4xf32>
    %255 = arith.mulf %252, %254 : vector<64x4xf32>
    %c0_61 = arith.constant 0 : index
    %c0_62 = arith.constant 0 : index
    %256 = vector.load %arg6[%c0_61, %c0_62] : memref<1x4xf32, #tpu.memory_space<vmem>>, vector<1x4xf32>
    %257 = vector.broadcast %256 : vector<1x4xf32> to vector<64x4xf32>
    %258 = arith.addf %255, %257 : vector<64x4xf32>
    %cst_63 = arith.constant dense<0xFF800000> : vector<64xf32>
    %259 = vector.multi_reduction <maximumf>, %258, %cst_63 [1] : vector<64x4xf32> to vector<64xf32>
    %260 = vector.shape_cast %259 : vector<64xf32> to vector<64x1xf32>
    %261 = vector.broadcast %260 : vector<64x1xf32> to vector<64x4xf32>
    %262 = arith.subf %258, %261 : vector<64x4xf32>
    %263 = math.exp %262 : vector<64x4xf32>
    %cst_64 = arith.constant dense<0.000000e+00> : vector<64xf32>
    %264 = vector.multi_reduction <add>, %263, %cst_64 [1] : vector<64x4xf32> to vector<64xf32>
    %265 = vector.shape_cast %264 : vector<64xf32> to vector<64x1xf32>
    %266 = math.log %265 : vector<64x1xf32>
    %267 = vector.broadcast %266 : vector<64x1xf32> to vector<64x4xf32>
    %268 = arith.subf %262, %267 : vector<64x4xf32>
    %c0_65 = arith.constant 0 : index
    %c0_66 = arith.constant 0 : index
    %269 = vector.load %arg7[%c0_65, %c0_66] : memref<64x4xf32, #tpu.memory_space<vmem>>, vector<64x4xf32>
    tpu.vector_store %arg7[%c0_65, %c0_66], %268 {strides = array<i32>} : memref<64x4xf32, #tpu.memory_space<vmem>>, vector<64x4xf32>,
    return
  }
  func.func @transform_0(%arg0: i32) -> (i32, i32) {
    %c0_i32 = arith.constant 0 : i32
    %c0_i32_0 = arith.constant 0 : i32
    %c0_i32_1 = arith.constant 0 : i32
    return %c0_i32, %c0_i32_0 : i32, i32
  }
  func.func @transform_1(%arg0: i32) -> (i32, i32) {
    %c0_i32 = arith.constant 0 : i32
    %c0_i32_0 = arith.constant 0 : i32
    %c0_i32_1 = arith.constant 0 : i32
    return %c0_i32, %c0_i32_0 : i32, i32
  }
  func.func @transform_2(%arg0: i32) -> (i32, i32) {
    %c0_i32 = arith.constant 0 : i32
    %c0_i32_0 = arith.constant 0 : i32
    %c0_i32_1 = arith.constant 0 : i32
    return %c0_i32, %c0_i32_0 : i32, i32
  }
  func.func @transform_3(%arg0: i32) -> (i32, i32) {
    %c0_i32 = arith.constant 0 : i32
    %c0_i32_0 = arith.constant 0 : i32
    %c0_i32_1 = arith.constant 0 : i32
    return %c0_i32, %c0_i32_0 : i32, i32
  }
  func.func @transform_4(%arg0: i32) -> (i32, i32) {
    %c0_i32 = arith.constant 0 : i32
    %c0_i32_0 = arith.constant 0 : i32
    %c0_i32_1 = arith.constant 0 : i32
    return %c0_i32, %c0_i32_0 : i32, i32
  }
  func.func @transform_5(%arg0: i32) -> (i32, i32) {
    %c0_i32 = arith.constant 0 : i32
    %c0_i32_0 = arith.constant 0 : i32
    %c0_i32_1 = arith.constant 0 : i32
    return %c0_i32, %c0_i32_0 : i32, i32
  }
  func.func @transform_6(%arg0: i32) -> (i32, i32) {
    %c0_i32 = arith.constant 0 : i32
    %c0_i32_0 = arith.constant 0 : i32
    %c0_i32_1 = arith.constant 0 : i32
    return %c0_i32, %c0_i32_0 : i32, i32
  }
}

</mosaic_0001>

<bundles_post_ra>
// kernel: gat_forward.1
= control target key start
LH: loop header
LB: loop body
LE: loop exit
PB: predicated region body
PF: predicated region fallthrough
CT: control target
= control target key end

     0   :  { %vm78_vm0 = vcmask 130048   ;;  %v4282_v13 = vmov 72   ;;  %v4283_v14 = vmov 73   ;;  %s4284_s14 = smov 57   ;;  %s4285_s15 = smov 64   ;;  %v6406_v27 = vmov 75   ;;  %s6391_s2 = inlined_call_operand.vmem [shape: bf16[16,80], index: 2, kind: input, shape index: {}]   ;;  %s6392_s0 = inlined_call_operand.vmem [shape: f32[64,16], index: 0, kind: input, shape index: {}]   ;;  %s6393_s1 = inlined_call_operand.vmem [shape: s8[64,64], index: 1, kind: input, shape index: {}]   ;;  %s6394_s4 = inlined_call_operand.vmem [shape: bf16[64,6], index: 4, kind: input, shape index: {}]   ;;  %s6395_s3 = inlined_call_operand.vmem [shape: f32[1,64], index: 3, kind: input, shape index: {}]   ;;  %s6396_s5 = inlined_call_operand.vmem [shape: f32[1,4], index: 5, kind: input, shape index: {}]   ;;  %s6397_s6 = inlined_call_operand.vmem [shape: f32[64,4], index: 6, kind: output, shape index: {}]  }
   0x1   :  { %v3941_v0 = vld [vmem:[%s6391_s2] sm:$0xff]   ;;  %v25_v2 = vld [vmem:[%s6392_s0 + $0x8] sm:$0xff]  ;;  %v26_v3 = vld [vmem:[%s6392_s0 + $0x10] sm:$0xff]  ;;  %3912 = vset.pattern.permute.xlu1 %v4282_v13  ;;  %3917 = vset.pattern.permute.xlu0 %v4283_v14  ;;  %s4287_s16 = smov 62   ;;  %s4288_s17 = smov 61   ;;  %v6404_v28 = vmov 76  }
   0x2   :  { %v24_v1 = vld [vmem:[%s6392_s0] sm:$0xff]  ;;  %3708 = vmatprep.subr.bf16.mxu0 %v3941_v0  ;;  %v27_v5 = vld [vmem:[%s6392_s0 + $0x18] sm:$0xff]  ;;  %v29_v7 = vld [vmem:[%s6392_s0 + $0x28] sm:$0xff]  ;;  %s4289_s18 = smov 60   ;;  %s4290_s19 = smov 59   ;;  %v6402_v29 = vmov 77  }
   0x3   :  { %v32_v4 = vpack.c.bf16 %v25_v2, %v24_v1  ;;  %v28_v6 = vld [vmem:[%s6392_s0 + $0x20] sm:$0xff]  ;;  %3709 = vmatpush3.bf16.msra.mxu0 %v3941_v0  ;;  %v33_v8 = vpack.c.bf16 %v27_v5, %v26_v3  ;;  %v30_v10 = vld [vmem:[%s6392_s0 + $0x30] sm:$0xff]  ;;  %v31_v11 = vld [vmem:[%s6392_s0 + $0x38] sm:$0xff]  ;;  %s4286_s0 = smov 63   ;;  %s4291_s20 = smov 58   ;;  %v6407_v30 = vmov 74  }
   0x4   :  { %v34_v9 = vpack.c.bf16 %v29_v7, %v28_v6  ;;  %v35_v12 = vpack.c.bf16 %v31_v11, %v30_v10  ;;  %v6400_v37 = vmov 78   ;;  %v6398_v45 = vmov 79   ;;  %s4300_s25 = smov 104   ;;  %s4301_s26 = smov 112  }
   0x5   :  { %3710 = vmatprep.mubr.msk.bf16.mxu0 %vm78_vm0, %v32_v4  ;;  %vm300_vm6 = vcmask 523264   ;;  %s4302_s27 = smov 96   ;;  %s4303_s28 = smov 88  }
   0x6   :  { %3711 = vmatmul.mubr.msk.bf16.vlgmr.msra.gmra.mrb[0].mxu0 %vm78_vm0, %v33_v8  ;;  %s4304_s29 = smov 80   ;;  %s4305_s30 = smov 72  }
   0x7   :  { %3714 = vmatprep.mubr.msk.bf16.mxu0 %vm78_vm0, %v34_v9  ;;  %s4306_s2 = smov 8   ;;  %s4307_s7 = smov 16  }
   0x8   :  { %s4308_s8 = smov 24   ;;  %s4309_s9 = smov 32  }
   0x9   :  { %s4310_s10 = smov 40   ;;  %s4311_s11 = smov 48  }
   0xa   :  { %s4312_s12 = smov 56  }
   0xe   :  { %3715 = vmatmul.mubr.msk.bf16.gmra.mrb[4].mxu0 %vm78_vm0, %v35_v12 }
  0xd9   :  { %v4383_v15 = vpop.f32.mrb[0].mxu0 }
  0xda   :  { %6471 = vst [vmem:[#allocation2_spill] sm:$0xff] %v4383_v15  ;;  %2356 = vrot.lane.b32.xlu0 %v4383_v15, %s4284_s14  ;;  %172 = vrot.lane.b32.xlu1 %v4383_v15, %s4285_s15  ;;  %v4389_v16 = vpop.f32.mrb[1].mxu0 }
  0xdb   :  { %v4391_v17 = vpop.f32.mrb[2].mxu0 }
  0xdc   :  { %6472 = vst [vmem:[#allocation3_spill] sm:$0xff] %v4391_v17  ;;  %v4393_v18 = vpop.f32.mrb[3].mxu0  ;;  %v4397_v19 = vpack.c.bf16 %v4391_v17, %v4383_v15 }
  0xdd   :  { %6473 = vst [vmem:[#allocation4_spill] sm:$0xff] %v4393_v18  ;;  %v4401_v20 = vpack.c.bf16 %v4393_v18, %v4389_v16 }
  0xde   :  { %6474 = vst [vmem:[#allocation5_spill] sm:$0xff] %v4397_v19  ;;  %233 = vperm.xlu1 %3912, %v4383_v15   ;;  %168 = vrot.lane.b32.xlu0 %v4389_v16, %s4285_s15 }
  0xdf   :  { %6475 = vst [vmem:[#allocation6_spill] sm:$0xff] %v4401_v20  ;;  %3718 = vmatprep.subr.bf16.mxu1 %v4401_v20 }
  0xe0   :  { %3719 = vmatpush3.bf16.msra.mxu1 %v4401_v20 }
  0xe1   :  { %3720 = vmatprep.subr.bf16.mxu1 %v4397_v19  ;;  %v4409_v21 = vpop.f32.mrb[4].mxu0 }
  0xe2   :  { %6476 = vst [vmem:[#allocation7_spill] sm:$0xff] %v4409_v21  ;;  %474 = vrot.lane.b32.xlu1 %v4383_v15, %s4286_s0  ;;  %2352 = vrot.lane.b32.xlu0 %v4389_v16, %s4284_s14  ;;  %v4415_v22 = vpop.f32.mrb[5].mxu0 }
  0xe3   :  { %6477 = vst [vmem:[#allocation8_spill] sm:$0xff] %v4415_v22  ;;  %3913 = vset.pattern.permute.xlu1 %v4283_v14  ;;  %v4418_v23 = vpop.f32.mrb[6].mxu0 }
  0xe4   :  { %6478 = vst [vmem:[#allocation9_spill] sm:$0xff] %v4418_v23  ;;  %3721 = vmatpush3.bf16.msra.mxu1 %v4397_v19  ;;  %v4421_v24 = vpop.f32.mrb[7].mxu0  ;;  %v4425_v25 = vpack.c.bf16 %v4418_v23, %v4409_v21 }
  0xe5   :  { %6479 = vst [vmem:[#allocation10_spill] sm:$0xff] %v4421_v24  ;;  %v4429_v26 = vpack.c.bf16 %v4421_v24, %v4415_v22 }
  0xe6   :  { %6480 = vst [vmem:[#allocation11_spill] sm:$0xff] %v4425_v25  ;;  %791 = vrot.lane.b32.xlu1 %v4383_v15, %s4287_s16  ;;  %539 = vperm.xlu0 %3917, %v4391_v17  }
  0xe7   :  { %6481 = vst [vmem:[#allocation12_spill] sm:$0xff] %v4429_v26  ;;  %3722 = vmatprep.subr.bf16.mxu1 %v4429_v26 }
  0xe8   :  { %3723 = vmatpush3.bf16.msra.mxu1 %v4429_v26 }
  0xe9   :  { %3724 = vmatprep.subr.bf16.mxu1 %v4425_v25 }
  0xea   :  { %1104 = vrot.lane.b32.xlu1 %v4383_v15, %s4288_s17  ;;  %2358 = vrot.lane.b32.xlu0 %v4391_v17, %s4284_s14 }
  0xec   :  { %3725 = vmatpush3.bf16.msra.mxu1 %v4425_v25 }
  0xee   :  { %1417 = vrot.lane.b32.xlu1 %v4383_v15, %s4289_s18  ;;  %170 = vrot.lane.b32.xlu0 %v4393_v18, %s4285_s15 }
  0xf2   :  { %1730 = vrot.lane.b32.xlu1 %v4383_v15, %s4290_s19  ;;  %472 = vrot.lane.b32.xlu0 %v4393_v18, %s4286_s0 }
  0xf6   :  { %535 = vperm.xlu1 %3913, %v4383_v15   ;;  %531 = vperm.xlu0 %3917, %v4393_v18  }
  0xfa   :  { %2043 = vrot.lane.b32.xlu1 %v4383_v15, %s4291_s20  ;;  %2354 = vrot.lane.b32.xlu0 %v4393_v18, %s4284_s14 }
  0xfb   :  { %3914 = vset.pattern.permute.xlu1 %v4282_v13 }
  0xfe   :  { %225 = vperm.xlu1 %3914, %v4389_v16   ;;  %180 = vrot.lane.b32.xlu0 %v4409_v21, %s4285_s15 }
 0x102   :  { %470 = vrot.lane.b32.xlu1 %v4389_v16, %s4286_s0  ;;  %482 = vrot.lane.b32.xlu0 %v4409_v21, %s4286_s0 }
 0x103   :  { %3915 = vset.pattern.permute.xlu1 %v4283_v14 }
 0x106   :  { %787 = vrot.lane.b32.xlu1 %v4389_v16, %s4287_s16  ;;  %1425 = vrot.lane.b32.xlu0 %v4409_v21, %s4289_s18 }
 0x10a   :  { %1100 = vrot.lane.b32.xlu1 %v4389_v16, %s4288_s17  ;;  %176 = vrot.lane.b32.xlu0 %v4415_v22, %s4285_s15 }
 0x10e   :  { %1413 = vrot.lane.b32.xlu1 %v4389_v16, %s4289_s18  ;;  %478 = vrot.lane.b32.xlu0 %v4415_v22, %s4286_s0 }
 0x112   :  { %1726 = vrot.lane.b32.xlu1 %v4389_v16, %s4290_s19  ;;  %543 = vperm.xlu0 %3917, %v4415_v22  }
 0x116   :  { %527 = vperm.xlu1 %3915, %v4389_v16   ;;  %2360 = vrot.lane.b32.xlu0 %v4415_v22, %s4284_s14 }
 0x11a   :  { %2039 = vrot.lane.b32.xlu1 %v4389_v16, %s4291_s20  ;;  %1114 = vrot.lane.b32.xlu0 %v4418_v23, %s4288_s17 }
 0x11b   :  { %3916 = vset.pattern.permute.xlu1 %v4282_v13 }
 0x11e   :  { %174 = vrot.lane.b32.xlu1 %v4391_v17, %s4285_s15  ;;  %1740 = vrot.lane.b32.xlu0 %v4418_v23, %s4290_s19 }
 0x122   :  { %237 = vperm.xlu1 %3916, %v4391_v17   ;;  %555 = vperm.xlu0 %3917, %v4418_v23  }
 0x126   :  { %476 = vrot.lane.b32.xlu1 %v4391_v17, %s4286_s0  ;;  %1423 = vrot.lane.b32.xlu0 %v4421_v24, %s4289_s18 }
 0x127   :  { %3922 = vset.pattern.permute.xlu0 %v6406_v27 }
 0x12a   :  { %793 = vrot.lane.b32.xlu1 %v4391_v17, %s4287_s16  ;;  %1161 = vperm.xlu0 %3922, %v4393_v18  }
 0x12e   :  { %1106 = vrot.lane.b32.xlu1 %v4391_v17, %s4288_s17  ;;  %1169 = vperm.xlu0 %3922, %v4391_v17  }
 0x132   :  { %1419 = vrot.lane.b32.xlu1 %v4391_v17, %s4289_s18  ;;  %2366 = vrot.lane.b32.xlu0 %v4418_v23, %s4284_s14 }
 0x136   :  { %1732 = vrot.lane.b32.xlu1 %v4391_v17, %s4290_s19  ;;  %1173 = vperm.xlu0 %3922, %v4415_v22  }
 0x13a   :  { %2045 = vrot.lane.b32.xlu1 %v4391_v17, %s4291_s20  ;;  %1185 = vperm.xlu0 %3922, %v4418_v23  }
 0x13e   :  { %229 = vperm.xlu1 %3916, %v4393_v18   ;;  %3923 = vset.pattern.permute.xlu0 %v6404_v28 }
 0x13f   :  { %1474 = vperm.xlu0 %3923, %v4393_v18  }
 0x142   :  { %789 = vrot.lane.b32.xlu1 %v4393_v18, %s4287_s16 }
 0x143   :  { %3924 = vset.pattern.permute.xlu0 %v6402_v29 }
 0x144   :  { %1783 = vperm.xlu0 %3924, %v4389_v16  }
 0x146   :  { %1102 = vrot.lane.b32.xlu1 %v4393_v18, %s4288_s17 }
 0x148   :  { %1795 = vperm.xlu0 %3924, %v4391_v17  }
 0x14a   :  { %1415 = vrot.lane.b32.xlu1 %v4393_v18, %s4289_s18 }
 0x14c   :  { %1799 = vperm.xlu0 %3924, %v4415_v22   ;;  %v4536_v31 = vpop.permute.xlu1 %172  ;;  %v4558_v35 = vpop.permute.xlu0 %2356 }
 0x14d   :  { %6482 = vst [vmem:[#allocation13_spill] sm:$0xff] %v4558_v35 }
 0x14e   :  { %1728 = vrot.lane.b32.xlu1 %v4393_v18, %s4290_s19 }
 0x150   :  { %1811 = vperm.xlu0 %3924, %v4418_v23   ;;  %v169_v38 = vpop.permute.xlu0 %168 }
 0x152   :  { %2041 = vrot.lane.b32.xlu1 %v4393_v18, %s4291_s20 }
 0x154   :  { %3925 = vset.pattern.permute.xlu0 %v6407_v30  ;;  %v4573_v41 = vpop.permute.xlu0 %2352 }
 0x155   :  { %848 = vperm.xlu0 %3925, %v4393_v18   ;;  %6483 = vst [vmem:[#allocation14_spill] sm:$0xff] %v4573_v41 }
 0x156   :  { %249 = vperm.xlu1 %3916, %v4409_v21  }
 0x159   :  { %856 = vperm.xlu0 %3925, %v4391_v17  }
 0x15a   :  { %799 = vrot.lane.b32.xlu1 %v4409_v21, %s4287_s16 }
 0x15b   :  { %3918 = vset.pattern.permute.xlu1 %v4283_v14 }
 0x15d   :  { %v4542_v32 = vpop.permute.xlu1 %233  ;;  %2362 = vrot.lane.b32.xlu0 %v4421_v24, %s4284_s14 }
 0x15e   :  { %1112 = vrot.lane.b32.xlu1 %v4409_v21, %s4288_s17 }
 0x161   :  { %v4548_v33 = vpop.permute.xlu1 %474  ;;  %864 = vperm.xlu0 %3925, %v4421_v24  }
 0x162   :  { %1738 = vrot.lane.b32.xlu1 %v4409_v21, %s4290_s19 }
 0x165   :  { %v4553_v34 = vpop.permute.xlu1 %791  ;;  %3926 = vset.pattern.permute.xlu0 %v6404_v28  ;;  %v4580_v43 = vpop.permute.xlu0 %539 }
 0x166   :  { %551 = vperm.xlu1 %3918, %v4409_v21   ;;  %1490 = vperm.xlu0 %3926, %v4421_v24   ;;  %6485 = vst [vmem:[#allocation16_spill] sm:$0xff] %v4580_v43 }
 0x169   :  { %v4560_v36 = vpop.permute.xlu1 %1104  ;;  %v4591_v46 = vpop.permute.xlu0 %2358 }
 0x16a   :  { %3919 = vset.pattern.permute.xlu1 %v4282_v13  ;;  %3927 = vset.pattern.permute.xlu0 %v6400_v37  ;;  %6486 = vst [vmem:[#allocation17_spill] sm:$0xff] %v4591_v46 }
 0x16b   :  { %241 = vperm.xlu1 %3919, %v4415_v22   ;;  %2096 = vperm.xlu0 %3927, %v4389_v16  }
 0x16d   :  { %v4566_v39 = vpop.permute.xlu1 %1417  ;;  %v171_v49 = vpop.permute.xlu0 %170 }
 0x16f   :  { %795 = vrot.lane.b32.xlu1 %v4415_v22, %s4287_s16  ;;  %2108 = vperm.xlu0 %3927, %v4391_v17  }
 0x171   :  { %v4571_v40 = vpop.permute.xlu1 %1730  ;;  %v4603_v51 = vpop.permute.xlu0 %472 }
 0x173   :  { %1108 = vrot.lane.b32.xlu1 %v4415_v22, %s4288_s17  ;;  %2112 = vperm.xlu0 %3927, %v4415_v22  }
 0x175   :  { %v4578_v42 = vpop.permute.xlu1 %535  ;;  %v4611_v54 = vpop.permute.xlu0 %531 }
 0x176   :  { %6484 = vst [vmem:[#allocation15_spill] sm:$0xff] %v4578_v42  ;;  %6487 = vst [vmem:[#allocation18_spill] sm:$0xff] %v4611_v54 }
 0x177   :  { %1421 = vrot.lane.b32.xlu1 %v4415_v22, %s4289_s18  ;;  %2124 = vperm.xlu0 %3927, %v4418_v23  }
 0x179   :  { %v4585_v44 = vpop.permute.xlu1 %2043  ;;  %v4619_v56 = vpop.permute.xlu0 %2354 }
 0x17a   :  { %6488 = vst [vmem:[#allocation19_spill] sm:$0xff] %v4619_v56 }
 0x17b   :  { %1734 = vrot.lane.b32.xlu1 %v4415_v22, %s4290_s19  ;;  %3928 = vset.pattern.permute.xlu0 %v6398_v45 }
 0x17c   :  { %2413 = vperm.xlu0 %3928, %v4393_v18  }
 0x17d   :  { %v4593_v47 = vpop.permute.xlu1 %225  ;;  %v4627_v59 = vpop.permute.xlu0 %180 }
 0x17f   :  { %2047 = vrot.lane.b32.xlu1 %v4415_v22, %s4291_s20 }
 0x180   :  { %2429 = vperm.xlu0 %3928, %v4421_v24  }
 0x181   :  { %v4598_v48 = vpop.permute.xlu1 %470  ;;  %v4633_v61 = vpop.permute.xlu0 %482 }
 0x183   :  { %182 = vrot.lane.b32.xlu1 %v4418_v23, %s4285_s15 }
 0x185   :  { %v788_v50 = vpop.permute.xlu1 %787  ;;  %v4642_v0 = vpop.permute.xlu0 %1425 }
 0x187   :  { %253 = vperm.xlu1 %3919, %v4418_v23  }
 0x189   :  { %v4605_v52 = vpop.permute.xlu1 %1100  ;;  %v177_v2 = vpop.permute.xlu0 %176 }
 0x18b   :  { %484 = vrot.lane.b32.xlu1 %v4418_v23, %s4286_s0 }
 0x18d   :  { %v4609_v53 = vpop.permute.xlu1 %1413 }
 0x18f   :  { %801 = vrot.lane.b32.xlu1 %v4418_v23, %s4287_s16 }
 0x191   :  { %v4615_v55 = vpop.permute.xlu1 %1726 }
 0x193   :  { %1427 = vrot.lane.b32.xlu1 %v4418_v23, %s4289_s18 }
 0x195   :  { %v4621_v57 = vpop.permute.xlu1 %527 }
 0x196   :  { %6489 = vst [vmem:[#allocation20_spill] sm:$0xff] %v4621_v57 }
 0x197   :  { %178 = vrot.lane.b32.xlu1 %v4421_v24, %s4285_s15 }
 0x199   :  { %v4625_v58 = vpop.permute.xlu1 %2039 }
 0x19b   :  { %245 = vperm.xlu1 %3919, %v4421_v24  }
 0x19d   :  { %v175_v60 = vpop.permute.xlu1 %174 }
 0x19e   :  { %192 = vxpose.xlu0.b32.start [1/8] (short) (narrow) %v169_v38, 8 }
 0x19f   :  { %480 = vrot.lane.b32.xlu1 %v4421_v24, %s4286_s0 }
 0x1a0   :  { %3920 = vset.pattern.permute.xlu1 %v4283_v14 }
 0x1a1   :  { %v4635_v62 = vpop.permute.xlu1 %237 }
 0x1a2   :  { %193 = vxpose.xlu0.b32.cont [2/8] (short) (narrow) %v171_v49, 8 }
 0x1a3   :  { %797 = vrot.lane.b32.xlu1 %v4421_v24, %s4287_s16 }
 0x1a5   :  { %v4639_v63 = vpop.permute.xlu1 %476 }
 0x1a6   :  { %194 = vxpose.xlu0.b32.cont [3/8] (short) (narrow) %v4536_v31, 8  ;;  %v4680_v31 = vpop.permute.xlu0 %478 }
 0x1a7   :  { %1110 = vrot.lane.b32.xlu1 %v4421_v24, %s4288_s17 }
 0x1a9   :  { %v794_v1 = vpop.permute.xlu1 %793 }
 0x1aa   :  { %195 = vxpose.xlu0.b32.cont [4/8] (short) (narrow) %v175_v60, 8  ;;  %v4686_v60 = vpop.permute.xlu0 %543 }
 0x1ab   :  { %1736 = vrot.lane.b32.xlu1 %v4421_v24, %s4290_s19  ;;  %6490 = vst [vmem:[#allocation21_spill] sm:$0xff] %v4686_v60 }
 0x1ad   :  { %v4648_v3 = vpop.permute.xlu1 %1106 }
 0x1ae   :  { %196 = vxpose.xlu0.b32.cont [5/8] (short) (narrow) %v177_v2, 8  ;;  %v4690_v45 = vpop.permute.xlu0 %2360 }
 0x1af   :  { %547 = vperm.xlu1 %3920, %v4421_v24   ;;  %6492 = vst [vmem:[#allocation23_spill] sm:$0xff] %v4690_v45 }
 0x1b1   :  { %v4651_v4 = vpop.permute.xlu1 %1419 }
 0x1b2   :  { %v4694_v28 = vpop.permute.xlu0 %1114 }
 0x1b3   :  { %2049 = vrot.lane.b32.xlu1 %v4421_v24, %s4291_s20 }
 0x1b4   :  { %3921 = vset.pattern.permute.xlu1 %v6406_v27 }
 0x1b5   :  { %v4656_v5 = vpop.permute.xlu1 %1732 }
 0x1b6   :  { %v4698_v30 = vpop.permute.xlu0 %1740 }
 0x1b7   :  { %2051 = vrot.lane.b32.xlu1 %v4409_v21, %s4291_s20 }
 0x1b9   :  { %v4660_v6 = vpop.permute.xlu1 %2045 }
 0x1ba   :  { %v4705_v20 = vpop.permute.xlu0 %555 }
 0x1bb   :  { %1157 = vperm.xlu1 %3921, %v4389_v16   ;;  %6493 = vst [vmem:[#allocation24_spill] sm:$0xff] %v4705_v20 }
 0x1bd   :  { %v4663_v7 = vpop.permute.xlu1 %229 }
 0x1be   :  { %v4709_v19 = vpop.permute.xlu0 %1423 }
 0x1bf   :  { %2364 = vrot.lane.b32.xlu1 %v4409_v21, %s4284_s14 }
 0x1c1   :  { %v790_v8 = vpop.permute.xlu1 %789 }
 0x1c3   :  { %1165 = vperm.xlu1 %3921, %v4383_v15  }
 0x1c5   :  { %v4668_v9 = vpop.permute.xlu1 %1102 }
 0x1c7   :  { %2053 = vrot.lane.b32.xlu1 %v4418_v23, %s4291_s20 }
 0x1c9   :  { %v4672_v10 = vpop.permute.xlu1 %1415 }
 0x1cd   :  { %v4674_v11 = vpop.permute.xlu1 %1728 }
 0x1d1   :  { %v4676_v12 = vpop.permute.xlu1 %2041 }
 0x1d5   :  { %v4678_v13 = vpop.permute.xlu1 %249 }
 0x1d9   :  { %v800_v14 = vpop.permute.xlu1 %799 }
 0x1dd   :  { %v4682_v38 = vpop.permute.xlu1 %1112 }
 0x1e1   :  { %v4684_v49 = vpop.permute.xlu1 %1738 }
 0x1e5   :  { %v4688_v2 = vpop.permute.xlu1 %551 }
 0x1e6   :  { %6491 = vst [vmem:[#allocation22_spill] sm:$0xff] %v4688_v2 }
 0x1ea   :  { %v4692_v37 = vpop.permute.xlu1 %241 }
 0x1ee   :  { %v796_v29 = vpop.permute.xlu1 %795 }
 0x1f0   :  { %811 = vxpose.xlu1.b32.start [1/8] (short) (narrow) %v788_v50, 8 }
 0x1f2   :  { %v4696_v27 = vpop.permute.xlu1 %1108 }
 0x1f4   :  { %812 = vxpose.xlu1.b32.cont [2/8] (short) (narrow) %v790_v8, 8  ;;  %v4713_v8 = vpop.permute.xlu0 %1161 }
 0x1f5   :  { %6494 = vst [vmem:[#allocation25_spill] sm:$0xff] %v4713_v8 }
 0x1f6   :  { %v4700_v26 = vpop.permute.xlu1 %1421 }
 0x1f8   :  { %813 = vxpose.xlu1.b32.cont [3/8] (short) (narrow) %v4553_v34, 8  ;;  %v4717_v43 = vpop.permute.xlu0 %1169 }
 0x1f9   :  { %6495 = vst [vmem:[#allocation26_spill] sm:$0xff] %v4717_v43 }
 0x1fa   :  { %v4703_v25 = vpop.permute.xlu1 %1734 }
 0x1fc   :  { %814 = vxpose.xlu1.b32.cont [4/8] (short) (narrow) %v794_v1, 8  ;;  %v4721_v57 = vpop.permute.xlu0 %2366 }
 0x1fd   :  { %6496 = vst [vmem:[#allocation27_spill] sm:$0xff] %v4721_v57 }
 0x1fe   :  { %v4707_v2 = vpop.permute.xlu1 %2047 }
 0x200   :  { %815 = vxpose.xlu1.b32.cont [5/8] (short) (narrow) %v796_v29, 8  ;;  %v4723_v20 = vpop.permute.xlu0 %1173 }
 0x201   :  { %6497 = vst [vmem:[#allocation28_spill] sm:$0xff] %v4723_v20 }
 0x202   :  { %v183_v50 = vpop.permute.xlu1 %182 }
 0x204   :  { %v4730_v8 = vpop.permute.xlu0 %1185 }
 0x205   :  { %6498 = vst [vmem:[#allocation29_spill] sm:$0xff] %v4730_v8 }
 0x206   :  { %v4711_v54 = vpop.permute.xlu1 %253 }
 0x208   :  { %v4732_v43 = vpop.permute.xlu0 %1474 }
 0x209   :  { %6499 = vst [vmem:[#allocation30_spill] sm:$0xff] %v4732_v43 }
 0x20a   :  { %v4715_v60 = vpop.permute.xlu1 %484 }
 0x20c   :  { %v4734_v35 = vpop.permute.xlu0 %1783 }
 0x20d   :  { %6500 = vst [vmem:[#allocation31_spill] sm:$0xff] %v4734_v35  ;;  %v36_v35 = vld [vmem:[%s6393_s1] sm:$0xff] }
 0x20e   :  { %v802_v34 = vpop.permute.xlu1 %801 }
 0x212   :  { %v4719_v42 = vpop.permute.xlu1 %1427 }
 0x216   :  { %v179_v1 = vpop.permute.xlu1 %178 }
 0x217   :  { %197 = vxpose.xlu0.b32.cont [6/8] (short) (narrow) %v179_v1, 8  ;;  %v4736_v1 = vpop.permute.xlu0 %1795 }
 0x218   :  { %6501 = vst [vmem:[#allocation32_spill] sm:$0xff] %v4736_v1 }
 0x21a   :  { %v4725_v29 = vpop.permute.xlu1 %245 }
 0x21b   :  { %198 = vxpose.xlu0.b32.cont [7/8] (short) (narrow) %v4627_v59, 8  ;;  %v4738_v20 = vpop.permute.xlu0 %1799 }
 0x21c   :  { %6502 = vst [vmem:[#allocation33_spill] sm:$0xff] %v4738_v20  ;;  %v256_v20 = vlaneseq }
 0x21e   :  { %v4728_v45 = vpop.permute.xlu1 %480 }
 0x21f   :  { %199 = vxpose.xlu0.b32.end [8/8] (short) (narrow) %v183_v50, 8  ;;  %v4740_v57 = vpop.permute.xlu0 %1811 }
 0x220   :  { %6503 = vst [vmem:[#allocation34_spill] sm:$0xff] %v4740_v57 }
 0x222   :  { %v798_v46 = vpop.permute.xlu1 %797 }
 0x223   :  { %816 = vxpose.xlu1.b32.cont [6/8] (short) (narrow) %v798_v46, 8  ;;  %v4742_v59 = vpop.permute.xlu0 %848 }
 0x224   :  { %6504 = vst [vmem:[#allocation35_spill] sm:$0xff] %v4742_v59  ;;  %v39_v59 = vunpack.c.1.s8 %v36_v35 }
 0x227   :  { %817 = vxpose.xlu1.b32.cont [7/8] (short) (narrow) %v800_v14, 8  ;;  %v4744_v56 = vpop.permute.xlu0 %856 }
 0x228   :  { %6505 = vst [vmem:[#allocation36_spill] sm:$0xff] %v4744_v56  ;;  %v257_v56 = vshrl.u32 %v256_v20, 7 }
 0x22b   :  { %818 = vxpose.xlu1.b32.end [8/8] (short) (narrow) %v802_v34, 8  ;;  %v4746_v8 = vpop.permute.xlu0 %2362 }
 0x22c   :  { %6506 = vst [vmem:[#allocation37_spill] sm:$0xff] %v4746_v8  ;;  %v40_v8 = vunpack.c.2.s8 %v36_v35 }
 0x22f   :  { %v4748_v50 = vpop.permute.xlu0 %864 }
 0x230   :  { %6507 = vst [vmem:[#allocation38_spill] sm:$0xff] %v4748_v50  ;;  %v38_v50 = vunpack.c.0.s8 %v36_v35 }
 0x232   :  { %v46_v41 = vcvt.s32.f32 %v38_v50 }
 0x233   :  { %v4750_v46 = vpop.permute.xlu0 %1490 }
 0x234   :  { %6508 = vst [vmem:[#allocation39_spill] sm:$0xff] %v4750_v46  ;;  %vm54_vm2 = vcmp.gt.f32.partialorder %v46_v41, 0.5 }
 0x237   :  { %v4752_v14 = vpop.permute.xlu0 %2096 }
 0x238   :  { %6509 = vst [vmem:[#allocation40_spill] sm:$0xff] %v4752_v14  ;;  %v4767_v14 = vsub.s32 0, %v257_v56 }
 0x23a   :  { %6515 = vst [vmem:[#allocation46_spill] sm:$0xff] %v4767_v14 }
 0x23b   :  { %v4754_v43 = vpop.permute.xlu0 %2108 }
 0x23c   :  { %6510 = vst [vmem:[#allocation41_spill] sm:$0xff] %v4754_v43  ;;  %v47_v43 = vcvt.s32.f32 %v39_v59 }
 0x23e   :  { %vm55_vm1 = vcmp.gt.f32.partialorder %v47_v43, 0.5 }
 0x23f   :  { %v4756_v34 = vpop.permute.xlu0 %2112 }
 0x240   :  { %6511 = vst [vmem:[#allocation42_spill] sm:$0xff] %v4756_v34  ;;  %v48_v34 = vcvt.s32.f32 %v40_v8 }
 0x242   :  { %vm56_vm3 = vcmp.gt.f32.partialorder %v48_v34, 0.5 }
 0x243   :  { %v4758_v1 = vpop.permute.xlu0 %2124 }
 0x244   :  { %6512 = vst [vmem:[#allocation43_spill] sm:$0xff] %v4758_v1  ;;  %v4772_v1 = vld [vmem:[%s6393_s1 + $0x8] sm:$0xff]  ;;  %s4299_s1 = smov 120  }
 0x245   :  { %v42_v17 = vunpack.c.0.s8 %v4772_v1  ;;  %v43_v56 = vunpack.c.1.s8 %v4772_v1 }
 0x247   :  { %v4760_v57 = vpop.permute.xlu0 %2413  ;;  %v50_v43 = vcvt.s32.f32 %v42_v17 }
 0x248   :  { %6513 = vst [vmem:[#allocation44_spill] sm:$0xff] %v4760_v57  ;;  %v41_v57 = vunpack.c.3.s8 %v36_v35  ;;  %v6428_v35 = vmov -1e+30  }
 0x249   :  { %v4782_v23 = vsel %vm55_vm1, 0.0, %v6428_v35  ;;  %v4788_v41 = vsel %vm56_vm3, 0.0, %v6428_v35  ;;  %vm58_vm10 = vcmp.gt.f32.partialorder %v50_v43, 0.5 }
 0x24a   :  { %6516 = vst [vmem:[#allocation47_spill] sm:$0xff] %v4782_v23  ;;  %6518 = vst [vmem:[#allocation49_spill] sm:$0xff] %v4788_v41 }
 0x24b   :  { %v4765_v46 = vpop.permute.xlu0 %2429 }
 0x24c   :  { %6514 = vst [vmem:[#allocation45_spill] sm:$0xff] %v4765_v46  ;;  %v49_v46 = vcvt.s32.f32 %v41_v57 }
 0x24e   :  { %vm57_vm8 = vcmp.gt.f32.partialorder %v49_v46, 0.5 }
 0x283   :  { %v208_v18 = vpop.trf.xlu0 }
 0x284   :  { %v259_v20 = vrot.slane %v208_v18, %v4767_v14  ;;  %v4785_v18 = vsel %vm54_vm2, 0.0, %v6428_v35 }
 0x285   :  { %6517 = vst [vmem:[#allocation48_spill] sm:$0xff] %v4785_v18 }
 0x286   :  { %v261_v59 = vadd.f32 %v259_v20, %v4663_v7  ;;  %v260_v8 = vadd.f32 %v259_v20, %v4593_v47  ;;  %v262_v50 = vadd.f32 %v259_v20, %v4542_v32  ;;  %v263_v24 = vadd.f32 %v259_v20, %v4635_v62 }
 0x287   :  { %v264_v14 = vadd.f32 %v259_v20, %v4692_v37  ;;  %v6519_v37 = vmov -1e+30  }
 0x288   :  { %vm269_vm4 = vcmp.gt.f32.partialorder %v261_v59, 0.0  ;;  %v277_v57 = vmul.f32 0.2, %v261_v59  ;;  %vm268_vm5 = vcmp.gt.f32.partialorder %v260_v8, 0.0  ;;  %v276_v7 = vmul.f32 0.2, %v260_v8 }
 0x289   :  { %vm270_vm7 = vcmp.gt.f32.partialorder %v262_v50, 0.0  ;;  %v278_v32 = vmul.f32 0.2, %v262_v50  ;;  %v279_v34 = vmul.f32 0.2, %v263_v24  ;;  %vm271_vm9 = vcmp.gt.f32.partialorder %v263_v24, 0.0 }
 0x28a   :  { %v285_v47 = vsel %vm269_vm4, %v261_v59, %v277_v57  ;;  %v284_v62 = vsel %vm268_vm5, %v260_v8, %v276_v7  ;;  %v4805_v59 = vsel %vm57_vm8, 0.0, %v6519_v37  ;;  %v280_v57 = vmul.f32 0.2, %v264_v14 }
 0x28b   :  { %v4792_v21 = vadd.f32 %v285_v47, %v4782_v23  ;;  %v4795_v35 = vadd.f32 %v284_v62, %v4785_v18  ;;  %v286_v17 = vsel %vm270_vm7, %v262_v50, %v278_v32  ;;  %6520 = vst [vmem:[#allocation50_spill] sm:$0xff] %v4805_v59  ;;  %v287_v8 = vsel %vm271_vm9, %v263_v24, %v279_v34 }
 0x28c   :  { %v4802_v46 = vadd.f32 %v286_v17, %v4788_v41  ;;  %v265_v7 = vadd.f32 %v259_v20, %v4725_v29  ;;  %vm272_vm11 = vcmp.gt.f32.partialorder %v264_v14, 0.0  ;;  %v51_v50 = vcvt.s32.f32 %v43_v56 }
 0x28d   :  { %v304_v22 = vsel %vm300_vm6, %v4792_v21, -inf  ;;  %v301_v15 = vsel %vm300_vm6, %v4795_v35, -inf  ;;  %v44_v32 = vunpack.c.2.s8 %v4772_v1  ;;  %v4812_v62 = vadd.f32 %v287_v8, %v4805_v59 }
 0x28e   :  { %305 = vmax.xlane.f32.xlu0 %v304_v22  ;;  %302 = vmax.xlane.f32.xlu1 %v301_v15  ;;  %v307_v47 = vsel %vm300_vm6, %v4802_v46, -inf  ;;  %v4815_v15 = vsel %vm58_vm10, 0.0, %v6519_v37  ;;  %v288_v22 = vsel %vm272_vm11, %v264_v14, %v280_v57  ;;  %v281_v24 = vmul.f32 0.2, %v265_v7 }
 0x28f   :  { %6521 = vst [vmem:[#allocation51_spill] sm:$0xff] %v4815_v15  ;;  %v266_v34 = vadd.f32 %v259_v20, %v4678_v13  ;;  %vm59_vm12 = vcmp.gt.f32.partialorder %v51_v50, 0.5  ;;  %vm273_vm13 = vcmp.gt.f32.partialorder %v265_v7, 0.0  ;;  %v52_v29 = vcvt.s32.f32 %v44_v32 }
 0x290   :  { %v45_v56 = vunpack.c.3.s8 %v4772_v1  ;;  %v310_v43 = vsel %vm300_vm6, %v4812_v62, -inf  ;;  %v4822_v17 = vadd.f32 %v288_v22, %v4815_v15  ;;  %v4825_v8 = vsel %vm59_vm12, 0.0, %v6519_v37 }
 0x291   :  { %6522 = vst [vmem:[#allocation52_spill] sm:$0xff] %v4825_v8  ;;  %v282_v14 = vmul.f32 0.2, %v266_v34  ;;  %v267_v57 = vadd.f32 %v259_v20, %v4711_v54  ;;  %vm60_vm14 = vcmp.gt.f32.partialorder %v52_v29, 0.5  ;;  %vm274_vm15 = vcmp.gt.f32.partialorder %v266_v34, 0.0 }
 0x292   :  { %308 = vmax.xlane.f32.xlu1 %v307_v47  ;;  %v289_v47 = vsel %vm273_vm13, %v265_v7, %v281_v24  ;;  %v53_v13 = vcvt.s32.f32 %v45_v56  ;;  %v313_v1 = vsel %vm300_vm6, %v4822_v17, -inf  ;;  %v4834_v32 = vsel %vm60_vm14, 0.0, %v6519_v37 }
 0x293   :  { %v4831_v50 = vadd.f32 %v289_v47, %v4825_v8  ;;  %6523 = vst [vmem:[#allocation53_spill] sm:$0xff] %v4834_v32  ;;  %v290_v22 = vsel %vm274_vm15, %v266_v34, %v282_v14  ;;  %vm275_vm2 = vcmp.gt.f32.partialorder %v267_v57, 0.0  ;;  %v6525_v47 = vld [vmem:[#allocation2_spill] sm:$0xff] }
 0x294   :  { %vm61_vm1 = vcmp.gt.f32.partialorder %v53_v13, 0.5  ;;  %v4839_v20 = vadd.f32 %v290_v22, %v4834_v32 }
 0x295   :  { %v316_v54 = vsel %vm300_vm6, %v4831_v50, -inf  ;;  %v4842_v7 = vsel %vm61_vm1, 0.0, %v6519_v37 }
 0x296   :  { %311 = vmax.xlane.f32.xlu1 %v310_v43  ;;  %v283_v43 = vmul.f32 0.2, %v267_v57  ;;  %v319_v29 = vsel %vm300_vm6, %v4839_v20, -inf }
 0x298   :  { %v291_v24 = vsel %vm275_vm2, %v267_v57, %v283_v43 }
 0x299   :  { %v4847_v56 = vadd.f32 %v291_v24, %v4842_v7  ;;  %v6528_v24 = vld [vmem:[#allocation9_spill] sm:$0xff] }
 0x29a   :  { %314 = vmax.xlane.f32.xlu1 %v313_v1  ;;  %v6526_v1 = vld [vmem:[#allocation8_spill] sm:$0xff] }
 0x29b   :  { %v322_v34 = vsel %vm300_vm6, %v4847_v56, -inf }
 0x29e   :  { %317 = vmax.xlane.f32.xlu1 %v316_v54 }
 0x2a2   :  { %320 = vmax.xlane.f32.xlu1 %v319_v29 }
 0x2a6   :  { %323 = vmax.xlane.f32.xlu1 %v322_v34  ;;  %v6530_v34 = vld [vmem:[#allocation10_spill] sm:$0xff] }
 0x2bb   :  { %494 = vxpose.xlu0.b32.start [1/8] (short) (narrow) %v4598_v48, 8 }
 0x2bf   :  { %495 = vxpose.xlu0.b32.cont [2/8] (short) (narrow) %v4603_v51, 8 }
 0x2c3   :  { %496 = vxpose.xlu0.b32.cont [3/8] (short) (narrow) %v4548_v33, 8  ;;  %v1111_v33 = vpop.permute.xlu1 %1110 }
 0x2c7   :  { %497 = vxpose.xlu0.b32.cont [4/8] (short) (narrow) %v4639_v63, 8 }
 0x2cb   :  { %498 = vxpose.xlu0.b32.cont [5/8] (short) (narrow) %v4680_v31, 8 }
 0x2cf   :  { %499 = vxpose.xlu0.b32.cont [6/8] (short) (narrow) %v4728_v45, 8  ;;  %v1737_v45 = vpop.permute.xlu1 %1736 }
 0x2d3   :  { %500 = vxpose.xlu0.b32.cont [7/8] (short) (narrow) %v4633_v61, 8  ;;  %v4869_v48 = vpop.permute.xlu1 %547 }
 0x2d7   :  { %501 = vxpose.xlu0.b32.end [8/8] (short) (narrow) %v4715_v60, 8 }
 0x2d9   :  { %1750 = vxpose.xlu1.b32.start [1/8] (short) (narrow) %v4615_v55, 8 }
 0x2db   :  { %1124 = vxpose.xlu0.b32.start [1/8] (short) (narrow) %v4605_v52, 8 }
 0x2dd   :  { %1751 = vxpose.xlu1.b32.cont [2/8] (short) (narrow) %v4674_v11, 8 }
 0x2df   :  { %1125 = vxpose.xlu0.b32.cont [2/8] (short) (narrow) %v4668_v9, 8 }
 0x2e1   :  { %1752 = vxpose.xlu1.b32.cont [3/8] (short) (narrow) %v4571_v40, 8  ;;  %v2050_v40 = vpop.permute.xlu1 %2049 }
 0x2e3   :  { %1126 = vxpose.xlu0.b32.cont [3/8] (short) (narrow) %v4560_v36, 8 }
 0x2e5   :  { %1753 = vxpose.xlu1.b32.cont [4/8] (short) (narrow) %v4656_v5, 8  ;;  %v2052_v36 = vpop.permute.xlu1 %2051 }
 0x2e7   :  { %1127 = vxpose.xlu0.b32.cont [4/8] (short) (narrow) %v4648_v3, 8 }
 0x2e9   :  { %1754 = vxpose.xlu1.b32.cont [5/8] (short) (narrow) %v4703_v25, 8  ;;  %v4879_v25 = vpop.permute.xlu1 %1157 }
 0x2eb   :  { %1128 = vxpose.xlu0.b32.cont [5/8] (short) (narrow) %v4696_v27, 8 }
 0x2ed   :  { %1755 = vxpose.xlu1.b32.cont [6/8] (short) (narrow) %v1737_v45, 8  ;;  %v4884_v27 = vpop.permute.xlu1 %2364  ;;  %v6531_v45 = vmov 76  }
 0x2ef   :  { %1129 = vxpose.xlu0.b32.cont [6/8] (short) (narrow) %v1111_v33, 8 }
 0x2f1   :  { %1756 = vxpose.xlu1.b32.cont [7/8] (short) (narrow) %v4684_v49, 8 }
 0x2f3   :  { %1130 = vxpose.xlu0.b32.cont [7/8] (short) (narrow) %v4682_v38, 8 }
 0x2f5   :  { %1757 = vxpose.xlu1.b32.end [8/8] (short) (narrow) %v4698_v30, 8 }
 0x2f7   :  { %1131 = vxpose.xlu0.b32.end [8/8] (short) (narrow) %v4694_v28, 8  ;;  %v4889_v28 = vpop.permute.xlu1 %1165 }
 0x2f9   :  { %2063 = vxpose.xlu1.b32.start [1/8] (short) (narrow) %v4625_v58, 8 }
 0x2fb   :  { %1437 = vxpose.xlu0.b32.start [1/8] (short) (narrow) %v4609_v53, 8  ;;  %v2054_v30 = vpop.permute.xlu1 %2053 }
 0x2fd   :  { %2064 = vxpose.xlu1.b32.cont [2/8] (short) (narrow) %v4676_v12, 8 }
 0x2ff   :  { %1438 = vxpose.xlu0.b32.cont [2/8] (short) (narrow) %v4672_v10, 8 }
 0x301   :  { %2065 = vxpose.xlu1.b32.cont [3/8] (short) (narrow) %v4585_v44, 8 }
 0x303   :  { %1439 = vxpose.xlu0.b32.cont [3/8] (short) (narrow) %v4566_v39, 8  ;;  %v4893_v39 = vpop.trf.xlu1 }
 0x305   :  { %2066 = vxpose.xlu1.b32.cont [4/8] (short) (narrow) %v4660_v6, 8 }
 0x307   :  { %1440 = vxpose.xlu0.b32.cont [4/8] (short) (narrow) %v4651_v4, 8 }
 0x309   :  { %2067 = vxpose.xlu1.b32.cont [5/8] (short) (narrow) %v4707_v2, 8 }
 0x30b   :  { %1441 = vxpose.xlu0.b32.cont [5/8] (short) (narrow) %v4700_v26, 8 }
 0x30d   :  { %2068 = vxpose.xlu1.b32.cont [6/8] (short) (narrow) %v2050_v40, 8  ;;  %v6532_v40 = vld [vmem:[#allocation3_spill] sm:$0xff] }
 0x30f   :  { %1442 = vxpose.xlu0.b32.cont [6/8] (short) (narrow) %v4709_v19, 8 }
 0x311   :  { %2069 = vxpose.xlu1.b32.cont [7/8] (short) (narrow) %v2052_v36, 8  ;;  %v6533_v36 = vmov 77  }
 0x313   :  { %1443 = vxpose.xlu0.b32.cont [7/8] (short) (narrow) %v4642_v0, 8 }
 0x315   :  { %2070 = vxpose.xlu1.b32.end [8/8] (short) (narrow) %v2054_v30, 8  ;;  %v6534_v30 = vld [vmem:[#allocation4_spill] sm:$0xff] }
 0x317   :  { %1444 = vxpose.xlu0.b32.end [8/8] (short) (narrow) %v4719_v42, 8 }
 0x31b   :  { %v306_v44 = vpop.xlane.xlu0 %305  ;;  %v303_v51 = vpop.xlane.xlu1 %302 }
 0x31c   :  { %v326_v52 = vsub.f32 %v4792_v21, %v306_v44  ;;  %v325_v26 = vsub.f32 %v4795_v35, %v303_v51  ;;  %v6524_v35 = vmov 74   ;;  %v6535_v44 = vld [vmem:[#allocation14_spill] sm:$0xff]  ;;  %v6536_v51 = vld [vmem:[#allocation19_spill] sm:$0xff] }
 0x31e   :  { %v335_v53 = vmul.f32 1.442695, %v326_v52  ;;  %v333_v55 = vmul.f32 1.442695, %v325_v26  ;;  %v6537_v52 = vld [vmem:[#allocation13_spill] sm:$0xff] }
 0x31f   :  { %v309_v58 = vpop.xlane.xlu1 %308  ;;  %v6538_v26 = vld [vmem:[#allocation17_spill] sm:$0xff] }
 0x320   :  { %3946 = vpow2.f32 %v335_v53  ;;  %v327_v19 = vsub.f32 %v4802_v46, %v309_v58  ;;  %v6539_v53 = vld [vmem:[#allocation23_spill] sm:$0xff]  ;;  %v6540_v58 = vld [vmem:[#allocation37_spill] sm:$0xff] }
 0x321   :  { %3948 = vpow2.f32 %v333_v55 }
 0x322   :  { %v337_v61 = vmul.f32 1.442695, %v327_v19 }
 0x323   :  { %v312_v63 = vpop.xlane.xlu1 %311 }
 0x324   :  { %v328_v0 = vsub.f32 %v4812_v62, %v312_v63  ;;  %3950 = vpow2.f32 %v337_v61  ;;  %v6541_v63 = vld [vmem:[#allocation27_spill] sm:$0xff] }
 0x326   :  { %v339_v3 = vmul.f32 1.442695, %v328_v0 }
 0x327   :  { %v315_v42 = vpop.xlane.xlu1 %314 }
 0x328   :  { %3952 = vpow2.f32 %v339_v3  ;;  %v329_v4 = vsub.f32 %v4822_v17, %v315_v42 }
 0x32a   :  { %v3947_v21 = vpop.eup %3946  ;;  %v341_v6 = vmul.f32 1.442695, %v329_v4  ;;  %v6542_v4 = vld [vmem:[#allocation46_spill] sm:$0xff] }
 0x32b   :  { %v3949_v5 = vpop.eup %3948  ;;  %v318_v9 = vpop.xlane.xlu1 %317  ;;  %v352_v19 = vsel %vm300_vm6, %v3947_v21, 0.0 }
 0x32c   :  { %v330_v10 = vsub.f32 %v4831_v50, %v318_v9  ;;  %v373_v11 = vpack.c.bf16 %v3947_v21, %v3949_v5  ;;  %3954 = vpow2.f32 %v341_v6  ;;  %v6527_v50 = vld [vmem:[#allocation7_spill] sm:$0xff]  ;;  %v349_v55 = vsel %vm300_vm6, %v3949_v5, 0.0 }
 0x32d   :  { %v6544_v9 = vld [vmem:[#allocation15_spill] sm:$0xff] }
 0x32e   :  { %v343_v12 = vmul.f32 1.442695, %v330_v10  ;;  %3726 = vmatprep.mubr.msk.bf16.mxu1 %vm300_vm6, %v373_v11  ;;  %v3951_v49 = vpop.eup %3950 }
 0x32f   :  { %v321_v31 = vpop.xlane.xlu1 %320  ;;  %v355_v61 = vsel %vm300_vm6, %v3951_v49, 0.0 }
 0x330   :  { %3956 = vpow2.f32 %v343_v12  ;;  %v331_v38 = vsub.f32 %v4839_v20, %v321_v31 }
 0x332   :  { %v3953_v60 = vpop.eup %3952  ;;  %v345_v2 = vmul.f32 1.442695, %v331_v38  ;;  %v6545_v38 = vld [vmem:[#allocation16_spill] sm:$0xff] }
 0x333   :  { %3929 = vset.pattern.permute.xlu1 %v6524_v35  ;;  %v324_v46 = vpop.xlane.xlu1 %323  ;;  %v374_v37 = vpack.c.bf16 %v3953_v60, %v3951_v49  ;;  %v358_v54 = vsel %vm300_vm6, %v3953_v60, 0.0  ;;  %v6546_v35 = vmov 78  }
 0x334   :  { %v332_v62 = vsub.f32 %v4847_v56, %v324_v46  ;;  %844 = vperm.xlu1 %3929, %v4389_v16   ;;  %3958 = vpow2.f32 %v345_v2  ;;  %v6529_v56 = vmov 75  }
 0x335   :  { %3727 = vmatmul.mubr.msk.bf16.vlgmr.msra.gmra.mrb[0].mxu1 %vm300_vm6, %v374_v37 }
 0x336   :  { %v347_v17 = vmul.f32 1.442695, %v332_v62  ;;  %v3955_v14 = vpop.eup %3954  ;;  %v6547_v62 = vld [vmem:[#allocation21_spill] sm:$0xff] }
 0x337   :  { %v361_v0 = vsel %vm300_vm6, %v3955_v14, 0.0 }
 0x338   :  { %3960 = vpow2.f32 %v347_v17  ;;  %852 = vperm.xlu1 %3929, %v6525_v47  }
 0x33a   :  { %v3957_v57 = vpop.eup %3956 }
 0x33b   :  { %v375_v13 = vpack.c.bf16 %v3957_v57, %v3955_v14  ;;  %v364_v29 = vsel %vm300_vm6, %v3957_v57, 0.0  ;;  %v510_v42 = vpop.trf.xlu0 }
 0x33c   :  { %860 = vperm.xlu1 %3929, %v6526_v1   ;;  %v4944_v5 = vrot.slane %v510_v42, %v6542_v4  ;;  %v6551_v42 = vld [vmem:[#allocation36_spill] sm:$0xff] }
 0x33d   :  { %3730 = vmatprep.mubr.msk.bf16.mxu1 %vm300_vm6, %v375_v13 }
 0x33e   :  { %v3959_v22 = vpop.eup %3958  ;;  %v564_v10 = vadd.f32 %v4944_v5, %v6544_v9  ;;  %v565_v49 = vadd.f32 %v4944_v5, %v6545_v38  ;;  %v566_v17 = vadd.f32 %v4944_v5, %v6547_v62  ;;  %v6553_v62 = vld [vmem:[#allocation26_spill] sm:$0xff] }
 0x33f   :  { %v367_v3 = vsel %vm300_vm6, %v3959_v22, 0.0 }
 0x340   :  { %868 = vperm.xlu1 %3929, %v6527_v50   ;;  %v580_v31 = vmul.f32 0.2, %v564_v10  ;;  %vm572_vm4 = vcmp.gt.f32.partialorder %v564_v10, 0.0  ;;  %v581_v37 = vmul.f32 0.2, %v565_v49  ;;  %vm573_vm5 = vcmp.gt.f32.partialorder %v565_v49, 0.0 }
 0x341   :  { %vm574_vm7 = vcmp.gt.f32.partialorder %v566_v17, 0.0 }
 0x342   :  { %v3961_v43 = vpop.eup %3960  ;;  %v588_v46 = vsel %vm572_vm4, %v564_v10, %v580_v31 }
 0x343   :  { %v376_v20 = vpack.c.bf16 %v3961_v43, %v3959_v22  ;;  %v370_v33 = vsel %vm300_vm6, %v3961_v43, 0.0  ;;  %v4972_v13 = vadd.f32 %v588_v46, %v4788_v41  ;;  %v4976_v22 = vrot.slane %v4893_v39, %v6542_v4  ;;  %v6549_v39 = vld [vmem:[#allocation35_spill] sm:$0xff] }
 0x344   :  { %872 = vperm.xlu1 %3929, %v6528_v24   ;;  %359 = vadd.xlane.f32.xlu0 %v358_v54  ;;  %v589_v43 = vsel %vm573_vm5, %v565_v49, %v581_v37  ;;  %v582_v54 = vmul.f32 0.2, %v566_v17  ;;  %v6552_v49 = vld [vmem:[#allocation25_spill] sm:$0xff] }
 0x345   :  { %3731 = vmatmul.mubr.msk.bf16.gmra.mrb[4].mxu1 %vm300_vm6, %v376_v20  ;;  %v6548_v20 = vld [vmem:[#allocation24_spill] sm:$0xff] }
 0x348   :  { %3930 = vset.pattern.permute.xlu1 %v6529_v56  ;;  %365 = vadd.xlane.f32.xlu0 %v364_v29  ;;  %v569_v29 = vadd.f32 %v4944_v5, %v6548_v20  ;;  %v608_v56 = vsel %vm300_vm6, %v4972_v13, -inf }
 0x349   :  { %1177 = vperm.xlu1 %3930, %v6530_v34  }
 0x34a   :  { %vm577_vm8 = vcmp.gt.f32.partialorder %v569_v29, 0.0 }
 0x34c   :  { %371 = vadd.xlane.f32.xlu0 %v370_v33  ;;  %v4984_v33 = vadd.f32 %v589_v43, %v4805_v59 }
 0x34d   :  { %1181 = vperm.xlu1 %3930, %v6527_v50  }
 0x351   :  { %3931 = vset.pattern.permute.xlu1 %v6531_v45 }
 0x352   :  { %1470 = vperm.xlu1 %3931, %v4389_v16  }
 0x356   :  { %1478 = vperm.xlu1 %3931, %v6525_v47  }
 0x359   :  { %v4953_v11 = vpop.trf.xlu1 }
 0x35a   :  { %1482 = vperm.xlu1 %3931, %v6532_v40  }
 0x35e   :  { %3932 = vset.pattern.permute.xlu1 %v6533_v36 }
 0x35f   :  { %1787 = vperm.xlu1 %3932, %v6534_v30  }
 0x363   :  { %1791 = vperm.xlu1 %3932, %v6525_v47  }
 0x367   :  { %3933 = vset.pattern.permute.xlu1 %v6531_v45  ;;  %v590_v45 = vsel %vm574_vm7, %v566_v17, %v582_v54 }
 0x368   :  { %1486 = vperm.xlu1 %3933, %v6526_v1  }
 0x379   :  { %2376 = vxpose.xlu0.b32.start [1/8] (short) (narrow) %v6535_v44, 8  ;;  %v4958_v60 = vpop.trf.xlu1 }
 0x37d   :  { %2377 = vxpose.xlu0.b32.cont [2/8] (short) (narrow) %v6536_v51, 8  ;;  %v6550_v51 = vmov 79  }
 0x381   :  { %2378 = vxpose.xlu0.b32.cont [3/8] (short) (narrow) %v6537_v52, 8  ;;  %v611_v52 = vsel %vm300_vm6, %v4984_v33, -inf }
 0x385   :  { %2379 = vxpose.xlu0.b32.cont [4/8] (short) (narrow) %v6538_v26, 8  ;;  %v4993_v26 = vadd.f32 %v590_v45, %v4815_v15 }
 0x389   :  { %2380 = vxpose.xlu0.b32.cont [5/8] (short) (narrow) %v6539_v53, 8 }
 0x38c   :  { %350 = vadd.xlane.f32.xlu1 %v349_v55 }
 0x38d   :  { %2381 = vxpose.xlu0.b32.cont [6/8] (short) (narrow) %v6540_v58, 8 }
 0x390   :  { %353 = vadd.xlane.f32.xlu1 %v352_v19  ;;  %v1140_v19 = vpop.trf.xlu0 }
 0x391   :  { %2382 = vxpose.xlu0.b32.cont [7/8] (short) (narrow) %v4884_v27, 8  ;;  %v6543_v27 = vld [vmem:[#allocation20_spill] sm:$0xff] }
 0x392   :  { %v562_v21 = vadd.f32 %v4944_v5, %v6543_v27  ;;  %v882_v27 = vadd.f32 %v4976_v22, %v6551_v42 }
 0x394   :  { %356 = vadd.xlane.f32.xlu1 %v355_v61  ;;  %v578_v6 = vmul.f32 0.2, %v562_v21  ;;  %vm570_vm3 = vcmp.gt.f32.partialorder %v562_v21, 0.0  ;;  %v614_v61 = vsel %vm300_vm6, %v4993_v26, -inf  ;;  %v898_v9 = vmul.f32 0.2, %v882_v27 }
 0x395   :  { %2383 = vxpose.xlu0.b32.end [8/8] (short) (narrow) %v6541_v63, 8  ;;  %v5003_v63 = vrot.slane %v1140_v19, %v6542_v4  ;;  %vm890_vm11 = vcmp.gt.f32.partialorder %v882_v27, 0.0 }
 0x396   :  { %v586_v12 = vsel %vm570_vm3, %v562_v21, %v578_v6  ;;  %v906_v31 = vsel %vm890_vm11, %v882_v27, %v898_v9 }
 0x397   :  { %v4961_v2 = vadd.f32 %v586_v12, %v4785_v18  ;;  %v1192_v10 = vadd.f32 %v5003_v63, %v4879_v25  ;;  %v1193_v46 = vadd.f32 %v5003_v63, %v6552_v49  ;;  %v1195_v17 = vadd.f32 %v5003_v63, %v6553_v62 }
 0x398   :  { %362 = vadd.xlane.f32.xlu1 %v361_v0 }
 0x399   :  { %v602_v57 = vsel %vm300_vm6, %v4961_v2, -inf  ;;  %v1208_v38 = vmul.f32 0.2, %v1192_v10  ;;  %vm1200_vm12 = vcmp.gt.f32.partialorder %v1192_v10, 0.0  ;;  %v1209_v37 = vmul.f32 0.2, %v1193_v46 }
 0x39a   :  { %vm1201_vm13 = vcmp.gt.f32.partialorder %v1193_v46, 0.0  ;;  %v1211_v20 = vmul.f32 0.2, %v1195_v17  ;;  %vm1203_vm14 = vcmp.gt.f32.partialorder %v1195_v17, 0.0 }
 0x39b   :  { %v1217_v54 = vsel %vm1201_vm13, %v1193_v46, %v1209_v37 }
 0x39c   :  { %368 = vadd.xlane.f32.xlu1 %v367_v3  ;;  %v1219_v45 = vsel %vm1203_vm14, %v1195_v17, %v1211_v20 }
 0x3ad   :  { %1494 = vperm.xlu1 %3933, %v6527_v50  }
 0x3b1   :  { %1498 = vperm.xlu1 %3933, %v6528_v24  }
 0x3b3   :  { %v4967_v14 = vpop.permute.xlu1 %844 }
 0x3b5   :  { %3934 = vset.pattern.permute.xlu1 %v6533_v36  ;;  %v585_v36 = vmul.f32 0.2, %v569_v29 }
 0x3b6   :  { %1803 = vperm.xlu1 %3934, %v6530_v34  }
 0x3b7   :  { %v853_v44 = vpop.permute.xlu1 %852  ;;  %v593_v55 = vsel %vm577_vm8, %v569_v29, %v585_v36 }
 0x3b8   :  { %v881_v53 = vadd.f32 %v4976_v22, %v853_v44 }
 0x3ba   :  { %1807 = vperm.xlu1 %3934, %v6527_v50   ;;  %v897_v0 = vmul.f32 0.2, %v881_v53  ;;  %vm889_vm10 = vcmp.gt.f32.partialorder %v881_v53, 0.0 }
 0x3bc   :  { %v905_v6 = vsel %vm889_vm10, %v881_v53, %v897_v0 }
 0x3bd   :  { %v5020_v12 = vadd.f32 %v905_v6, %v4788_v41 }
 0x3be   :  { %3935 = vset.pattern.permute.xlu1 %v6546_v35 }
 0x3bf   :  { %2100 = vperm.xlu1 %3935, %v6534_v30   ;;  %v880_v30 = vadd.f32 %v4976_v22, %v6549_v39  ;;  %v925_v25 = vsel %vm300_vm6, %v5020_v12, -inf  ;;  %v5048_v39 = vadd.f32 %v1219_v45, %v4805_v59 }
 0x3c1   :  { %v896_v58 = vmul.f32 0.2, %v880_v30  ;;  %vm888_vm9 = vcmp.gt.f32.partialorder %v880_v30, 0.0  ;;  %6554 = vst [vmem:[#allocation2_spill] sm:$0xff] %v5048_v39 }
 0x3c2   :  { %603 = vmax.xlane.f32.xlu0 %v602_v57 }
 0x3c3   :  { %2104 = vperm.xlu1 %3935, %v6525_v47   ;;  %v904_v3 = vsel %vm888_vm9, %v880_v30, %v896_v58  ;;  %v1241_v30 = vsel %vm300_vm6, %v5048_v39, -inf  ;;  %v567_v58 = vadd.f32 %v4944_v5, %v4869_v48  ;;  %v879_v48 = vadd.f32 %v4976_v22, %v4967_v14 }
 0x3c4   :  { %v5011_v21 = vadd.f32 %v904_v3, %v4782_v23  ;;  %v6557_v3 = vld [vmem:[#allocation22_spill] sm:$0xff] }
 0x3c5   :  { %v583_v0 = vmul.f32 0.2, %v567_v58  ;;  %v568_v42 = vadd.f32 %v4944_v5, %v6557_v3  ;;  %vm575_vm1 = vcmp.gt.f32.partialorder %v567_v58, 0.0  ;;  %vm887_vm3 = vcmp.gt.f32.partialorder %v879_v48, 0.0 }
 0x3c6   :  { %609 = vmax.xlane.f32.xlu0 %v608_v56  ;;  %v5042_v56 = vadd.f32 %v1217_v54, %v4782_v23 }
 0x3c7   :  { %3936 = vset.pattern.permute.xlu1 %v6550_v51  ;;  %v591_v6 = vsel %vm575_vm1, %v567_v58, %v583_v0  ;;  %v584_v9 = vmul.f32 0.2, %v568_v42  ;;  %vm576_vm2 = vcmp.gt.f32.partialorder %v568_v42, 0.0 }
 0x3c8   :  { %2409 = vperm.xlu1 %3936, %v4389_v16   ;;  %v5000_v16 = vadd.f32 %v593_v55, %v4842_v7  ;;  %v1235_v36 = vsel %vm300_vm6, %v5042_v56, -inf }
 0x3c9   :  { %v592_v46 = vsel %vm576_vm2, %v568_v42, %v584_v9 }
 0x3ca   :  { %612 = vmax.xlane.f32.xlu0 %v611_v52  ;;  %v6555_v52 = vld [vmem:[#allocation18_spill] sm:$0xff]  ;;  %v5088_v37 = vadd.f32 %v592_v46, %v4834_v32 }
 0x3cb   :  { %v563_v53 = vadd.f32 %v4944_v5, %v6555_v52  ;;  %v5077_v5 = vadd.f32 %v591_v6, %v4825_v8 }
 0x3cc   :  { %2417 = vperm.xlu1 %3936, %v6525_v47   ;;  %v623_v47 = vsel %vm300_vm6, %v5000_v16, -inf  ;;  %v620_v54 = vsel %vm300_vm6, %v5088_v37, -inf }
 0x3cd   :  { %v579_v55 = vmul.f32 0.2, %v563_v53  ;;  %vm571_vm15 = vcmp.gt.f32.partialorder %v563_v53, 0.0 }
 0x3ce   :  { %615 = vmax.xlane.f32.xlu0 %v614_v61 }
 0x3cf   :  { %v587_v61 = vsel %vm571_vm15, %v563_v53, %v579_v55  ;;  %v6562_v53 = vld [vmem:[#allocation28_spill] sm:$0xff] }
 0x3d0   :  { %2421 = vperm.xlu1 %3936, %v6532_v40   ;;  %v922_v40 = vsel %vm300_vm6, %v5011_v21, -inf  ;;  %v1196_v55 = vadd.f32 %v5003_v63, %v6562_v53 }
 0x3d2   :  { %624 = vmax.xlane.f32.xlu0 %v623_v47  ;;  %v5066_v47 = vadd.f32 %v587_v61, %v4782_v23  ;;  %v1212_v6 = vmul.f32 0.2, %v1196_v55  ;;  %vm1204_vm7 = vcmp.gt.f32.partialorder %v1196_v55, 0.0 }
 0x3d4   :  { %3937 = vset.pattern.permute.xlu1 %v6546_v35  ;;  %v1216_v35 = vsel %vm1200_vm12, %v1192_v10, %v1208_v38  ;;  %v895_v38 = vmul.f32 0.2, %v879_v48 }
 0x3d5   :  { %2116 = vperm.xlu1 %3937, %v6530_v34   ;;  %v5028_v34 = vadd.f32 %v906_v31, %v4805_v59  ;;  %v5036_v43 = vadd.f32 %v1216_v35, %v4785_v18  ;;  %v605_v31 = vsel %vm300_vm6, %v5066_v47, -inf  ;;  %v617_v35 = vsel %vm300_vm6, %v5077_v5, -inf }
 0x3d6   :  { %923 = vmax.xlane.f32.xlu0 %v922_v40  ;;  %v903_v62 = vsel %vm887_vm3, %v879_v48, %v895_v38 }
 0x3d7   :  { %v928_v57 = vsel %vm300_vm6, %v5028_v34, -inf  ;;  %v1232_v29 = vsel %vm300_vm6, %v5036_v43, -inf  ;;  %v5096_v20 = vadd.f32 %v903_v62, %v4785_v18  ;;  %v1220_v62 = vsel %vm1204_vm7, %v1196_v55, %v1212_v6  ;;  %v6573_v55 = vld [vmem:[#allocation6_spill] sm:$0xff] }
 0x3d9   :  { %2120 = vperm.xlu1 %3937, %v6527_v50  }
 0x3da   :  { %926 = vmax.xlane.f32.xlu0 %v925_v25 }
 0x3dd   :  { %3938 = vset.pattern.permute.xlu1 %v6550_v51 }
 0x3de   :  { %2425 = vperm.xlu1 %3938, %v6526_v1   ;;  %929 = vmax.xlane.f32.xlu0 %v928_v57  ;;  %v861_v1 = vpop.permute.xlu1 %860 }
 0x3df   :  { %v883_v17 = vadd.f32 %v4976_v22, %v861_v1 }
 0x3e1   :  { %vm891_vm4 = vcmp.gt.f32.partialorder %v883_v17, 0.0 }
 0x3e2   :  { %2433 = vperm.xlu1 %3938, %v6527_v50   ;;  %1233 = vmax.xlane.f32.xlu0 %v1232_v29  ;;  %v5053_v44 = vpop.permute.xlu1 %868  ;;  %v899_v29 = vmul.f32 0.2, %v883_v17 }
 0x3e4   :  { %v907_v1 = vsel %vm891_vm4, %v883_v17, %v899_v29  ;;  %v5128_v17 = vadd.f32 %v1220_v62, %v4815_v15 }
 0x3e6   :  { %2437 = vperm.xlu1 %3938, %v6528_v24   ;;  %1236 = vmax.xlane.f32.xlu0 %v1235_v36  ;;  %v873_v51 = vpop.permute.xlu1 %872  ;;  %v6556_v24 = vld [vmem:[#allocation5_spill] sm:$0xff]  ;;  %v919_v36 = vsel %vm300_vm6, %v5096_v20, -inf  ;;  %6569 = vst [vmem:[#allocation23_spill] sm:$0xff] %v5128_v17 }
 0x3e7   :  { %v886_v45 = vadd.f32 %v4976_v22, %v873_v51  ;;  %v5112_v51 = vadd.f32 %v907_v1, %v4815_v15 }
 0x3e9   :  { %vm894_vm5 = vcmp.gt.f32.partialorder %v886_v45, 0.0  ;;  %6566 = vst [vmem:[#allocation19_spill] sm:$0xff] %v5112_v51 }
 0x3ea   :  { %1242 = vmax.xlane.f32.xlu0 %v1241_v30  ;;  %v1178_v50 = vpop.permute.xlu1 %1177  ;;  %v902_v30 = vmul.f32 0.2, %v886_v45 }
 0x3eb   :  { %v1197_v3 = vadd.f32 %v5003_v63, %v1178_v50 }
 0x3ec   :  { %v910_v48 = vsel %vm894_vm5, %v886_v45, %v902_v30 }
 0x3ed   :  { %v5122_v38 = vadd.f32 %v910_v48, %v4842_v7  ;;  %v1213_v46 = vmul.f32 0.2, %v1197_v3  ;;  %vm1205_vm8 = vcmp.gt.f32.partialorder %v1197_v3, 0.0 }
 0x3ee   :  { %v1182_v19 = vpop.permute.xlu1 %1181 }
 0x3ef   :  { %6568 = vst [vmem:[#allocation17_spill] sm:$0xff] %v5122_v38  ;;  %v940_v50 = vsel %vm300_vm6, %v5122_v38, -inf  ;;  %v1221_v45 = vsel %vm1205_vm8, %v1197_v3, %v1213_v46 }
 0x3f0   :  { %v5137_v1 = vadd.f32 %v1221_v45, %v4825_v8 }
 0x3f2   :  { %v5063_v27 = vpop.permute.xlu1 %1470  ;;  %6571 = vst [vmem:[#allocation37_spill] sm:$0xff] %v5137_v1  ;;  %v1247_v3 = vsel %vm300_vm6, %v5137_v1, -inf }
 0x3f6   :  { %v5081_v14 = vpop.permute.xlu1 %1478 }
 0x3fa   :  { %v5091_v57 = vpop.permute.xlu1 %1482 }
 0x3fe   :  { %v5101_v52 = vpop.permute.xlu1 %1787 }
 0x400   :  { %684 = vrot.lane.b32.xlu0 %v6556_v24, %s4299_s1 }
 0x402   :  { %v5117_v9 = vpop.permute.xlu1 %1791 }
 0x406   :  { %v5130_v29 = vpop.permute.xlu1 %1486 }
 0x408   :  { %v5070_v10 = vpop.f32.mrb[0].mxu1 }
 0x409   :  { %6558 = vst [vmem:[#allocation8_spill] sm:$0xff] %v5070_v10  ;;  %v5072_v40 = vpop.f32.mrb[1].mxu1 }
 0x40a   :  { %6559 = vst [vmem:[#allocation7_spill] sm:$0xff] %v5072_v40  ;;  %606 = vmax.xlane.f32.xlu1 %v605_v31  ;;  %v5079_v49 = vpop.f32.mrb[2].mxu1  ;;  %v931_v31 = vsel %vm300_vm6, %v5112_v51, -inf }
 0x40b   :  { %6560 = vst [vmem:[#allocation9_spill] sm:$0xff] %v5079_v49  ;;  %v5083_v25 = vpop.f32.mrb[3].mxu1 }
 0x40c   :  { %6561 = vst [vmem:[#allocation10_spill] sm:$0xff] %v5083_v25 }
 0x40e   :  { %618 = vmax.xlane.f32.xlu1 %v617_v35  ;;  %v1198_v35 = vadd.f32 %v5003_v63, %v1182_v19  ;;  %v1244_v19 = vsel %vm300_vm6, %v5128_v17, -inf }
 0x410   :  { %vm1206_vm9 = vcmp.gt.f32.partialorder %v1198_v35, 0.0 }
 0x412   :  { %621 = vmax.xlane.f32.xlu1 %v620_v54  ;;  %v1214_v54 = vmul.f32 0.2, %v1198_v35 }
 0x414   :  { %v1222_v48 = vsel %vm1206_vm9, %v1198_v35, %v1214_v54 }
 0x416   :  { %920 = vmax.xlane.f32.xlu1 %v919_v36  ;;  %v6570_v36 = vld [vmem:[#allocation29_spill] sm:$0xff] }
 0x417   :  { %v1199_v30 = vadd.f32 %v5003_v63, %v6570_v36 }
 0x418   :  { %v5105_v58 = vpop.f32.mrb[4].mxu1 }
 0x419   :  { %6563 = vst [vmem:[#allocation3_spill] sm:$0xff] %v5105_v58  ;;  %v5107_v61 = vpop.f32.mrb[5].mxu1  ;;  %v5139_v53 = vpop.xlane.xlu1 %350  ;;  %v1215_v6 = vmul.f32 0.2, %v1199_v30  ;;  %vm1207_vm10 = vcmp.gt.f32.partialorder %v1199_v30, 0.0 }
 0x41a   :  { %6564 = vst [vmem:[#allocation4_spill] sm:$0xff] %v5107_v61  ;;  %v5109_v0 = vpop.f32.mrb[6].mxu1  ;;  %6572 = vst [vmem:[#allocation27_spill] sm:$0xff] %v5139_v53 }
 0x41b   :  { %6565 = vst [vmem:[#allocation14_spill] sm:$0xff] %v5109_v0  ;;  %v5115_v42 = vpop.f32.mrb[7].mxu1  ;;  %v1223_v46 = vsel %vm1207_vm10, %v1199_v30, %v1215_v6  ;;  %v1194_v30 = vadd.f32 %v5003_v63, %v4889_v28  ;;  %v6580_v6 = vld [vmem:[#allocation38_spill] sm:$0xff] }
 0x41c   :  { %6567 = vst [vmem:[#allocation13_spill] sm:$0xff] %v5115_v42  ;;  %v5153_v45 = vadd.f32 %v1223_v46, %v4842_v7  ;;  %v6582_v42 = vld [vmem:[#allocation11_spill] sm:$0xff] }
 0x41d   :  { %v5148_v62 = vpop.xlane.xlu1 %353  ;;  %vm1202_vm11 = vcmp.gt.f32.partialorder %v1194_v30, 0.0 }
 0x41e   :  { %6575 = vst [vmem:[#allocation15_spill] sm:$0xff] %v5148_v62  ;;  %6576 = vst [vmem:[#allocation16_spill] sm:$0xff] %v5153_v45  ;;  %v1253_v35 = vsel %vm300_vm6, %v5153_v45, -inf }
 0x41f   :  { %932 = vmax.xlane.f32.xlu0 %v931_v31  ;;  %v5146_v31 = vadd.f32 %v1222_v48, %v4834_v32  ;;  %v1210_v48 = vmul.f32 0.2, %v1194_v30 }
 0x421   :  { %6574 = vst [vmem:[#allocation20_spill] sm:$0xff] %v5146_v31  ;;  %v5157_v54 = vpop.xlane.xlu1 %356  ;;  %v1218_v46 = vsel %vm1202_vm11, %v1194_v30, %v1210_v48  ;;  %v1453_v48 = vpop.trf.xlu0 }
 0x422   :  { %6577 = vst [vmem:[#allocation21_spill] sm:$0xff] %v5157_v54  ;;  %v5170_v58 = vadd.f32 %v1218_v46, %v4788_v41 }
 0x423   :  { %941 = vmax.xlane.f32.xlu0 %v940_v50  ;;  %v1250_v50 = vsel %vm300_vm6, %v5146_v31, -inf }
 0x424   :  { %6581 = vst [vmem:[#allocation36_spill] sm:$0xff] %v5170_v58  ;;  %v1238_v28 = vsel %vm300_vm6, %v5170_v58, -inf }
 0x425   :  { %v5159_v36 = vpop.xlane.xlu1 %362 }
 0x426   :  { %6578 = vst [vmem:[#allocation24_spill] sm:$0xff] %v5159_v36 }
 0x427   :  { %682 = vrot.lane.b32.xlu1 %v6573_v55, %s4299_s1  ;;  %1245 = vmax.xlane.f32.xlu0 %v1244_v19 }
 0x429   :  { %v5163_v19 = vpop.xlane.xlu1 %368 }
 0x42a   :  { %6579 = vst [vmem:[#allocation35_spill] sm:$0xff] %v5163_v19 }
 0x42b   :  { %1248 = vmax.xlane.f32.xlu0 %v1247_v3  ;;  %v884_v3 = vadd.f32 %v4976_v22, %v6580_v6 }
 0x42d   :  { %vm892_vm12 = vcmp.gt.f32.partialorder %v884_v3, 0.0  ;;  %v5167_v0 = vpop.permute.xlu1 %1494 }
 0x42f   :  { %1251 = vmax.xlane.f32.xlu0 %v1250_v50  ;;  %v900_v50 = vmul.f32 0.2, %v884_v3 }
 0x431   :  { %v5179_v6 = vpop.permute.xlu1 %1498 }
 0x433   :  { %1254 = vmax.xlane.f32.xlu0 %v1253_v35  ;;  %v908_v35 = vsel %vm892_vm12, %v884_v3, %v900_v50  ;;  %v5185_v3 = vpop.xlane.xlu0 %359  ;;  %v5188_v50 = vrot.slane %v1453_v48, %v6542_v4 }
 0x434   :  { %v5177_v63 = vadd.f32 %v908_v35, %v4825_v8  ;;  %6583 = vst [vmem:[#allocation25_spill] sm:$0xff] %v5185_v3 }
 0x435   :  { %v5183_v46 = vpop.permute.xlu1 %1803  ;;  %v1505_v35 = vadd.f32 %v5188_v50, %v5063_v27 }
 0x436   :  { %v934_v30 = vsel %vm300_vm6, %v5177_v63, -inf }
 0x437   :  { %v5194_v19 = vpop.xlane.xlu0 %365  ;;  %vm1513_vm13 = vcmp.gt.f32.partialorder %v1505_v35, 0.0 }
 0x438   :  { %6584 = vst [vmem:[#allocation26_spill] sm:$0xff] %v5194_v19 }
 0x439   :  { %v5190_v61 = vpop.permute.xlu1 %1807 }
 0x43b   :  { %v5198_v49 = vpop.xlane.xlu0 %371 }
 0x43c   :  { %6585 = vst [vmem:[#allocation18_spill] sm:$0xff] %v5198_v49 }
 0x43e   :  { %v5196_v36 = vpop.permute.xlu1 %2100 }
 0x43f   :  { %v5202_v25 = vpop.trf.xlu0 }
 0x442   :  { %v5204_v48 = vpop.permute.xlu1 %2104 }
 0x447   :  { %v5211_v3 = vpop.permute.xlu1 %2409 }
 0x449   :  { %688 = vrot.lane.b32.xlu0 %v6582_v42, %s4299_s1 }
 0x44b   :  { %1239 = vmax.xlane.f32.xlu1 %v1238_v28  ;;  %v1521_v28 = vmul.f32 0.2, %v1505_v35  ;;  %v5215_v49 = vpop.permute.xlu1 %2417 }
 0x44c   :  { %6588 = vst [vmem:[#allocation22_spill] sm:$0xff] %v5215_v49 }
 0x44d   :  { %v1529_v10 = vsel %vm1513_vm13, %v1505_v35, %v1521_v28  ;;  %v885_v35 = vadd.f32 %v4976_v22, %v5053_v44 }
 0x44e   :  { %v5207_v40 = vadd.f32 %v1529_v10, %v4785_v18 }
 0x44f   :  { %935 = vmax.xlane.f32.xlu1 %v934_v30  ;;  %v6586_v30 = vld [vmem:[#allocation12_spill] sm:$0xff]  ;;  %v604_v27 = vpop.xlane.xlu0 %603  ;;  %v5221_v28 = vpop.permute.xlu1 %2421  ;;  %v901_v10 = vmul.f32 0.2, %v885_v35  ;;  %vm893_vm14 = vcmp.gt.f32.partialorder %v885_v35, 0.0 }
 0x450   :  { %6587 = vst [vmem:[#allocation5_spill] sm:$0xff] %v5207_v40  ;;  %v1545_v19 = vsel %vm300_vm6, %v5207_v40, -inf  ;;  %6589 = vst [vmem:[#allocation28_spill] sm:$0xff] %v5221_v28 }
 0x453   :  { %v5213_v54 = vpop.xlane.xlu0 %609 }
 0x454   :  { %v5225_v31 = vpop.permute.xlu1 %2116 }
 0x455   :  { %6590 = vst [vmem:[#allocation29_spill] sm:$0xff] %v5225_v31  ;;  %v6595_v31 = vld [vmem:[#allocation31_spill] sm:$0xff] }
 0x457   :  { %v5217_v62 = vpop.xlane.xlu0 %612 }
 0x458   :  { %v5234_v39 = vpop.permute.xlu1 %2120 }
 0x459   :  { %6592 = vst [vmem:[#allocation38_spill] sm:$0xff] %v5234_v39 }
 0x45b   :  { %v5223_v53 = vpop.xlane.xlu0 %615 }
 0x45d   :  { %v5238_v1 = vpop.permute.xlu1 %2425 }
 0x45e   :  { %6593 = vst [vmem:[#allocation11_spill] sm:$0xff] %v5238_v1 }
 0x45f   :  { %v5229_v45 = vpop.xlane.xlu0 %624 }
 0x460   :  { %686 = vrot.lane.b32.xlu1 %v6586_v30, %s4299_s1 }
 0x461   :  { %v5246_v58 = vpop.permute.xlu1 %2433 }
 0x462   :  { %6594 = vst [vmem:[#allocation12_spill] sm:$0xff] %v5246_v58 }
 0x463   :  { %v924_v44 = vpop.xlane.xlu0 %923 }
 0x465   :  { %v5253_v40 = vpop.permute.xlu1 %2437 }
 0x468   :  { %1546 = vmax.xlane.f32.xlu0 %v1545_v19  ;;  %v909_v19 = vsel %vm893_vm14, %v885_v35, %v901_v10  ;;  %v5242_v35 = vrot.slane %v4953_v11, %v6542_v4  ;;  %v5244_v10 = vpop.xlane.xlu0 %926 }
 0x469   :  { %v5232_v17 = vadd.f32 %v909_v19, %v4834_v32 }
 0x46a   :  { %v1818_v19 = vadd.f32 %v5242_v35, %v6595_v31 }
 0x46b   :  { %6591 = vst [vmem:[#allocation6_spill] sm:$0xff] %v5232_v17  ;;  %v937_v22 = vsel %vm300_vm6, %v5232_v17, -inf }
 0x46c   :  { %v5250_v28 = vpop.xlane.xlu0 %929  ;;  %v1834_v39 = vmul.f32 0.2, %v1818_v19  ;;  %vm1826_vm15 = vcmp.gt.f32.partialorder %v1818_v19, 0.0 }
 0x46e   :  { %v1842_v11 = vsel %vm1826_vm15, %v1818_v19, %v1834_v39  ;;  %v944_v39 = vsub.f32 %v5011_v21, %v924_v44  ;;  %v6600_v44 = vld [vmem:[#allocation30_spill] sm:$0xff] }
 0x46f   :  { %v5261_v31 = vadd.f32 %v1842_v11, %v4785_v18 }
 0x470   :  { %v5257_v49 = vpop.xlane.xlu0 %1233 }
 0x471   :  { %6596 = vst [vmem:[#allocation31_spill] sm:$0xff] %v5261_v31 }
 0x47e   :  { %1308 = vrot.lane.b32.xlu0 %v6573_v55, %s4300_s25 }
 0x484   :  { %938 = vmax.xlane.f32.xlu1 %v937_v22  ;;  %v626_v22 = vsub.f32 %v4961_v2, %v604_v27  ;;  %v1858_v2 = vsel %vm300_vm6, %v5261_v31, -inf  ;;  %v5267_v27 = vpop.xlane.xlu0 %1236 }
 0x486   :  { %v634_v1 = vmul.f32 1.442695, %v626_v22  ;;  %v953_v22 = vmul.f32 1.442695, %v944_v39  ;;  %v1506_v39 = vadd.f32 %v5188_v50, %v6600_v44  ;;  %v1819_v44 = vadd.f32 %v5242_v35, %v5101_v52 }
 0x488   :  { %3962 = vpow2.f32 %v634_v1  ;;  %vm1514_vm1 = vcmp.gt.f32.partialorder %v1506_v39, 0.0  ;;  %vm1827_vm4 = vcmp.gt.f32.partialorder %v1819_v44, 0.0 }
 0x492   :  { %v5275_v1 = vpop.eup %3962 }
 0x493   :  { %6598 = vst [vmem:[#allocation55_spill] sm:$0xff] %v5275_v1 }
 0x495   :  { %995 = vrot.lane.b32.xlu1 %v6573_v55, %s4301_s26 }
 0x497   :  { %v607_v58 = vpop.xlane.xlu1 %606 }
 0x498   :  { %v627_v38 = vsub.f32 %v5066_v47, %v607_v58  ;;  %v5272_v47 = vpop.xlane.xlu0 %1242 }
 0x499   :  { %6597 = vst [vmem:[#allocation54_spill] sm:$0xff] %v5272_v47 }
 0x49a   :  { %v636_v17 = vmul.f32 1.442695, %v627_v38 }
 0x49b   :  { %v5263_v51 = vpop.xlane.xlu1 %618 }
 0x49c   :  { %3964 = vpow2.f32 %v636_v17  ;;  %v685_v21 = vpop.permute.xlu0 %684 }
 0x49d   :  { %1859 = vmax.xlane.f32.xlu0 %v1858_v2  ;;  %3966 = vpow2.f32 %v953_v22 }
 0x49f   :  { %v5270_v19 = vpop.xlane.xlu1 %621 }
 0x4a3   :  { %v921_v58 = vpop.xlane.xlu1 %920 }
 0x4a4   :  { %v943_v38 = vsub.f32 %v5096_v20, %v921_v58  ;;  %v1507_v20 = vadd.f32 %v5188_v50, %v5081_v14  ;;  %v1522_v58 = vmul.f32 0.2, %v1506_v39 }
 0x4a6   :  { %v5277_v11 = vpop.eup %3964  ;;  %v951_v17 = vmul.f32 1.442695, %v943_v38  ;;  %v1523_v38 = vmul.f32 0.2, %v1507_v20  ;;  %vm1515_vm2 = vcmp.gt.f32.partialorder %v1507_v20, 0.0 }
 0x4a7   :  { %6599 = vst [vmem:[#allocation56_spill] sm:$0xff] %v5277_v11  ;;  %v683_v31 = vpop.permute.xlu1 %682  ;;  %v674_v2 = vpack.c.bf16 %v5277_v11, %v5275_v1  ;;  %v5286_v22 = vpop.eup %3966  ;;  %v1530_v1 = vsel %vm1514_vm1, %v1506_v39, %v1522_v58  ;;  %v1835_v11 = vmul.f32 0.2, %v1819_v44 }
 0x4a8   :  { %3968 = vpow2.f32 %v951_v17  ;;  %3734 = vmatprep.subr.bf16.mxu0 %v683_v31  ;;  %6601 = vst [vmem:[#allocation30_spill] sm:$0xff] %v5286_v22  ;;  %v1508_v17 = vadd.f32 %v5188_v50, %v5091_v57  ;;  %v5297_v14 = vadd.f32 %v1530_v1, %v4782_v23  ;;  %v1531_v57 = vsel %vm1515_vm2, %v1507_v20, %v1523_v38 }
 0x4a9   :  { %3735 = vmatpush3.bf16.msra.mxu0 %v683_v31  ;;  %3742 = vmatprep.mubr.msk.bf16.mxu0 %vm300_vm6, %v674_v2  ;;  %v5305_v58 = vadd.f32 %v1531_v57, %v4788_v41  ;;  %v1843_v38 = vsel %vm1827_vm4, %v1819_v44, %v1835_v11 }
 0x4aa   :  { %3736 = vmatprep.subr.bf16.mxu0 %v685_v21  ;;  %vm1516_vm3 = vcmp.gt.f32.partialorder %v1508_v17, 0.0  ;;  %v1548_v39 = vsel %vm300_vm6, %v5297_v14, -inf }
 0x4ab   :  { %6603 = vst [vmem:[#allocation58_spill] sm:$0xff] %v5305_v58  ;;  %v1551_v52 = vsel %vm300_vm6, %v5305_v58, -inf }
 0x4ac   :  { %v5316_v47 = vpop.xlane.xlu0 %932 }
 0x4ad   :  { %3737 = vmatpush3.bf16.msra.mxu0 %v685_v21  ;;  %v1524_v21 = vmul.f32 0.2, %v1508_v17 }
 0x4af   :  { %v1532_v1 = vsel %vm1516_vm3, %v1508_v17, %v1524_v21  ;;  %v5321_v17 = vadd.f32 %v1843_v38, %v4782_v23  ;;  %v1511_v38 = vadd.f32 %v5188_v50, %v5167_v0 }
 0x4b0   :  { %v5330_v44 = vpop.xlane.xlu0 %941 }
 0x4b1   :  { %v1861_v11 = vsel %vm300_vm6, %v5321_v17, -inf  ;;  %vm1519_vm9 = vcmp.gt.f32.partialorder %v1511_v38, 0.0 }
 0x4b2   :  { %v5290_v31 = vpop.eup %3968 }
 0x4b3   :  { %6602 = vst [vmem:[#allocation57_spill] sm:$0xff] %v5290_v31  ;;  %999 = vrot.lane.b32.xlu0 %v6586_v30, %s4301_s26  ;;  %v991_v2 = vpack.c.bf16 %v5286_v22, %v5290_v31  ;;  %v1820_v22 = vadd.f32 %v5242_v35, %v5117_v9  ;;  %v6605_v31 = vld [vmem:[#allocation32_spill] sm:$0xff] }
 0x4b4   :  { %v1821_v57 = vadd.f32 %v5242_v35, %v6605_v31  ;;  %6606 = vst [vmem:[#allocation32_spill] sm:$0xff] %v5321_v17 }
 0x4b5   :  { %3758 = vmatprep.mubr.msk.bf16.mxu1 %vm300_vm6, %v991_v2  ;;  %v5312_v2 = vadd.f32 %v1532_v1, %v4805_v59  ;;  %v1836_v20 = vmul.f32 0.2, %v1820_v22  ;;  %vm1828_vm5 = vcmp.gt.f32.partialorder %v1820_v22, 0.0  ;;  %v6607_v1 = vld [vmem:[#allocation39_spill] sm:$0xff] }
 0x4b6   :  { %vm1829_vm7 = vcmp.gt.f32.partialorder %v1821_v57, 0.0 }
 0x4b7   :  { %6604 = vst [vmem:[#allocation59_spill] sm:$0xff] %v5312_v2  ;;  %v1554_v9 = vsel %vm300_vm6, %v5312_v2, -inf  ;;  %v1844_v21 = vsel %vm1828_vm5, %v1820_v22, %v1836_v20 }
 0x4b8   :  { %v5328_v31 = vadd.f32 %v1844_v21, %v4788_v41  ;;  %v6610_v21 = vld [vmem:[#allocation33_spill] sm:$0xff] }
 0x4b9   :  { %1549 = vmax.xlane.f32.xlu1 %v1548_v39  ;;  %v1837_v39 = vmul.f32 0.2, %v1821_v57  ;;  %v1822_v17 = vadd.f32 %v5242_v35, %v6610_v21 }
 0x4ba   :  { %6608 = vst [vmem:[#allocation39_spill] sm:$0xff] %v5328_v31  ;;  %v1864_v22 = vsel %vm300_vm6, %v5328_v31, -inf }
 0x4bb   :  { %v1845_v2 = vsel %vm1829_vm7, %v1821_v57, %v1837_v39  ;;  %vm1830_vm10 = vcmp.gt.f32.partialorder %v1822_v17, 0.0 }
 0x4bc   :  { %v5337_v20 = vadd.f32 %v1845_v2, %v4805_v59  ;;  %v1823_v2 = vadd.f32 %v5242_v35, %v5183_v46  ;;  %v629_v46 = vsub.f32 %v4984_v33, %v5217_v62 }
 0x4bd   :  { %1552 = vmax.xlane.f32.xlu1 %v1551_v52  ;;  %v1510_v52 = vadd.f32 %v5188_v50, %v6607_v1  ;;  %v1527_v1 = vmul.f32 0.2, %v1511_v38 }
 0x4be   :  { %6609 = vst [vmem:[#allocation60_spill] sm:$0xff] %v5337_v20  ;;  %v1867_v0 = vsel %vm300_vm6, %v5337_v20, -inf  ;;  %v1839_v31 = vmul.f32 0.2, %v1823_v2  ;;  %vm1831_vm11 = vcmp.gt.f32.partialorder %v1823_v2, 0.0 }
 0x4bf   :  { %vm1518_vm8 = vcmp.gt.f32.partialorder %v1510_v52, 0.0  ;;  %v1535_v39 = vsel %vm1519_vm9, %v1511_v38, %v1527_v1  ;;  %v631_v38 = vsub.f32 %v5077_v5, %v5263_v51  ;;  %v628_v1 = vsub.f32 %v4972_v13, %v5213_v54 }
 0x4c0   :  { %v5355_v21 = vadd.f32 %v1535_v39, %v4834_v32  ;;  %v640_v5 = vmul.f32 1.442695, %v629_v46 }
 0x4c1   :  { %1555 = vmax.xlane.f32.xlu1 %v1554_v9  ;;  %v1526_v9 = vmul.f32 0.2, %v1510_v52  ;;  %v644_v13 = vmul.f32 1.442695, %v631_v38  ;;  %v638_v54 = vmul.f32 1.442695, %v628_v1  ;;  %v633_v38 = vsub.f32 %v5000_v16, %v5229_v45 }
 0x4c2   :  { %v1563_v39 = vsel %vm300_vm6, %v5355_v21, -inf  ;;  %3970 = vpow2.f32 %v640_v5 }
 0x4c3   :  { %v1534_v58 = vsel %vm1518_vm8, %v1510_v52, %v1526_v9  ;;  %3972 = vpow2.f32 %v644_v13  ;;  %v648_v45 = vmul.f32 1.442695, %v633_v38 }
 0x4c4   :  { %v5346_v57 = vadd.f32 %v1534_v58, %v4825_v8  ;;  %3974 = vpow2.f32 %v638_v54 }
 0x4c5   :  { %1862 = vmax.xlane.f32.xlu1 %v1861_v11  ;;  %v5341_v11 = vpop.xlane.xlu0 %1245 }
 0x4c6   :  { %6611 = vst [vmem:[#allocation33_spill] sm:$0xff] %v5346_v57  ;;  %v1560_v9 = vsel %vm300_vm6, %v5346_v57, -inf }
 0x4c9   :  { %1865 = vmax.xlane.f32.xlu1 %v1864_v22  ;;  %v1838_v22 = vmul.f32 0.2, %v1822_v17  ;;  %v5350_v52 = vpop.xlane.xlu0 %1248 }
 0x4cb   :  { %v1846_v58 = vsel %vm1830_vm10, %v1822_v17, %v1838_v22  ;;  %v1847_v17 = vsel %vm1831_vm11, %v1823_v2, %v1839_v31  ;;  %v6612_v22 = vld [vmem:[#allocation34_spill] sm:$0xff]  ;;  %v1257_v2 = vsub.f32 %v5042_v56, %v5267_v27 }
 0x4cc   :  { %v5368_v20 = vadd.f32 %v1846_v58, %v4815_v15  ;;  %v1825_v33 = vadd.f32 %v5242_v35, %v6612_v22  ;;  %v5381_v58 = vadd.f32 %v1847_v17, %v4825_v8 }
 0x4cd   :  { %1868 = vmax.xlane.f32.xlu1 %v1867_v0  ;;  %v1824_v0 = vadd.f32 %v5242_v35, %v5190_v61  ;;  %v630_v61 = vsub.f32 %v4993_v26, %v5223_v53  ;;  %v5374_v51 = vpop.xlane.xlu0 %1251  ;;  %v632_v35 = vsub.f32 %v5088_v37, %v5270_v19  ;;  %v1256_v37 = vsub.f32 %v5036_v43, %v5257_v49  ;;  %v5409_v49 = vpop.eup %3970 }
 0x4ce   :  { %6613 = vst [vmem:[#allocation34_spill] sm:$0xff] %v5381_v58  ;;  %v1841_v31 = vmul.f32 0.2, %v1825_v33  ;;  %vm1833_vm13 = vcmp.gt.f32.partialorder %v1825_v33, 0.0  ;;  %v1266_v19 = vmul.f32 1.442695, %v1257_v2 }
 0x4cf   :  { %v1840_v57 = vmul.f32 0.2, %v1824_v0  ;;  %vm1832_vm12 = vcmp.gt.f32.partialorder %v1824_v0, 0.0  ;;  %v642_v26 = vmul.f32 1.442695, %v630_v61  ;;  %6615 = vst [vmem:[#allocation62_spill] sm:$0xff] %v5409_v49 }
 0x4d0   :  { %v1849_v56 = vsel %vm1833_vm13, %v1825_v33, %v1841_v31  ;;  %v646_v27 = vmul.f32 1.442695, %v632_v35  ;;  %v1264_v17 = vmul.f32 1.442695, %v1256_v37  ;;  %v5413_v33 = vpop.eup %3972  ;;  %v1509_v37 = vadd.f32 %v5188_v50, %v5130_v29 }
 0x4d1   :  { %v1848_v53 = vsel %vm1832_vm12, %v1824_v0, %v1840_v57  ;;  %v5391_v1 = vpop.xlane.xlu0 %1254  ;;  %v1873_v57 = vsel %vm300_vm6, %v5381_v58, -inf  ;;  %3976 = vpow2.f32 %v642_v26  ;;  %v5405_v61 = vadd.f32 %v1849_v56, %v4842_v7  ;;  %6616 = vst [vmem:[#allocation63_spill] sm:$0xff] %v5413_v33  ;;  %v5415_v5 = vpop.eup %3974 }
 0x4d2   :  { %1561 = vmax.xlane.f32.xlu0 %v1560_v9  ;;  %v1870_v9 = vsel %vm300_vm6, %v5368_v20, -inf  ;;  %v5396_v0 = vadd.f32 %v1848_v53, %v4834_v32  ;;  %3978 = vpow2.f32 %v646_v27  ;;  %v675_v54 = vpack.c.bf16 %v5409_v49, %v5415_v5 }
 0x4d3   :  { %6614 = vst [vmem:[#allocation61_spill] sm:$0xff] %v5405_v61  ;;  %3980 = vpow2.f32 %v1266_v19  ;;  %v1879_v22 = vsel %vm300_vm6, %v5405_v61, -inf  ;;  %v1525_v27 = vmul.f32 0.2, %v1509_v37  ;;  %vm1517_vm14 = vcmp.gt.f32.partialorder %v1509_v37, 0.0 }
 0x4d4   :  { %3982 = vpow2.f32 %v648_v45  ;;  %v5454_v29 = vrot.slane %v4958_v60, %v6542_v4  ;;  %v946_v61 = vsub.f32 %v5028_v34, %v5250_v28 }
 0x4d5   :  { %v689_v43 = vpop.permute.xlu0 %688  ;;  %3984 = vpow2.f32 %v1264_v17  ;;  %v1533_v19 = vsel %vm1517_vm14, %v1509_v37, %v1525_v27 }
 0x4d6   :  { %1564 = vmax.xlane.f32.xlu0 %v1563_v39  ;;  %v1876_v39 = vsel %vm300_vm6, %v5396_v0, -inf }
 0x4d8   :  { %v5376_v62 = vpop.xlane.xlu1 %1239 }
 0x4da   :  { %1871 = vmax.xlane.f32.xlu0 %v1870_v9 }
 0x4db   :  { %v5417_v13 = vpop.eup %3976 }
 0x4dc   :  { %v5387_v46 = vpop.xlane.xlu1 %935  ;;  %v676_v9 = vpack.c.bf16 %v5413_v33, %v5417_v13  ;;  %v5425_v26 = vpop.eup %3978 }
 0x4dd   :  { %v5427_v53 = vpop.eup %3980  ;;  %v948_v58 = vsub.f32 %v5177_v63, %v5387_v46 }
 0x4de   :  { %1874 = vmax.xlane.f32.xlu0 %v1873_v57  ;;  %997 = vrot.lane.b32.xlu1 %v6556_v24, %s4301_s26  ;;  %6617 = vst [vmem:[#allocation64_spill] sm:$0xff] %v5427_v53  ;;  %v5429_v31 = vpop.eup %3982 }
 0x4df   :  { %6618 = vst [vmem:[#allocation65_spill] sm:$0xff] %v5429_v31  ;;  %v5431_v35 = vpop.eup %3984  ;;  %v677_v2 = vpack.c.bf16 %v5429_v31, %v5425_v26  ;;  %v945_v31 = vsub.f32 %v5020_v12, %v5244_v10  ;;  %v961_v49 = vmul.f32 1.442695, %v948_v58 }
 0x4e0   :  { %v687_v16 = vpop.permute.xlu1 %686  ;;  %v1304_v38 = vpack.c.bf16 %v5427_v53, %v5431_v35 }
 0x4e1   :  { %3738 = vmatprep.subr.bf16.mxu0 %v687_v16  ;;  %v955_v63 = vmul.f32 1.442695, %v945_v31 }
 0x4e2   :  { %1877 = vmax.xlane.f32.xlu0 %v1876_v39  ;;  %1310 = vrot.lane.b32.xlu1 %v6556_v24, %s4300_s25  ;;  %v6619_v39 = vld [vmem:[#allocation40_spill] sm:$0xff] }
 0x4e3   :  { %3739 = vmatpush3.bf16.msra.mxu0 %v687_v16  ;;  %v5448_v16 = vadd.f32 %v1533_v19, %v4815_v15  ;;  %v2131_v17 = vadd.f32 %v5454_v29, %v6619_v39 }
 0x4e4   :  { %3740 = vmatprep.subr.bf16.mxu0 %v689_v43 }
 0x4e5   :  { %v1557_v45 = vsel %vm300_vm6, %v5448_v16, -inf  ;;  %vm2139_vm15 = vcmp.gt.f32.partialorder %v2131_v17, 0.0 }
 0x4e6   :  { %1880 = vmax.xlane.f32.xlu0 %v1879_v22  ;;  %v2147_v22 = vmul.f32 0.2, %v2131_v17 }
 0x4e7   :  { %3741 = vmatpush3.bf16.msra.mxu0 %v689_v43 }
 0x4ea   :  { %3743 = vmatmul.mubr.msk.bf16.vlgmr.msra.gmra.mrb[8].mxu0 %vm300_vm6, %v675_v54 }
 0x4eb   :  { %3746 = vmatprep.mubr.msk.bf16.mxu0 %vm300_vm6, %v676_v9  ;;  %v2155_v9 = vsel %vm2139_vm15, %v2131_v17, %v2147_v22 }
 0x4f2   :  { %3747 = vmatmul.mubr.msk.bf16.gmra.mrb[12].mxu0 %vm300_vm6, %v677_v2  ;;  %v5463_v2 = vadd.f32 %v2155_v9, %v4785_v18 }
 0x4f3   :  { %3774 = vmatprep.mubr.msk.bf16.mxu0 %vm300_vm6, %v1304_v38  ;;  %v1512_v38 = vadd.f32 %v5188_v50, %v5179_v6 }
 0x4f4   :  { %v2171_v60 = vsel %vm300_vm6, %v5463_v2, -inf }
 0x4f5   :  { %v5439_v57 = vpop.xlane.xlu0 %1546  ;;  %v1528_v37 = vmul.f32 0.2, %v1512_v38  ;;  %vm1520_vm1 = vcmp.gt.f32.partialorder %v1512_v38, 0.0 }
 0x4f9   :  { %v1309_v56 = vpop.permute.xlu0 %1308 }
 0x4fa   :  { %3766 = vmatprep.subr.bf16.mxu0 %v1309_v56 }
 0x4fb   :  { %3767 = vmatpush3.bf16.msra.mxu0 %v1309_v56  ;;  %v1536_v56 = vsel %vm1520_vm1, %v1512_v38, %v1528_v37 }
 0x4fc   :  { %1001 = vrot.lane.b32.xlu0 %v6582_v42, %s4301_s26  ;;  %v5472_v27 = vadd.f32 %v1536_v56, %v4842_v7 }
 0x4fe   :  { %v1566_v19 = vsel %vm300_vm6, %v5472_v27, -inf }
 0x500   :  { %1621 = vrot.lane.b32.xlu0 %v6573_v55, %s4302_s27 }
 0x506   :  { %1558 = vmax.xlane.f32.xlu1 %v1557_v45  ;;  %v5478_v45 = vrot.slane %v5202_v25, %v6542_v4  ;;  %v2133_v4 = vadd.f32 %v5454_v29, %v5204_v48  ;;  %v6622_v48 = vld [vmem:[#allocation19_spill] sm:$0xff] }
 0x508   :  { %v2444_v6 = vadd.f32 %v5478_v45, %v5211_v3  ;;  %v2149_v53 = vmul.f32 0.2, %v2133_v4  ;;  %vm2141_vm4 = vcmp.gt.f32.partialorder %v2133_v4, 0.0 }
 0x50a   :  { %v2460_v39 = vmul.f32 0.2, %v2444_v6  ;;  %vm2452_vm2 = vcmp.gt.f32.partialorder %v2444_v6, 0.0  ;;  %v2157_v10 = vsel %vm2141_vm4, %v2133_v4, %v2149_v53  ;;  %vm2906_vm4 = vcmask 195584  }
 0x50b   :  { %v5543_v53 = vadd.f32 %v2157_v10, %v4788_v41 }
 0x50c   :  { %v2468_v22 = vsel %vm2452_vm2, %v2444_v6, %v2460_v39  ;;  %v2132_v39 = vadd.f32 %v5454_v29, %v5196_v36  ;;  %v6621_v36 = vld [vmem:[#allocation41_spill] sm:$0xff] }
 0x50d   :  { %v5491_v9 = vadd.f32 %v2468_v22, %v4785_v18 }
 0x50e   :  { %vm2140_vm3 = vcmp.gt.f32.partialorder %v2132_v39, 0.0 }
 0x50f   :  { %v2484_v3 = vsel %vm300_vm6, %v5491_v9, -inf }
 0x511   :  { %v5458_v43 = vpop.xlane.xlu1 %938 }
 0x515   :  { %v996_v54 = vpop.permute.xlu1 %995 }
 0x516   :  { %3750 = vmatprep.subr.bf16.mxu1 %v996_v54 }
 0x517   :  { %1312 = vrot.lane.b32.xlu1 %v6586_v30, %s4300_s25  ;;  %3751 = vmatpush3.bf16.msra.mxu1 %v996_v54 }
 0x51f   :  { %2172 = vmax.xlane.f32.xlu0 %v2171_v60 }
 0x52a   :  { %v5497_v60 = vpop.xlane.xlu0 %1859 }
 0x52e   :  { %v1000_v56 = vpop.permute.xlu0 %999 }
 0x535   :  { %1934 = vrot.lane.b32.xlu0 %v6573_v55, %s4303_s28 }
 0x53b   :  { %1567 = vmax.xlane.f32.xlu1 %v1566_v19 }
 0x546   :  { %v5482_v50 = vpop.xlane.xlu1 %1549 }
 0x54a   :  { %v5484_v17 = vpop.xlane.xlu1 %1552 }
 0x54c   :  { %1314 = vrot.lane.b32.xlu1 %v6582_v42, %s4300_s25 }
 0x54e   :  { %v5488_v54 = vpop.xlane.xlu1 %1555 }
 0x552   :  { %v5493_v25 = vpop.xlane.xlu1 %1862 }
 0x554   :  { %2485 = vmax.xlane.f32.xlu0 %v2484_v3  ;;  %v2148_v3 = vmul.f32 0.2, %v2132_v39 }
 0x556   :  { %v5499_v38 = vpop.xlane.xlu1 %1865 }
 0x55a   :  { %v5501_v37 = vpop.xlane.xlu1 %1868 }
 0x55b   :  { %6620 = vst [vmem:[#allocation40_spill] sm:$0xff] %v5501_v37  ;;  %v957_v37 = vmul.f32 1.442695, %v946_v61  ;;  %v6625_v61 = vld [vmem:[#allocation6_spill] sm:$0xff] }
 0x55c   :  { %v949_v58 = vsub.f32 %v6625_v61, %v5458_v43  ;;  %v6630_v61 = vld [vmem:[#allocation28_spill] sm:$0xff] }
 0x55d   :  { %3986 = vpow2.f32 %v957_v37  ;;  %v6627_v37 = vld [vmem:[#allocation22_spill] sm:$0xff] }
 0x55e   :  { %v998_v19 = vpop.permute.xlu1 %997  ;;  %3988 = vpow2.f32 %v961_v49  ;;  %v2446_v43 = vadd.f32 %v5478_v45, %v6627_v37  ;;  %v6628_v49 = vld [vmem:[#allocation5_spill] sm:$0xff] }
 0x55f   :  { %v5503_v6 = vpop.xlane.xlu0 %1561  ;;  %3752 = vmatprep.subr.bf16.mxu1 %v998_v19  ;;  %3990 = vpow2.f32 %v955_v63  ;;  %v2177_v63 = vsel %vm300_vm6, %v5543_v53, -inf }
 0x560   :  { %3753 = vmatpush3.bf16.msra.mxu1 %v998_v19  ;;  %v2134_v19 = vadd.f32 %v5454_v29, %v6621_v36  ;;  %v6624_v36 = vld [vmem:[#allocation44_spill] sm:$0xff]  ;;  %vm2454_vm8 = vcmp.gt.f32.partialorder %v2446_v43, 0.0 }
 0x561   :  { %3754 = vmatprep.subr.bf16.mxu1 %v1000_v56 }
 0x562   :  { %v1311_v22 = vpop.permute.xlu1 %1310  ;;  %v2150_v34 = vmul.f32 0.2, %v2134_v19  ;;  %vm2142_vm5 = vcmp.gt.f32.partialorder %v2134_v19, 0.0 }
 0x563   :  { %v5507_v18 = vpop.xlane.xlu0 %1564  ;;  %3768 = vmatprep.subr.bf16.mxu0 %v1311_v22 }
 0x564   :  { %3755 = vmatpush3.bf16.msra.mxu1 %v1000_v56  ;;  %3769 = vmatpush3.bf16.msra.mxu0 %v1311_v22  ;;  %v947_v56 = vsub.f32 %v6622_v48, %v5316_v47  ;;  %v2156_v22 = vsel %vm2140_vm3, %v2132_v39, %v2148_v3  ;;  %v2445_v47 = vadd.f32 %v5478_v45, %v6624_v36  ;;  %v6626_v3 = vld [vmem:[#allocation17_spill] sm:$0xff]  ;;  %v2462_v36 = vmul.f32 0.2, %v2446_v43 }
 0x565   :  { %v5528_v46 = vadd.f32 %v2156_v22, %v4782_v23  ;;  %v1570_v39 = vsub.f32 %v5297_v14, %v5482_v50  ;;  %v2158_v31 = vsel %vm2142_vm5, %v2134_v19, %v2150_v34  ;;  %v950_v48 = vsub.f32 %v6626_v3, %v5330_v44 }
 0x566   :  { %v959_v12 = vmul.f32 1.442695, %v947_v56  ;;  %v1569_v14 = vsub.f32 %v6628_v49, %v5439_v57  ;;  %v2461_v50 = vmul.f32 0.2, %v2445_v47  ;;  %v963_v19 = vmul.f32 1.442695, %v949_v58 }
 0x567   :  { %v5519_v33 = vpop.xlane.xlu0 %1871  ;;  %v2174_v4 = vsel %vm300_vm6, %v5528_v46, -inf  ;;  %vm2453_vm7 = vcmp.gt.f32.partialorder %v2445_v47, 0.0  ;;  %v1579_v44 = vmul.f32 1.442695, %v1570_v39  ;;  %v965_v56 = vmul.f32 1.442695, %v950_v48  ;;  %v5558_v58 = vpop.eup %3986 }
 0x568   :  { %3992 = vpow2.f32 %v959_v12  ;;  %v5554_v10 = vadd.f32 %v2158_v31, %v4805_v59  ;;  %v2447_v12 = vadd.f32 %v5478_v45, %v6630_v61  ;;  %v1577_v3 = vmul.f32 1.442695, %v1569_v14  ;;  %v6631_v14 = vld [vmem:[#allocation29_spill] sm:$0xff] }
 0x569   :  { %v2469_v57 = vsel %vm2453_vm7, %v2445_v47, %v2461_v50  ;;  %3994 = vpow2.f32 %v963_v19  ;;  %v2470_v47 = vsel %vm2454_vm8, %v2446_v43, %v2462_v36  ;;  %v2136_v50 = vadd.f32 %v5454_v29, %v6631_v14 }
 0x56a   :  { %1625 = vrot.lane.b32.xlu0 %v6586_v30, %s4302_s27  ;;  %3996 = vpow2.f32 %v1579_v44  ;;  %v2180_v48 = vsel %vm300_vm6, %v5554_v10, -inf  ;;  %v5563_v31 = vadd.f32 %v2469_v57, %v4782_v23  ;;  %v2463_v37 = vmul.f32 0.2, %v2447_v12  ;;  %v6632_v57 = vld [vmem:[#allocation38_spill] sm:$0xff] }
 0x56b   :  { %v5525_v28 = vpop.xlane.xlu0 %1874  ;;  %3998 = vpow2.f32 %v965_v56  ;;  %vm2455_vm9 = vcmp.gt.f32.partialorder %v2447_v12, 0.0  ;;  %v5580_v43 = vadd.f32 %v2470_v47, %v4788_v41  ;;  %vm2144_vm10 = vcmp.gt.f32.partialorder %v2136_v50, 0.0 }
 0x56c   :  { %6623 = vst [vmem:[#allocation41_spill] sm:$0xff] %v5525_v28  ;;  %4000 = vpow2.f32 %v1577_v3  ;;  %v2471_v36 = vsel %vm2455_vm9, %v2447_v12, %v2463_v37  ;;  %v2152_v3 = vmul.f32 0.2, %v2136_v50  ;;  %vm2889_vm3 = vcmask 64512  }
 0x56d   :  { %v2490_v14 = vsel %vm300_vm6, %v5580_v43, -inf  ;;  %v5591_v47 = vadd.f32 %v2471_v36, %v4805_v59  ;;  %vm2915_vm5 = vcmask 261120   ;;  %vm2924_vm7 = vcmask 326656  }
 0x56e   :  { %vm2933_vm8 = vcmask 392192   ;;  %vm2942_vm9 = vcmask 457728  }
 0x56f   :  { %v5538_v22 = vpop.xlane.xlu0 %1877  ;;  %v2493_v36 = vsel %vm300_vm6, %v5591_v47, -inf }
 0x570   :  { %2175 = vmax.xlane.f32.xlu1 %v2174_v4  ;;  %v5565_v4 = vpop.eup %3988 }
 0x571   :  { %v5567_v49 = vpop.eup %3990 }
 0x572   :  { %v5571_v19 = vpop.eup %3992  ;;  %v992_v44 = vpack.c.bf16 %v5558_v58, %v5567_v49 }
 0x573   :  { %v5549_v34 = vpop.xlane.xlu0 %1880  ;;  %v993_v61 = vpack.c.bf16 %v5565_v4, %v5571_v19 }
 0x574   :  { %6629 = vst [vmem:[#allocation19_spill] sm:$0xff] %v5549_v34  ;;  %2178 = vmax.xlane.f32.xlu1 %v2177_v63  ;;  %v2487_v63 = vsel %vm300_vm6, %v5563_v31, -inf }
 0x577   :  { %v1002_v39 = vpop.permute.xlu0 %1001 }
 0x578   :  { %2181 = vmax.xlane.f32.xlu1 %v2180_v48  ;;  %3756 = vmatprep.subr.bf16.mxu1 %v1002_v39  ;;  %v5586_v48 = vpop.eup %3994 }
 0x579   :  { %3757 = vmatpush3.bf16.msra.mxu1 %v1002_v39  ;;  %v2137_v39 = vadd.f32 %v5454_v29, %v6632_v57 }
 0x57b   :  { %v1622_v56 = vpop.permute.xlu0 %1621  ;;  %v2153_v37 = vmul.f32 0.2, %v2137_v39  ;;  %vm2145_vm11 = vcmp.gt.f32.partialorder %v2137_v39, 0.0 }
 0x57c   :  { %2488 = vmax.xlane.f32.xlu1 %v2487_v63  ;;  %3759 = vmatmul.mubr.msk.bf16.vlgmr.msra.gmra.mrb[8].mxu1 %vm300_vm6, %v992_v44  ;;  %v5593_v63 = vpop.eup %3996  ;;  %v6634_v44 = vld [vmem:[#allocation11_spill] sm:$0xff] }
 0x57d   :  { %3782 = vmatprep.subr.bf16.mxu1 %v1622_v56  ;;  %3762 = vmatprep.mubr.msk.bf16.mxu1 %vm300_vm6, %v993_v61  ;;  %v5595_v12 = vpop.eup %3998  ;;  %v2448_v57 = vadd.f32 %v5478_v45, %v6634_v44  ;;  %v2160_v61 = vsel %vm2144_vm10, %v2136_v50, %v2152_v3  ;;  %v2161_v50 = vsel %vm2145_vm11, %v2137_v39, %v2153_v37  ;;  %v6636_v3 = vld [vmem:[#allocation45_spill] sm:$0xff] }
 0x57e   :  { %3783 = vmatpush3.bf16.msra.mxu1 %v1622_v56  ;;  %6633 = vst [vmem:[#allocation44_spill] sm:$0xff] %v5595_v12  ;;  %v5599_v41 = vpop.eup %4000  ;;  %v994_v56 = vpack.c.bf16 %v5595_v12, %v5586_v48  ;;  %v2449_v23 = vadd.f32 %v5478_v45, %v6636_v3  ;;  %v5617_v12 = vadd.f32 %v2161_v50, %v4834_v32 }
 0x57f   :  { %v1617_v59 = vpack.c.bf16 %v5593_v63, %v5599_v41  ;;  %v2464_v44 = vmul.f32 0.2, %v2448_v57  ;;  %vm2456_vm12 = vcmp.gt.f32.partialorder %v2448_v57, 0.0  ;;  %v2451_v3 = vadd.f32 %v5478_v45, %v5253_v40 }
 0x580   :  { %2491 = vmax.xlane.f32.xlu1 %v2490_v14  ;;  %v5609_v14 = vadd.f32 %v2160_v61, %v4825_v8  ;;  %v2465_v28 = vmul.f32 0.2, %v2449_v23  ;;  %vm2457_vm13 = vcmp.gt.f32.partialorder %v2449_v23, 0.0 }
 0x581   :  { %v2472_v61 = vsel %vm2456_vm12, %v2448_v57, %v2464_v44  ;;  %v2467_v57 = vmul.f32 0.2, %v2451_v3  ;;  %vm2459_vm15 = vcmp.gt.f32.partialorder %v2451_v3, 0.0 }
 0x582   :  { %6635 = vst [vmem:[#allocation6_spill] sm:$0xff] %v5609_v14  ;;  %v2186_v34 = vsel %vm300_vm6, %v5609_v14, -inf  ;;  %v5624_v39 = vadd.f32 %v2472_v61, %v4815_v15  ;;  %v2473_v50 = vsel %vm2457_vm13, %v2449_v23, %v2465_v28 }
 0x583   :  { %v2475_v23 = vsel %vm2459_vm15, %v2451_v3, %v2467_v57 }
 0x584   :  { %2494 = vmax.xlane.f32.xlu1 %v2493_v36  ;;  %3763 = vmatmul.mubr.msk.bf16.gmra.mrb[12].mxu1 %vm300_vm6, %v994_v56  ;;  %v6637_v36 = vld [vmem:[#allocation12_spill] sm:$0xff] }
 0x585   :  { %3790 = vmatprep.mubr.msk.bf16.mxu1 %vm300_vm6, %v1617_v59  ;;  %v2450_v56 = vadd.f32 %v5478_v45, %v6637_v36  ;;  %v2189_v59 = vsel %vm300_vm6, %v5617_v12, -inf  ;;  %v2496_v36 = vsel %vm300_vm6, %v5624_v39, -inf }
 0x587   :  { %v2466_v37 = vmul.f32 0.2, %v2450_v56  ;;  %vm2458_vm14 = vcmp.gt.f32.partialorder %v2450_v56, 0.0 }
 0x589   :  { %2187 = vmax.xlane.f32.xlu0 %v2186_v34  ;;  %v5631_v34 = vadd.f32 %v2473_v50, %v4825_v8  ;;  %v2474_v44 = vsel %vm2458_vm14, %v2450_v56, %v2466_v37  ;;  %v5645_v56 = vadd.f32 %v2475_v23, %v4842_v7  ;;  %v6638_v37 = vld [vmem:[#allocation42_spill] sm:$0xff]  ;;  %v6640_v23 = vld [vmem:[#allocation37_spill] sm:$0xff] }
 0x58a   :  { %v5638_v40 = vadd.f32 %v2474_v44, %v4834_v32  ;;  %v2135_v3 = vadd.f32 %v5454_v29, %v6638_v37  ;;  %v6639_v44 = vld [vmem:[#allocation36_spill] sm:$0xff] }
 0x58b   :  { %v2499_v61 = vsel %vm300_vm6, %v5631_v34, -inf }
 0x58c   :  { %v2502_v28 = vsel %vm300_vm6, %v5638_v40, -inf  ;;  %v2151_v50 = vmul.f32 0.2, %v2135_v3  ;;  %vm2143_vm1 = vcmp.gt.f32.partialorder %v2135_v3, 0.0 }
 0x58d   :  { %2190 = vmax.xlane.f32.xlu0 %v2189_v59  ;;  %v2505_v59 = vsel %vm300_vm6, %v5645_v56, -inf }
 0x591   :  { %2497 = vmax.xlane.f32.xlu0 %v2496_v36  ;;  %v2159_v36 = vsel %vm2143_vm1, %v2135_v3, %v2151_v50  ;;  %v6643_v50 = vld [vmem:[#allocation23_spill] sm:$0xff] }
 0x592   :  { %v5658_v57 = vadd.f32 %v2159_v36, %v4815_v15  ;;  %v1260_v36 = vsub.f32 %v6643_v50, %v5341_v11  ;;  %v6647_v15 = vld [vmem:[#allocation16_spill] sm:$0xff] }
 0x593   :  { %v5633_v14 = vpop.xlane.xlu1 %1558  ;;  %v1263_v32 = vsub.f32 %v6647_v15, %v5391_v1  ;;  %v6648_v11 = vld [vmem:[#allocation32_spill] sm:$0xff] }
 0x594   :  { %v2183_v3 = vsel %vm300_vm6, %v5658_v57, -inf }
 0x595   :  { %2500 = vmax.xlane.f32.xlu0 %v2499_v61  ;;  %1623 = vrot.lane.b32.xlu1 %v6556_v24, %s4302_s27  ;;  %v1258_v61 = vsub.f32 %v6639_v44, %v5376_v62 }
 0x597   :  { %v1313_v45 = vpop.permute.xlu1 %1312  ;;  %v1268_v62 = vmul.f32 1.442695, %v1258_v61  ;;  %v1883_v61 = vsub.f32 %v6648_v11, %v5493_v25 }
 0x598   :  { %3770 = vmatprep.subr.bf16.mxu0 %v1313_v45 }
 0x599   :  { %2503 = vmax.xlane.f32.xlu0 %v2502_v28  ;;  %1936 = vrot.lane.b32.xlu1 %v6556_v24, %s4303_s28  ;;  %v6641_v28 = vld [vmem:[#allocation54_spill] sm:$0xff]  ;;  %4002 = vpow2.f32 %v1268_v62  ;;  %v1892_v1 = vmul.f32 1.442695, %v1883_v61 }
 0x59a   :  { %3771 = vmatpush3.bf16.msra.mxu0 %v1313_v45  ;;  %v1261_v45 = vsub.f32 %v6640_v23, %v5350_v52 }
 0x59c   :  { %v1274_v52 = vmul.f32 1.442695, %v1261_v45  ;;  %v6649_v45 = vld [vmem:[#allocation20_spill] sm:$0xff] }
 0x59d   :  { %2506 = vmax.xlane.f32.xlu0 %v2505_v59  ;;  %v6642_v59 = vld [vmem:[#allocation2_spill] sm:$0xff] }
 0x59e   :  { %v1259_v37 = vsub.f32 %v6642_v59, %v6641_v28  ;;  %v1272_v59 = vmul.f32 1.442695, %v1260_v36  ;;  %4004 = vpow2.f32 %v1274_v52 }
 0x5ac   :  { %v2173_v62 = vpop.xlane.xlu0 %2172 }
 0x5b0   :  { %v1935_v61 = vpop.permute.xlu0 %1934 }
 0x5b3   :  { %1627 = vrot.lane.b32.xlu0 %v6582_v42, %s4302_s27 }
 0x5b7   :  { %2247 = vrot.lane.b32.xlu0 %v6573_v55, %s4304_s29 }
 0x5bb   :  { %2560 = vrot.lane.b32.xlu0 %v6573_v55, %s4305_s30  ;;  %v1270_v55 = vmul.f32 1.442695, %v1259_v37  ;;  %v6650_v37 = vld [vmem:[#allocation31_spill] sm:$0xff] }
 0x5bc   :  { %v1882_v50 = vsub.f32 %v6650_v37, %v5497_v60 }
 0x5bd   :  { %v5672_v8 = vpop.f32.mrb[8].mxu0  ;;  %2184 = vmax.xlane.f32.xlu1 %v2183_v3  ;;  %4006 = vpow2.f32 %v1270_v55  ;;  %v1262_v3 = vsub.f32 %v6649_v45, %v5374_v51 }
 0x5be   :  { %6644 = vst [vmem:[#allocation17_spill] sm:$0xff] %v5672_v8  ;;  %v5674_v44 = vpop.f32.mrb[9].mxu0  ;;  %4008 = vpow2.f32 %v1272_v59  ;;  %v1890_v55 = vmul.f32 1.442695, %v1882_v50  ;;  %v6658_v8 = vld [vmem:[#allocation57_spill] sm:$0xff] }
 0x5bf   :  { %6645 = vst [vmem:[#allocation22_spill] sm:$0xff] %v5674_v44  ;;  %v5676_v23 = vpop.f32.mrb[10].mxu0  ;;  %2249 = vrot.lane.b32.xlu0 %v6556_v24, %s4304_s29 }
 0x5c0   :  { %6646 = vst [vmem:[#allocation5_spill] sm:$0xff] %v5676_v23  ;;  %v5680_v28 = vpop.f32.mrb[11].mxu0  ;;  %v1278_v23 = vmul.f32 1.442695, %v1263_v32  ;;  %v4003_v32 = vpop.eup %4002 }
 0x5c1   :  { %v5706_v59 = vpop.eup %4004 }
 0x5c2   :  { %4010 = vpow2.f32 %v1278_v23 }
 0x5c3   :  { %2562 = vrot.lane.b32.xlu0 %v6556_v24, %s4305_s30  ;;  %v1276_v24 = vmul.f32 1.442695, %v1262_v3  ;;  %4012 = vpow2.f32 %v1892_v1 }
 0x5c5   :  { %v5692_v36 = vpop.f32.mrb[12].mxu0  ;;  %4014 = vpow2.f32 %v1276_v24 }
 0x5c6   :  { %6651 = vst [vmem:[#allocation28_spill] sm:$0xff] %v5692_v36  ;;  %v5694_v15 = vpop.f32.mrb[13].mxu0  ;;  %4016 = vpow2.f32 %v1890_v55 }
 0x5c7   :  { %6652 = vst [vmem:[#allocation29_spill] sm:$0xff] %v5694_v15  ;;  %v5696_v52 = vpop.f32.mrb[14].mxu0  ;;  %2564 = vrot.lane.b32.xlu0 %v6586_v30, %s4305_s30  ;;  %v5708_v11 = vpop.eup %4006  ;;  %v656_v15 = vsel %vm300_vm6, %v5415_v5, 0.0  ;;  %v6659_v5 = vld [vmem:[#allocation39_spill] sm:$0xff] }
 0x5c8   :  { %6653 = vst [vmem:[#allocation38_spill] sm:$0xff] %v5696_v52  ;;  %v5700_v25 = vpop.f32.mrb[15].mxu0  ;;  %v5702_v51 = vpop.xlane.xlu1 %1567  ;;  %v1305_v23 = vpack.c.bf16 %v5708_v11, %v4003_v32  ;;  %v6656_v52 = vld [vmem:[#allocation56_spill] sm:$0xff] }
 0x5c9   :  { %6654 = vst [vmem:[#allocation11_spill] sm:$0xff] %v5700_v25  ;;  %v5712_v45 = vpop.eup %4008  ;;  %v653_v36 = vsel %vm300_vm6, %v6656_v52, 0.0  ;;  %v973_v52 = vsel %vm300_vm6, %v5567_v49, 0.0 }
 0x5ca   :  { %v1306_v3 = vpack.c.bf16 %v5706_v59, %v5712_v45 }
 0x5cb   :  { %2566 = vrot.lane.b32.xlu0 %v6582_v42, %s4305_s30 }
 0x5cc   :  { %v1315_v60 = vpop.permute.xlu1 %1314  ;;  %v5719_v37 = vpop.eup %4010 }
 0x5cd   :  { %3772 = vmatprep.subr.bf16.mxu0 %v1315_v60  ;;  %v5721_v50 = vpop.eup %4012 }
 0x5ce   :  { %1938 = vrot.lane.b32.xlu1 %v6586_v30, %s4303_s28  ;;  %3773 = vmatpush3.bf16.msra.mxu0 %v1315_v60 }
 0x5cf   :  { %3798 = vmatprep.subr.bf16.mxu0 %v1935_v61  ;;  %v5723_v1 = vpop.eup %4014 }
 0x5d0   :  { %v4017_v24 = vpop.eup %4016  ;;  %v1307_v55 = vpack.c.bf16 %v5719_v37, %v5723_v1 }
 0x5d1   :  { %3775 = vmatmul.mubr.msk.bf16.vlgmr.msra.gmra.mrb[16].mxu0 %vm300_vm6, %v1305_v23  ;;  %v1930_v60 = vpack.c.bf16 %v5721_v50, %v4017_v24  ;;  %v6655_v23 = vld [vmem:[#allocation43_spill] sm:$0xff] }
 0x5d2   :  { %3778 = vmatprep.mubr.msk.bf16.mxu0 %vm300_vm6, %v1306_v3  ;;  %3799 = vmatpush3.bf16.msra.mxu0 %v1935_v61  ;;  %v2138_v3 = vadd.f32 %v5454_v29, %v6655_v23  ;;  %v967_v29 = vsel %vm300_vm6, %v6658_v8, 0.0  ;;  %v2195_v8 = vsub.f32 %v5463_v2, %v2173_v62 }
 0x5d4   :  { %v2154_v61 = vmul.f32 0.2, %v2138_v3  ;;  %vm2146_vm2 = vcmp.gt.f32.partialorder %v2138_v3, 0.0 }
 0x5d6   :  { %v2162_v25 = vsel %vm2146_vm2, %v2138_v3, %v2154_v61  ;;  %v1286_v61 = vsel %vm300_vm6, %v4003_v32, 0.0 }
 0x5d7   :  { %v5737_v44 = vadd.f32 %v2162_v25, %v4842_v7 }
 0x5d9   :  { %3779 = vmatmul.mubr.msk.bf16.gmra.mrb[20].mxu0 %vm300_vm6, %v1307_v55  ;;  %v6657_v55 = vld [vmem:[#allocation58_spill] sm:$0xff]  ;;  %v2192_v23 = vsel %vm300_vm6, %v5737_v44, -inf }
 0x5da   :  { %3806 = vmatprep.mubr.msk.bf16.mxu0 %vm300_vm6, %v1930_v60  ;;  %v1571_v60 = vsub.f32 %v6657_v55, %v5484_v17  ;;  %v1280_v17 = vsel %vm300_vm6, %v5431_v35, 0.0  ;;  %v2203_v55 = vmul.f32 1.442695, %v2195_v8 }
 0x5e1   :  { %v2486_v49 = vpop.xlane.xlu0 %2485 }
 0x5e2   :  { %v2508_v2 = vsub.f32 %v5491_v9, %v2486_v49 }
 0x5ea   :  { %654 = vadd.xlane.f32.xlu0 %v653_v36  ;;  %v1581_v36 = vmul.f32 1.442695, %v1571_v60 }
 0x5ec   :  { %4018 = vpow2.f32 %v1581_v36  ;;  %v1906_v36 = vsel %vm300_vm6, %v4017_v24, 0.0 }
 0x5ee   :  { %657 = vadd.xlane.f32.xlu0 %v656_v15  ;;  %v1884_v15 = vsub.f32 %v6659_v5, %v5499_v38 }
 0x5f0   :  { %v1894_v25 = vmul.f32 1.442695, %v1884_v15 }
 0x5f2   :  { %968 = vadd.xlane.f32.xlu0 %v967_v29  ;;  %2193 = vmax.xlane.f32.xlu1 %v2192_v23  ;;  %4020 = vpow2.f32 %v1894_v25  ;;  %v1593_v29 = vsel %vm300_vm6, %v5599_v41, 0.0  ;;  %v2516_v41 = vmul.f32 1.442695, %v2508_v2 }
 0x5f3   :  { %4022 = vpow2.f32 %v2203_v55 }
 0x5f6   :  { %974 = vadd.xlane.f32.xlu0 %v973_v52  ;;  %v5757_v38 = vpop.eup %4018 }
 0x5f7   :  { %v1599_v23 = vsel %vm300_vm6, %v5757_v38, 0.0 }
 0x5fa   :  { %1281 = vadd.xlane.f32.xlu0 %v1280_v17 }
 0x5fc   :  { %v5772_v52 = vpop.eup %4020 }
 0x5fd   :  { %v5752_v3 = vpop.xlane.xlu1 %2175  ;;  %v1912_v5 = vsel %vm300_vm6, %v5772_v52, 0.0  ;;  %v5778_v15 = vpop.eup %4022 }
 0x5fe   :  { %1287 = vadd.xlane.f32.xlu0 %v1286_v61  ;;  %v2219_v24 = vsel %vm300_vm6, %v5778_v15, 0.0  ;;  %v1626_v61 = vpop.permute.xlu0 %1625 }
 0x601   :  { %v2179_v60 = vpop.xlane.xlu1 %2178 }
 0x602   :  { %v2197_v35 = vsub.f32 %v5543_v53, %v2179_v60  ;;  %1594 = vadd.xlane.f32.xlu0 %v1593_v29 }
 0x603   :  { %1940 = vrot.lane.b32.xlu1 %v6582_v42, %s4303_s28 }
 0x604   :  { %v2207_v62 = vmul.f32 1.442695, %v2197_v35 }
 0x605   :  { %v5763_v32 = vpop.xlane.xlu1 %2181 }
 0x606   :  { %1600 = vadd.xlane.f32.xlu0 %v1599_v23  ;;  %4024 = vpow2.f32 %v2207_v62  ;;  %v6660_v62 = vld [vmem:[#allocation59_spill] sm:$0xff] }
 0x607   :  { %2251 = vrot.lane.b32.xlu1 %v6586_v30, %s4304_s29  ;;  %4026 = vpow2.f32 %v2516_v41  ;;  %v1572_v23 = vsub.f32 %v6660_v62, %v5488_v54  ;;  %v1573_v41 = vsub.f32 %v5448_v16, %v5633_v14  ;;  %v1576_v16 = vsub.f32 %v5472_v27, %v5702_v51 }
 0x608   :  { %v2196_v14 = vsub.f32 %v5528_v46, %v5752_v3  ;;  %v979_v62 = vsel %vm300_vm6, %v5571_v19, 0.0  ;;  %v1886_v46 = vsub.f32 %v5368_v20, %v5519_v33  ;;  %v6662_v3 = vld [vmem:[#allocation55_spill] sm:$0xff]  ;;  %v1888_v20 = vsub.f32 %v5396_v0, %v5538_v22 }
 0x609   :  { %v5769_v53 = vpop.xlane.xlu1 %2488  ;;  %v650_v19 = vsel %vm300_vm6, %v6662_v3, 0.0  ;;  %v1298_v22 = vsel %vm300_vm6, %v5723_v1, 0.0  ;;  %v976_v1 = vsel %vm300_vm6, %v5558_v58, 0.0  ;;  %v6667_v3 = vld [vmem:[#allocation64_spill] sm:$0xff] }
 0x60a   :  { %1907 = vadd.xlane.f32.xlu0 %v1906_v36  ;;  %v1902_v0 = vmul.f32 1.442695, %v1888_v20  ;;  %v1283_v58 = vsel %vm300_vm6, %v6667_v3, 0.0  ;;  %v2198_v20 = vsub.f32 %v5554_v10, %v5763_v32 }
 0x60b   :  { %2253 = vrot.lane.b32.xlu1 %v6582_v42, %s4304_s29 }
 0x60d   :  { %v2492_v9 = vpop.xlane.xlu1 %2491 }
 0x60e   :  { %v2510_v30 = vsub.f32 %v5580_v43, %v2492_v9  ;;  %1913 = vadd.xlane.f32.xlu0 %v1912_v5  ;;  %v6661_v5 = vld [vmem:[#allocation33_spill] sm:$0xff] }
 0x610   :  { %v2520_v17 = vmul.f32 1.442695, %v2510_v30  ;;  %v5785_v8 = vpop.eup %4024  ;;  %v1574_v30 = vsub.f32 %v6661_v5, %v5503_v6  ;;  %v668_v6 = vsel %vm300_vm6, %v5425_v26, 0.0 }
 0x611   :  { %v5781_v25 = vpop.xlane.xlu1 %2494  ;;  %v2225_v55 = vsel %vm300_vm6, %v5785_v8, 0.0  ;;  %v5789_v49 = vpop.eup %4026 }
 0x612   :  { %4028 = vpow2.f32 %v2520_v17  ;;  %2220 = vadd.xlane.f32.xlu0 %v2219_v24  ;;  %v2532_v29 = vsel %vm300_vm6, %v5789_v49, 0.0  ;;  %v1583_v17 = vmul.f32 1.442695, %v1572_v23  ;;  %v1585_v24 = vmul.f32 1.442695, %v1573_v41 }
 0x613   :  { %v1587_v54 = vmul.f32 1.442695, %v1574_v30  ;;  %v1898_v41 = vmul.f32 1.442695, %v1886_v46  ;;  %v6663_v30 = vld [vmem:[#allocation62_spill] sm:$0xff] }
 0x614   :  { %4030 = vpow2.f32 %v1583_v17  ;;  %v659_v17 = vsel %vm300_vm6, %v6663_v30, 0.0  ;;  %v2209_v30 = vmul.f32 1.442695, %v2198_v20  ;;  %v6668_v20 = vld [vmem:[#allocation63_spill] sm:$0xff] }
 0x615   :  { %v1624_v42 = vpop.permute.xlu1 %1623  ;;  %4032 = vpow2.f32 %v1585_v24 }
 0x616   :  { %v5791_v60 = vpop.xlane.xlu0 %2187  ;;  %2226 = vadd.xlane.f32.xlu0 %v2225_v55  ;;  %3784 = vmatprep.subr.bf16.mxu1 %v1624_v42  ;;  %v1575_v55 = vsub.f32 %v5355_v21, %v5507_v18  ;;  %4034 = vpow2.f32 %v1587_v54  ;;  %v985_v18 = vsel %vm300_vm6, %v5586_v48, 0.0 }
 0x617   :  { %3785 = vmatpush3.bf16.msra.mxu1 %v1624_v42 }
 0x618   :  { %3786 = vmatprep.subr.bf16.mxu1 %v1626_v61  ;;  %v1589_v27 = vmul.f32 1.442695, %v1575_v55 }
 0x619   :  { %v1937_v43 = vpop.permute.xlu1 %1936 }
 0x61a   :  { %v5795_v35 = vpop.xlane.xlu0 %2190  ;;  %2533 = vadd.xlane.f32.xlu0 %v2532_v29  ;;  %3800 = vmatprep.subr.bf16.mxu0 %v1937_v43  ;;  %v2205_v29 = vmul.f32 1.442695, %v2196_v14 }
 0x61b   :  { %3787 = vmatpush3.bf16.msra.mxu1 %v1626_v61  ;;  %3801 = vmatpush3.bf16.msra.mxu0 %v1937_v43  ;;  %v662_v61 = vsel %vm300_vm6, %v5417_v13, 0.0  ;;  %v1591_v13 = vmul.f32 1.442695, %v1576_v16 }
 0x61c   :  { %v5797_v2 = vpop.eup %4028 }
 0x61d   :  { %v2538_v36 = vsel %vm300_vm6, %v5797_v2, 0.0  ;;  %4036 = vpow2.f32 %v1591_v13 }
 0x61e   :  { %v5805_v9 = vpop.xlane.xlu0 %2497  ;;  %2539 = vadd.xlane.f32.xlu0 %v2538_v36  ;;  %4038 = vpow2.f32 %v2205_v29  ;;  %v5831_v21 = vpop.eup %4030  ;;  %v1292_v36 = vsel %vm300_vm6, %v5712_v45, 0.0 }
 0x61f   :  { %4040 = vpow2.f32 %v1589_v27  ;;  %v4033_v23 = vpop.eup %4032  ;;  %v1618_v48 = vpack.c.bf16 %v5831_v21, %v5757_v38  ;;  %v6666_v27 = vld [vmem:[#allocation60_spill] sm:$0xff] }
 0x620   :  { %v5837_v33 = vpop.eup %4034  ;;  %4042 = vpow2.f32 %v1898_v41  ;;  %v1289_v41 = vsel %vm300_vm6, %v5708_v11, 0.0  ;;  %v2201_v11 = vsub.f32 %v5617_v12, %v5795_v35  ;;  %v1909_v12 = vsel %vm300_vm6, %v5721_v50, 0.0 }
 0x621   :  { %v1619_v24 = vpack.c.bf16 %v5837_v33, %v4033_v23  ;;  %4044 = vpow2.f32 %v1902_v0  ;;  %v2511_v0 = vsub.f32 %v5591_v47, %v5781_v25 }
 0x622   :  { %v5811_v42 = vpop.xlane.xlu0 %2500  ;;  %663 = vadd.xlane.f32.xlu0 %v662_v61  ;;  %v6664_v61 = vld [vmem:[#allocation30_spill] sm:$0xff] }
 0x623   :  { %v970_v54 = vsel %vm300_vm6, %v6664_v61, 0.0 }
 0x626   :  { %v5821_v43 = vpop.xlane.xlu0 %2503  ;;  %669 = vadd.xlane.f32.xlu0 %v668_v6  ;;  %v1605_v6 = vsel %vm300_vm6, %v4033_v23, 0.0 }
 0x627   :  { %v5850_v45 = vpop.eup %4036 }
 0x628   :  { %v5856_v16 = vpop.eup %4038 }
 0x629   :  { %v4041_v14 = vpop.eup %4040  ;;  %v2243_v29 = vpack.c.bf16 %v5856_v16, %v5778_v15 }
 0x62a   :  { %v5825_v51 = vpop.xlane.xlu0 %2506  ;;  %980 = vadd.xlane.f32.xlu0 %v979_v62  ;;  %v1620_v55 = vpack.c.bf16 %v5850_v45, %v4041_v14  ;;  %v6665_v62 = vld [vmem:[#allocation40_spill] sm:$0xff] }
 0x62b   :  { %v1885_v46 = vsub.f32 %v6666_v27, %v6665_v62 }
 0x62d   :  { %v1896_v15 = vmul.f32 1.442695, %v1885_v46 }
 0x62e   :  { %v1628_v26 = vpop.permute.xlu0 %1627  ;;  %986 = vadd.xlane.f32.xlu0 %v985_v18  ;;  %v1611_v18 = vsel %vm300_vm6, %v4041_v14, 0.0  ;;  %v2222_v14 = vsel %vm300_vm6, %v5856_v16, 0.0 }
 0x62f   :  { %651 = vadd.xlane.f32.xlu1 %v650_v19  ;;  %3788 = vmatprep.subr.bf16.mxu1 %v1628_v26  ;;  %4046 = vpow2.f32 %v1896_v15 }
 0x630   :  { %3789 = vmatpush3.bf16.msra.mxu1 %v1628_v26  ;;  %v5869_v26 = vpop.eup %4042  ;;  %4048 = vpow2.f32 %v2209_v30 }
 0x631   :  { %v1918_v19 = vsel %vm300_vm6, %v5869_v26, 0.0  ;;  %v5875_v23 = vpop.eup %4044 }
 0x632   :  { %v2248_v5 = vpop.permute.xlu0 %2247  ;;  %1293 = vadd.xlane.f32.xlu0 %v1292_v36  ;;  %v1596_v36 = vsel %vm300_vm6, %v5593_v63, 0.0  ;;  %v2215_v63 = vmul.f32 1.442695, %v2201_v11  ;;  %v982_v11 = vsel %vm300_vm6, %v5565_v4, 0.0  ;;  %v6675_v4 = vld [vmem:[#allocation6_spill] sm:$0xff] }
 0x633   :  { %660 = vadd.xlane.f32.xlu1 %v659_v17  ;;  %3791 = vmatmul.mubr.msk.bf16.vlgmr.msra.gmra.mrb[16].mxu1 %vm300_vm6, %v1618_v48  ;;  %v1924_v48 = vsel %vm300_vm6, %v5875_v23, 0.0 }
 0x634   :  { %3814 = vmatprep.subr.bf16.mxu1 %v2248_v5  ;;  %3794 = vmatprep.mubr.msk.bf16.mxu1 %vm300_vm6, %v1619_v24  ;;  %v1602_v24 = vsel %vm300_vm6, %v5831_v21, 0.0  ;;  %v2522_v21 = vmul.f32 1.442695, %v2511_v0 }
 0x635   :  { %3815 = vmatpush3.bf16.msra.mxu1 %v2248_v5  ;;  %v2509_v5 = vsub.f32 %v5563_v31, %v5769_v53  ;;  %v2512_v31 = vsub.f32 %v5624_v39, %v5805_v9  ;;  %v2514_v39 = vsub.f32 %v5638_v40, %v5821_v43 }
 0x636   :  { %v5852_v38 = vpop.permute.xlu0 %2560  ;;  %1299 = vadd.xlane.f32.xlu0 %v1298_v22 }
 0x637   :  { %971 = vadd.xlane.f32.xlu1 %v970_v54  ;;  %v2518_v32 = vmul.f32 1.442695, %v2509_v5  ;;  %v2524_v25 = vmul.f32 1.442695, %v2512_v31  ;;  %v2528_v54 = vmul.f32 1.442695, %v2514_v39 }
 0x638   :  { %v6669_v5 = vld [vmem:[#allocation65_spill] sm:$0xff]  ;;  %v6673_v31 = vld [vmem:[#allocation19_spill] sm:$0xff]  ;;  %v1301_v39 = vsel %vm300_vm6, %v5719_v37, 0.0 }
 0x639   :  { %v5898_v35 = vpop.eup %4046  ;;  %v671_v30 = vsel %vm300_vm6, %v6669_v5, 0.0 }
 0x63a   :  { %v2250_v13 = vpop.permute.xlu0 %2249  ;;  %1606 = vadd.xlane.f32.xlu0 %v1605_v6  ;;  %v1915_v61 = vsel %vm300_vm6, %v5898_v35, 0.0  ;;  %v5914_v6 = vpop.eup %4048 }
 0x63b   :  { %977 = vadd.xlane.f32.xlu1 %v976_v1  ;;  %3795 = vmatmul.mubr.msk.bf16.gmra.mrb[20].mxu1 %vm300_vm6, %v1620_v55  ;;  %v2228_v62 = vsel %vm300_vm6, %v5914_v6, 0.0 }
 0x63c   :  { %3816 = vmatprep.subr.bf16.mxu1 %v2250_v13  ;;  %3822 = vmatprep.mubr.msk.bf16.mxu1 %vm300_vm6, %v2243_v29 }
 0x63d   :  { %3817 = vmatpush3.bf16.msra.mxu1 %v2250_v13 }
 0x63e   :  { %1612 = vadd.xlane.f32.xlu0 %v1611_v18 }
 0x63f   :  { %1284 = vadd.xlane.f32.xlu1 %v1283_v58 }
 0x642   :  { %1919 = vadd.xlane.f32.xlu0 %v1918_v19 }
 0x643   :  { %1290 = vadd.xlane.f32.xlu1 %v1289_v41 }
 0x646   :  { %1925 = vadd.xlane.f32.xlu0 %v1924_v48  ;;  %v665_v48 = vsel %vm300_vm6, %v6668_v20, 0.0 }
 0x647   :  { %1597 = vadd.xlane.f32.xlu1 %v1596_v36 }
 0x64a   :  { %v2185_v17 = vpop.xlane.xlu1 %2184 }
 0x64b   :  { %v2199_v10 = vsub.f32 %v5658_v57, %v2185_v17  ;;  %1603 = vadd.xlane.f32.xlu1 %v1602_v24  ;;  %v6670_v17 = vld [vmem:[#allocation41_spill] sm:$0xff]  ;;  %v6671_v24 = vld [vmem:[#allocation34_spill] sm:$0xff] }
 0x64d   :  { %v2211_v53 = vmul.f32 1.442695, %v2199_v10  ;;  %v1887_v10 = vsub.f32 %v6671_v24, %v6670_v17 }
 0x64e   :  { %v1939_v22 = vpop.permute.xlu1 %1938 }
 0x64f   :  { %4050 = vpow2.f32 %v2211_v53  ;;  %1910 = vadd.xlane.f32.xlu1 %v1909_v12  ;;  %v5900_v57 = vpop.f32.mrb[8].mxu1  ;;  %3802 = vmatprep.subr.bf16.mxu0 %v1939_v22  ;;  %v6674_v53 = vld [vmem:[#allocation61_spill] sm:$0xff]  ;;  %v1295_v12 = vsel %vm300_vm6, %v5706_v59, 0.0  ;;  %v2513_v59 = vsub.f32 %v5631_v34, %v5811_v42 }
 0x650   :  { %4052 = vpow2.f32 %v2518_v32  ;;  %v5902_v47 = vpop.f32.mrb[9].mxu1  ;;  %3803 = vmatpush3.bf16.msra.mxu0 %v1939_v22  ;;  %v6672_v32 = vld [vmem:[#allocation44_spill] sm:$0xff]  ;;  %v1889_v22 = vsub.f32 %v6674_v53, %v6673_v31 }
 0x651   :  { %4054 = vpow2.f32 %v2215_v63  ;;  %v5906_v9 = vpop.f32.mrb[10].mxu1  ;;  %v988_v0 = vsel %vm300_vm6, %v6672_v32, 0.0  ;;  %v1900_v63 = vmul.f32 1.442695, %v1887_v10 }
 0x652   :  { %v5908_v50 = vpop.f32.mrb[11].mxu1  ;;  %4056 = vpow2.f32 %v2522_v21  ;;  %v1904_v21 = vmul.f32 1.442695, %v1889_v22 }
 0x653   :  { %1916 = vadd.xlane.f32.xlu1 %v1915_v61  ;;  %4058 = vpow2.f32 %v2524_v25  ;;  %v2200_v25 = vsub.f32 %v6675_v4, %v5791_v60  ;;  %v1614_v60 = vsel %vm300_vm6, %v5850_v45, 0.0 }
 0x654   :  { %4060 = vpow2.f32 %v2528_v54  ;;  %v1608_v54 = vsel %vm300_vm6, %v5837_v33, 0.0  ;;  %v2515_v33 = vsub.f32 %v5645_v56, %v5825_v51 }
 0x655   :  { %4062 = vpow2.f32 %v1900_v63  ;;  %v2213_v61 = vmul.f32 1.442695, %v2200_v25 }
 0x656   :  { %4064 = vpow2.f32 %v1904_v21  ;;  %v2530_v56 = vmul.f32 1.442695, %v2515_v33 }
 0x657   :  { %2223 = vadd.xlane.f32.xlu1 %v2222_v14  ;;  %v5916_v55 = vpop.f32.mrb[12].mxu1  ;;  %4066 = vpow2.f32 %v2213_v61 }
 0x658   :  { %v5918_v40 = vpop.f32.mrb[13].mxu1 }
 0x659   :  { %v5920_v43 = vpop.eup %4050  ;;  %v5922_v13 = vpop.f32.mrb[14].mxu1 }
 0x65a   :  { %v5924_v1 = vpop.eup %4052  ;;  %v5926_v29 = vpop.f32.mrb[15].mxu1  ;;  %v2231_v16 = vsel %vm300_vm6, %v5920_v43, 0.0 }
 0x65b   :  { %v5932_v27 = vpop.eup %4054  ;;  %2229 = vadd.xlane.f32.xlu1 %v2228_v62  ;;  %2232 = vadd.xlane.f32.xlu0 %v2231_v16  ;;  %v2535_v18 = vsel %vm300_vm6, %v5924_v1, 0.0  ;;  %v2563_v16 = vpop.permute.xlu0 %2562 }
 0x65c   :  { %v5934_v46 = vpop.eup %4056  ;;  %v2237_v3 = vsel %vm300_vm6, %v5932_v27, 0.0 }
 0x65d   :  { %v5940_v58 = vpop.eup %4058  ;;  %v2541_v15 = vsel %vm300_vm6, %v5934_v46, 0.0  ;;  %v2557_v17 = vpack.c.bf16 %v5934_v46, %v5797_v2 }
 0x65e   :  { %v2544_v19 = vsel %vm300_vm6, %v5940_v58, 0.0  ;;  %v5946_v41 = vpop.eup %4060 }
 0x65f   :  { %2536 = vadd.xlane.f32.xlu1 %v2535_v18  ;;  %2238 = vadd.xlane.f32.xlu0 %v2237_v3  ;;  %v2550_v36 = vsel %vm300_vm6, %v5946_v41, 0.0  ;;  %v4063_v37 = vpop.eup %4062  ;;  %v2565_v20 = vpop.permute.xlu0 %2564 }
 0x660   :  { %v1921_v34 = vsel %vm300_vm6, %v4063_v37, 0.0  ;;  %v4065_v42 = vpop.eup %4064 }
 0x661   :  { %v4067_v51 = vpop.eup %4066  ;;  %v1933_v5 = vpack.c.bf16 %v4065_v42, %v5875_v23 }
 0x663   :  { %2542 = vadd.xlane.f32.xlu1 %v2541_v15  ;;  %2545 = vadd.xlane.f32.xlu0 %v2544_v19  ;;  %v2526_v15 = vmul.f32 1.442695, %v2513_v59  ;;  %v1932_v19 = vpack.c.bf16 %v4063_v37, %v5869_v26  ;;  %v2244_v26 = vpack.c.bf16 %v5914_v6, %v5785_v8 }
 0x667   :  { %666 = vadd.xlane.f32.xlu1 %v665_v48  ;;  %2551 = vadd.xlane.f32.xlu0 %v2550_v36  ;;  %v2567_v48 = vpop.permute.xlu0 %2566  ;;  %v2234_v36 = vsel %vm300_vm6, %v4067_v51, 0.0 }
 0x66b   :  { %672 = vadd.xlane.f32.xlu1 %v671_v30 }
 0x66f   :  { %983 = vadd.xlane.f32.xlu1 %v982_v11  ;;  %v2556_v11 = vpack.c.bf16 %v5924_v1, %v5789_v49 }
 0x673   :  { %989 = vadd.xlane.f32.xlu1 %v988_v0 }
 0x677   :  { %1296 = vadd.xlane.f32.xlu1 %v1295_v12  ;;  %v655_v8 = vpop.xlane.xlu0 %654 }
 0x67b   :  { %1302 = vadd.xlane.f32.xlu1 %v1301_v39  ;;  %v658_v24 = vpop.xlane.xlu0 %657  ;;  %v6676_v39 = vld [vmem:[#allocation17_spill] sm:$0xff] }
 0x67f   :  { %1609 = vadd.xlane.f32.xlu1 %v1608_v54  ;;  %v2194_v14 = vpop.xlane.xlu1 %2193  ;;  %v969_v0 = vpop.xlane.xlu0 %968 }
 0x680   :  { %v2202_v62 = vsub.f32 %v5737_v44, %v2194_v14  ;;  %v1931_v44 = vpack.c.bf16 %v5898_v35, %v5772_v52  ;;  %v1927_v52 = vsel %vm300_vm6, %v4065_v42, 0.0 }
 0x682   :  { %v2217_v18 = vmul.f32 1.442695, %v2202_v62 }
 0x683   :  { %1615 = vadd.xlane.f32.xlu1 %v1614_v60  ;;  %v1941_v3 = vpop.permute.xlu1 %1940  ;;  %v975_v2 = vpop.xlane.xlu0 %974 }
 0x684   :  { %3804 = vmatprep.subr.bf16.mxu0 %v1941_v3  ;;  %4068 = vpow2.f32 %v2217_v18 }
 0x685   :  { %3805 = vmatpush3.bf16.msra.mxu0 %v1941_v3  ;;  %4070 = vpow2.f32 %v2526_v15 }
 0x686   :  { %3830 = vmatprep.subr.bf16.mxu0 %v5852_v38  ;;  %4072 = vpow2.f32 %v2530_v56 }
 0x687   :  { %1922 = vadd.xlane.f32.xlu1 %v1921_v34  ;;  %v2252_v45 = vpop.permute.xlu1 %2251  ;;  %4074 = vrcp.f32 %v655_v8  ;;  %v1282_v22 = vpop.xlane.xlu0 %1281 }
 0x688   :  { %3807 = vmatmul.mubr.msk.bf16.vlgmr.msra.gmra.mrb[24].mxu0 %vm300_vm6, %v1931_v44  ;;  %3818 = vmatprep.subr.bf16.mxu1 %v2252_v45  ;;  %4076 = vrcp.f32 %v658_v24 }
 0x689   :  { %3810 = vmatprep.mubr.msk.bf16.mxu0 %vm300_vm6, %v1932_v19  ;;  %3819 = vmatpush3.bf16.msra.mxu1 %v2252_v45  ;;  %4078 = vrcp.f32 %v969_v0 }
 0x68a   :  { %3831 = vmatpush3.bf16.msra.mxu0 %v5852_v38  ;;  %v2245_v38 = vpack.c.bf16 %v4067_v51, %v5920_v43  ;;  %4080 = vrcp.f32 %v975_v2 }
 0x68b   :  { %3832 = vmatprep.subr.bf16.mxu0 %v2563_v16  ;;  %1928 = vadd.xlane.f32.xlu1 %v1927_v52  ;;  %v2254_v35 = vpop.permute.xlu1 %2253  ;;  %4082 = vrcp.f32 %v1282_v22  ;;  %v1288_v62 = vpop.xlane.xlu0 %1287 }
 0x68c   :  { %3820 = vmatprep.subr.bf16.mxu1 %v2254_v35  ;;  %4084 = vrcp.f32 %v1288_v62 }
 0x68d   :  { %3821 = vmatpush3.bf16.msra.mxu1 %v2254_v35 }
 0x68e   :  { %3833 = vmatpush3.bf16.msra.mxu0 %v2563_v16  ;;  %v4069_v30 = vpop.eup %4068 }
 0x68f   :  { %3834 = vmatprep.subr.bf16.mxu0 %v2565_v20  ;;  %2235 = vadd.xlane.f32.xlu1 %v2234_v36  ;;  %v2240_v23 = vsel %vm300_vm6, %v4069_v30, 0.0  ;;  %v4071_v6 = vpop.eup %4070  ;;  %v2246_v49 = vpack.c.bf16 %v4069_v30, %v5932_v27 }
 0x690   :  { %3811 = vmatmul.mubr.msk.bf16.gmra.mrb[28].mxu0 %vm300_vm6, %v1933_v5  ;;  %3823 = vmatmul.mubr.msk.bf16.vlgmr.msra.gmra.mrb[24].mxu1 %vm300_vm6, %v2244_v26  ;;  %v2547_v43 = vsel %vm300_vm6, %v4071_v6, 0.0  ;;  %v4073_v1 = vpop.eup %4072  ;;  %v2558_v10 = vpack.c.bf16 %v4071_v6, %v5940_v58 }
 0x691   :  { %3826 = vmatprep.mubr.msk.bf16.mxu1 %vm300_vm6, %v2245_v38  ;;  %3838 = vmatprep.mubr.msk.bf16.mxu0 %vm300_vm6, %v2556_v11  ;;  %v2553_v32 = vsel %vm300_vm6, %v4073_v1, 0.0  ;;  %v2559_v27 = vpack.c.bf16 %v4073_v1, %v5946_v41  ;;  %v4075_v58 = vpop.eup %4074  ;;  %v1595_v11 = vpop.xlane.xlu0 %1594 }
 0x692   :  { %3835 = vmatpush3.bf16.msra.mxu0 %v2565_v20  ;;  %v780_v12 = vmul.f32 %v4075_v58, %v5680_v28  ;;  %v4077_v21 = vpop.eup %4076  ;;  %v6678_v20 = vld [vmem:[#allocation5_spill] sm:$0xff] }
 0x693   :  { %3836 = vmatprep.subr.bf16.mxu0 %v2567_v48  ;;  %2241 = vadd.xlane.f32.xlu1 %v2240_v23  ;;  %v781_v61 = vmul.f32 %v4077_v21, %v6676_v39  ;;  %v4079_v54 = vpop.eup %4078 }
 0x694   :  { %v1092_v28 = vmul.f32 %v4079_v54, %v5902_v47  ;;  %v4081_v59 = vpop.eup %4080 }
 0x695   :  { %v1094_v16 = vmul.f32 %v4081_v59, %v5900_v57  ;;  %v4083_v18 = vpop.eup %4082  ;;  %v6677_v57 = vld [vmem:[#allocation22_spill] sm:$0xff] }
 0x696   :  { %3837 = vmatpush3.bf16.msra.mxu0 %v2567_v48  ;;  %v4085_v3 = vpop.eup %4084 }
 0x697   :  { %2548 = vadd.xlane.f32.xlu1 %v2547_v43 }
 0x698   :  { %3827 = vmatmul.mubr.msk.bf16.gmra.mrb[28].mxu1 %vm300_vm6, %v2246_v49 }
 0x699   :  { %3839 = vmatmul.mubr.msk.bf16.vlgmr.msra.gmra.mrb[32].mxu0 %vm300_vm6, %v2557_v17 }
 0x69a   :  { %3842 = vmatprep.mubr.msk.bf16.mxu0 %vm300_vm6, %v2558_v10 }
 0x69b   :  { %2554 = vadd.xlane.f32.xlu1 %v2553_v32 }
 0x6a1   :  { %3843 = vmatmul.mubr.msk.bf16.gmra.mrb[36].mxu0 %vm300_vm6, %v2559_v27 }
 0x6a4   :  { %v3776_v46 = vpop.f32.mrb[16].mxu0 }
 0x6a5   :  { %v1366_v63 = vpop.f32.mrb[17].mxu0  ;;  %v1407_v15 = vmul.f32 %v4085_v3, %v3776_v46 }
 0x6a6   :  { %v3777_v31 = vpop.f32.mrb[18].mxu0  ;;  %v1405_v60 = vmul.f32 %v4083_v18, %v1366_v63 }
 0x6a7   :  { %v1369_v53 = vpop.f32.mrb[19].mxu0 }
 0x6ac   :  { %v6010_v4 = vpop.f32.mrb[20].mxu0  ;;  %2675 = vrot.lane.b32.xlu1 %v780_v12, %s4306_s2 }
 0x6ad   :  { %v6013_v41 = vpop.f32.mrb[21].mxu0 }
 0x6ae   :  { %v6015_v25 = vpop.f32.mrb[22].mxu0 }
 0x6af   :  { %v6018_v14 = vpop.f32.mrb[23].mxu0 }
 0x6b0   :  { %2677 = vrot.lane.b32.xlu1 %v781_v61, %s4306_s2 }
 0x6b4   :  { %2705 = vrot.lane.b32.xlu1 %v1092_v28, %s4307_s7 }
 0x6b8   :  { %2709 = vrot.lane.b32.xlu1 %v1094_v16, %s4307_s7 }
 0x6bc   :  { %v652_v37 = vpop.xlane.xlu1 %651  ;;  %2737 = vrot.lane.b32.xlu1 %v1405_v60, %s4308_s8 }
 0x6bd   :  { %4086 = vrcp.f32 %v652_v37 }
 0x6c0   :  { %v661_v33 = vpop.xlane.xlu1 %660  ;;  %2741 = vrot.lane.b32.xlu1 %v1407_v15, %s4308_s8 }
 0x6c1   :  { %4088 = vrcp.f32 %v661_v33 }
 0x6c4   :  { %v972_v47 = vpop.xlane.xlu1 %971 }
 0x6c5   :  { %4090 = vrcp.f32 %v972_v47 }
 0x6c7   :  { %v4087_v44 = vpop.eup %4086 }
 0x6c8   :  { %v978_v34 = vpop.xlane.xlu1 %977  ;;  %v779_v42 = vmul.f32 %v4087_v44, %v6677_v57 }
 0x6c9   :  { %4092 = vrcp.f32 %v978_v34 }
 0x6ca   :  { %2673 = vrot.lane.b32.xlu0 %v779_v42, %s4306_s2 }
 0x6cb   :  { %v4089_v45 = vpop.eup %4088 }
 0x6cc   :  { %v1285_v19 = vpop.xlane.xlu1 %1284  ;;  %v782_v56 = vmul.f32 %v4089_v45, %v6678_v20 }
 0x6cd   :  { %4094 = vrcp.f32 %v1285_v19 }
 0x6ce   :  { %2679 = vrot.lane.b32.xlu0 %v782_v56, %s4306_s2 }
 0x6cf   :  { %v4091_v52 = vpop.eup %4090 }
 0x6d0   :  { %v1291_v51 = vpop.xlane.xlu1 %1290  ;;  %v1093_v35 = vmul.f32 %v4091_v52, %v5908_v50  ;;  %v1601_v50 = vpop.xlane.xlu0 %1600 }
 0x6d1   :  { %4096 = vrcp.f32 %v1291_v51 }
 0x6d2   :  { %2707 = vrot.lane.b32.xlu0 %v1093_v35, %s4307_s7  ;;  %4098 = vrcp.f32 %v1595_v11 }
 0x6d3   :  { %v4093_v26 = vpop.eup %4092 }
 0x6d4   :  { %v1095_v48 = vmul.f32 %v4093_v26, %v5906_v9  ;;  %v1598_v8 = vpop.xlane.xlu1 %1597 }
 0x6d5   :  { %4100 = vrcp.f32 %v1598_v8 }
 0x6d6   :  { %2711 = vrot.lane.b32.xlu0 %v1095_v48, %s4307_s7  ;;  %4102 = vrcp.f32 %v1601_v50 }
 0x6d7   :  { %v4095_v36 = vpop.eup %4094 }
 0x6d8   :  { %v1406_v5 = vmul.f32 %v4095_v36, %v1369_v53  ;;  %v1604_v23 = vpop.xlane.xlu1 %1603  ;;  %v1908_v53 = vpop.xlane.xlu0 %1907 }
 0x6d9   :  { %4104 = vrcp.f32 %v1604_v23 }
 0x6da   :  { %2739 = vrot.lane.b32.xlu0 %v1406_v5, %s4308_s8  ;;  %4106 = vrcp.f32 %v1908_v53 }
 0x6db   :  { %v4097_v30 = vpop.eup %4096 }
 0x6dc   :  { %v1408_v38 = vmul.f32 %v4097_v30, %v3777_v31  ;;  %v4099_v9 = vpop.eup %4098  ;;  %v1911_v22 = vpop.xlane.xlu1 %1910 }
 0x6dd   :  { %v1914_v12 = vpop.xlane.xlu0 %1913  ;;  %4108 = vrcp.f32 %v1911_v22 }
 0x6de   :  { %2743 = vrot.lane.b32.xlu0 %v1408_v38, %s4308_s8  ;;  %4110 = vrcp.f32 %v1914_v12 }
 0x6df   :  { %v4101_v17 = vpop.eup %4100 }
 0x6e0   :  { %v4103_v32 = vpop.eup %4102  ;;  %v1917_v21 = vpop.xlane.xlu1 %1916 }
 0x6e1   :  { %v2221_v39 = vpop.xlane.xlu0 %2220  ;;  %4112 = vrcp.f32 %v1917_v21 }
 0x6e2   :  { %4114 = vrcp.f32 %v2221_v39 }
 0x6e3   :  { %v4105_v27 = vpop.eup %4104 }
 0x6e4   :  { %v2224_v61 = vpop.xlane.xlu1 %2223  ;;  %v4107_v57 = vpop.eup %4106 }
 0x6e5   :  { %v2227_v54 = vpop.xlane.xlu0 %2226  ;;  %4116 = vrcp.f32 %v2224_v61 }
 0x6e6   :  { %4118 = vrcp.f32 %v2227_v54 }
 0x6e7   :  { %v4109_v56 = vpop.eup %4108 }
 0x6e8   :  { %v2230_v62 = vpop.xlane.xlu1 %2229  ;;  %v4111_v35 = vpop.eup %4110 }
 0x6e9   :  { %v2534_v28 = vpop.xlane.xlu0 %2533  ;;  %4120 = vrcp.f32 %v2230_v62 }
 0x6ea   :  { %4122 = vrcp.f32 %v2534_v28 }
 0x6eb   :  { %v4113_v48 = vpop.eup %4112 }
 0x6ec   :  { %v2537_v59 = vpop.xlane.xlu1 %2536  ;;  %v4115_v8 = vpop.eup %4114 }
 0x6ed   :  { %v2540_v16 = vpop.xlane.xlu0 %2539  ;;  %4124 = vrcp.f32 %v2537_v59 }
 0x6ee   :  { %4126 = vrcp.f32 %v2540_v16 }
 0x6f0   :  { %v2543_v18 = vpop.xlane.xlu1 %2542 }
 0x6f1   :  { %v664_v60 = vpop.xlane.xlu0 %663 }
 0x6f2   :  { %4128 = vrcp.f32 %v664_v60 }
 0x6f3   :  { %4130 = vrcp.f32 %v2543_v18 }
 0x6f4   :  { %v667_v37 = vpop.xlane.xlu1 %666 }
 0x6f5   :  { %v6049_v3 = vpop.xlane.xlu0 %669  ;;  %4132 = vrcp.f32 %v667_v37 }
 0x6f6   :  { %4134 = vrcp.f32 %v6049_v3 }
 0x6f8   :  { %v6051_v15 = vpop.xlane.xlu1 %672 }
 0x6f9   :  { %v6053_v33 = vpop.xlane.xlu0 %980  ;;  %4136 = vrcp.f32 %v6051_v15 }
 0x6fa   :  { %4138 = vrcp.f32 %v6053_v33 }
 0x6fc   :  { %v6055_v47 = vpop.xlane.xlu1 %983 }
 0x6fd   :  { %v6057_v44 = vpop.xlane.xlu0 %986  ;;  %4140 = vrcp.f32 %v6055_v47 }
 0x6fe   :  { %4142 = vrcp.f32 %v6057_v44  ;;  %v3942_v44 = vld [vmem:[%s6394_s4] sm:$0xff]  }
 0x6ff   :  { %3846 = vmatprep.subr.bf16.mxu1 %v3942_v44 }
 0x700   :  { %v6059_v42 = vpop.xlane.xlu1 %989  ;;  %3847 = vmatpush3.bf16.msra.mxu1 %v3942_v44 }
 0x701   :  { %v6063_v36 = vpop.xlane.xlu0 %1293  ;;  %4144 = vrcp.f32 %v6059_v42 }
 0x702   :  { %4146 = vrcp.f32 %v6063_v36 }
 0x704   :  { %v6065_v5 = vpop.xlane.xlu1 %1296 }
 0x706   :  { %v3792_v6 = vpop.f32.mrb[16].mxu1 }
 0x707   :  { %v1679_v43 = vpop.f32.mrb[17].mxu1  ;;  %v1720_v0 = vmul.f32 %v4103_v32, %v3792_v6 }
 0x708   :  { %v1718_v49 = vmul.f32 %v4099_v9, %v1679_v43  ;;  %v3793_v1 = vpop.f32.mrb[18].mxu1 }
 0x709   :  { %v1682_v24 = vpop.f32.mrb[19].mxu1  ;;  %v1721_v2 = vmul.f32 %v4105_v27, %v3793_v1  ;;  %v1300_v27 = vpop.xlane.xlu0 %1299 }
 0x70a   :  { %v1719_v10 = vmul.f32 %v4101_v17, %v1682_v24  ;;  %2769 = vrot.lane.b32.xlu1 %v1718_v49, %s4309_s9  ;;  %v4117_v49 = vpop.eup %4116  ;;  %4148 = vrcp.f32 %v6065_v5  ;;  %v3944_v5 = vld [vmem:[%s6394_s4 + $0x10] sm:$0xff]  }
 0x70c   :  { %2771 = vrot.lane.b32.xlu0 %v1719_v10, %s4309_s9  ;;  %v4119_v10 = vpop.eup %4118  ;;  %4150 = vrcp.f32 %v1300_v27  ;;  %v3945_v27 = vld [vmem:[%s6394_s4 + $0x18] sm:$0xff]  }
 0x70e   :  { %2773 = vrot.lane.b32.xlu1 %v1720_v0, %s4309_s9  ;;  %v6040_v46 = vpop.f32.mrb[20].mxu1  ;;  %v4121_v0 = vpop.eup %4120 }
 0x70f   :  { %v6042_v63 = vpop.f32.mrb[21].mxu1  ;;  %v4123_v39 = vpop.eup %4122 }
 0x710   :  { %2775 = vrot.lane.b32.xlu0 %v1721_v2, %s4309_s9  ;;  %v6045_v31 = vpop.f32.mrb[22].mxu1  ;;  %v6079_v2 = vpop.xlane.xlu1 %1302 }
 0x711   :  { %v6047_v58 = vpop.f32.mrb[23].mxu1  ;;  %v4125_v16 = vpop.eup %4124  ;;  %4152 = vrcp.f32 %v6079_v2 }
 0x712   :  { %v4127_v37 = vpop.eup %4126 }
 0x713   :  { %v4129_v3 = vpop.eup %4128 }
 0x75b   :  { %v3808_v34 = vpop.f32.mrb[24].mxu0 }
 0x75c   :  { %v1992_v45 = vpop.f32.mrb[25].mxu0  ;;  %v2033_v26 = vmul.f32 %v4111_v35, %v3808_v34 }
 0x75d   :  { %v2031_v19 = vmul.f32 %v4107_v57, %v1992_v45  ;;  %v3809_v20 = vpop.f32.mrb[26].mxu0  ;;  %v4131_v57 = vpop.eup %4130 }
 0x75e   :  { %v1995_v52 = vpop.f32.mrb[27].mxu0  ;;  %v2034_v30 = vmul.f32 %v4113_v48, %v3809_v20  ;;  %v1607_v45 = vpop.xlane.xlu0 %1606  ;;  %v6680_v48 = vld [vmem:[#allocation11_spill] sm:$0xff] }
 0x75f   :  { %v2032_v51 = vmul.f32 %v4109_v56, %v1995_v52  ;;  %2801 = vrot.lane.b32.xlu1 %v2031_v19, %s4310_s10  ;;  %v1610_v19 = vpop.xlane.xlu1 %1609  ;;  %v4133_v15 = vpop.eup %4132  ;;  %4154 = vrcp.f32 %v1607_v45 }
 0x760   :  { %4156 = vrcp.f32 %v1610_v19 }
 0x761   :  { %2803 = vrot.lane.b32.xlu0 %v2032_v51, %s4310_s10  ;;  %v6679_v51 = vld [vmem:[#allocation29_spill] sm:$0xff] }
 0x762   :  { %v783_v35 = vmul.f32 %v4129_v3, %v6679_v51 }
 0x763   :  { %v6067_v38 = vpop.f32.mrb[28].mxu0  ;;  %2805 = vrot.lane.b32.xlu1 %v2033_v26, %s4310_s10  ;;  %v3824_v11 = vpop.f32.mrb[24].mxu1 }
 0x764   :  { %v6070_v50 = vpop.f32.mrb[29].mxu0  ;;  %v2305_v23 = vpop.f32.mrb[25].mxu1  ;;  %v2346_v32 = vmul.f32 %v4119_v10, %v3824_v11 }
 0x765   :  { %v2344_v6 = vmul.f32 %v4115_v8, %v2305_v23  ;;  %v6072_v9 = vpop.f32.mrb[30].mxu0  ;;  %2807 = vrot.lane.b32.xlu0 %v2034_v30, %s4310_s10  ;;  %v3825_v43 = vpop.f32.mrb[26].mxu1  ;;  %v784_v30 = vmul.f32 %v4133_v15, %v6680_v48 }
 0x766   :  { %v6075_v1 = vpop.f32.mrb[31].mxu0  ;;  %v2308_v17 = vpop.f32.mrb[27].mxu1  ;;  %v2347_v53 = vmul.f32 %v4121_v0, %v3825_v43 }
 0x767   :  { %v2345_v24 = vmul.f32 %v4117_v49, %v2308_v17  ;;  %2833 = vrot.lane.b32.xlu1 %v2344_v6, %s4311_s11  ;;  %v4135_v26 = vpop.eup %4134  ;;  %v1613_v8 = vpop.xlane.xlu0 %1612  ;;  %v6681_v6 = vld [vmem:[#allocation28_spill] sm:$0xff]  ;;  %v6682_v49 = vld [vmem:[#allocation38_spill] sm:$0xff] }
 0x768   :  { %v4137_v11 = vpop.eup %4136  ;;  %v1616_v23 = vpop.xlane.xlu1 %1615  ;;  %v785_v43 = vmul.f32 %v4135_v26, %v6681_v6  ;;  %4158 = vrcp.f32 %v1613_v8 }
 0x769   :  { %2835 = vrot.lane.b32.xlu0 %v2345_v24, %s4311_s11  ;;  %v4139_v42 = vpop.eup %4138  ;;  %v786_v17 = vmul.f32 %v4137_v11, %v6682_v49  ;;  %v3943_v24 = vld [vmem:[%s6394_s4 + $0x8] sm:$0xff]   ;;  %4160 = vrcp.f32 %v1616_v23 }
 0x76a   :  { %v4141_v36 = vpop.eup %4140  ;;  %v1096_v10 = vmul.f32 %v4139_v42, %v5918_v40  ;;  %3848 = vmatprep.subr.bf16.mxu1 %v3943_v24 }
 0x76b   :  { %2837 = vrot.lane.b32.xlu1 %v2346_v32, %s4311_s11  ;;  %v6082_v22 = vpop.f32.mrb[28].mxu1  ;;  %v4143_v32 = vpop.eup %4142  ;;  %3849 = vmatpush3.bf16.msra.mxu1 %v3943_v24 }
 0x76c   :  { %v3840_v12 = vpop.f32.mrb[32].mxu0  ;;  %v6084_v21 = vpop.f32.mrb[29].mxu1  ;;  %3850 = vmatprep.subr.bf16.mxu1 %v3944_v5  ;;  %v1098_v2 = vmul.f32 %v4143_v32, %v5916_v55 }
 0x76d   :  { %v2618_v61 = vpop.f32.mrb[33].mxu0  ;;  %2839 = vrot.lane.b32.xlu0 %v2347_v53, %s4311_s11  ;;  %v6088_v54 = vpop.f32.mrb[30].mxu1  ;;  %v2659_v34 = vmul.f32 %v4127_v37, %v3840_v12  ;;  %v1097_v12 = vmul.f32 %v4141_v36, %v5926_v29 }
 0x76e   :  { %v2657_v62 = vmul.f32 %v4123_v39, %v2618_v61  ;;  %v3841_v28 = vpop.f32.mrb[34].mxu0  ;;  %v6090_v59 = vpop.f32.mrb[31].mxu1 }
 0x76f   :  { %v2621_v18 = vpop.f32.mrb[35].mxu0  ;;  %v2660_v20 = vmul.f32 %v4131_v57, %v3841_v28  ;;  %v1920_v0 = vpop.xlane.xlu0 %1919  ;;  %3851 = vmatpush3.bf16.msra.mxu1 %v3944_v5 }
 0x770   :  { %v2658_v60 = vmul.f32 %v4125_v16, %v2621_v18  ;;  %2865 = vrot.lane.b32.xlu1 %v2657_v62, %s4312_s12  ;;  %v1923_v53 = vpop.xlane.xlu1 %1922  ;;  %v4145_v40 = vpop.eup %4144  ;;  %3852 = vmatprep.subr.bf16.mxu1 %v3945_v27  ;;  %4162 = vrcp.f32 %v1920_v0 }
 0x771   :  { %v4147_v39 = vpop.eup %4146  ;;  %v1099_v61 = vmul.f32 %v4145_v40, %v5922_v13  ;;  %4164 = vrcp.f32 %v1923_v53 }
 0x772   :  { %2867 = vrot.lane.b32.xlu0 %v2658_v60, %s4312_s12  ;;  %v4149_v29 = vpop.eup %4148  ;;  %v1409_v16 = vmul.f32 %v4147_v39, %v6013_v41 }
 0x773   :  { %v1926_v62 = vpop.xlane.xlu0 %1925  ;;  %v4151_v18 = vpop.eup %4150  ;;  %3853 = vmatpush3.bf16.msra.mxu1 %v3945_v27  ;;  %v1410_v55 = vmul.f32 %v4149_v29, %v6018_v14 }
 0x774   :  { %v6097_v56 = vpop.f32.mrb[36].mxu0  ;;  %2869 = vrot.lane.b32.xlu1 %v2659_v34, %s4312_s12  ;;  %v1929_v28 = vpop.xlane.xlu1 %1928  ;;  %v1411_v13 = vmul.f32 %v4151_v18, %v6010_v4  ;;  %4166 = vrcp.f32 %v1926_v62  ;;  %v6683_v62 = vld [vmem:[#allocation27_spill] sm:$0xff] }
 0x775   :  { %v6101_v52 = vpop.f32.mrb[37].mxu0  ;;  %v4153_v60 = vpop.eup %4152  ;;  %4168 = vrcp.f32 %v1929_v28 }
 0x776   :  { %v6103_v33 = vpop.f32.mrb[38].mxu0  ;;  %2871 = vrot.lane.b32.xlu0 %v2660_v20, %s4312_s12  ;;  %v4155_v3 = vpop.eup %4154  ;;  %v1412_v41 = vmul.f32 %v4153_v60, %v6015_v25 }
 0x777   :  { %v6108_v47 = vpop.f32.mrb[39].mxu0  ;;  %v2233_v37 = vpop.xlane.xlu0 %2232  ;;  %v1722_v45 = vmul.f32 %v4155_v3, %v6042_v63  ;;  %v6686_v3 = vld [vmem:[#allocation25_spill] sm:$0xff] }
 0x778   :  { %2681 = vrot.lane.b32.xlu1 %v783_v35, %s4306_s2  ;;  %v2236_v34 = vpop.xlane.xlu1 %2235  ;;  %v4157_v57 = vpop.eup %4156  ;;  %4170 = vrcp.f32 %v2233_v37 }
 0x779   :  { %v4159_v14 = vpop.eup %4158  ;;  %v1723_v20 = vmul.f32 %v4157_v57, %v6047_v58  ;;  %4172 = vrcp.f32 %v2236_v34  ;;  %v6687_v34 = vld [vmem:[#allocation7_spill] sm:$0xff] }
 0x77a   :  { %2683 = vrot.lane.b32.xlu0 %v784_v30, %s4306_s2  ;;  %v4161_v4 = vpop.eup %4160  ;;  %v1724_v15 = vmul.f32 %v4159_v14, %v6040_v46 }
 0x77b   :  { %v2239_v19 = vpop.xlane.xlu0 %2238  ;;  %v1725_v25 = vmul.f32 %v4161_v4, %v6045_v31  ;;  %v4163_v63 = vpop.eup %4162 }
 0x77c   :  { %2685 = vrot.lane.b32.xlu1 %v785_v43, %s4306_s2  ;;  %v2242_v51 = vpop.xlane.xlu1 %2241  ;;  %v2035_v26 = vmul.f32 %v4163_v63, %v6070_v50  ;;  %v4165_v58 = vpop.eup %4164  ;;  %4174 = vrcp.f32 %v2239_v19 }
 0x77d   :  { %v2036_v46 = vmul.f32 %v4165_v58, %v6075_v1  ;;  %4176 = vrcp.f32 %v2242_v51  ;;  %v6688_v51 = vld [vmem:[#allocation10_spill] sm:$0xff] }
 0x77e   :  { %2687 = vrot.lane.b32.xlu0 %v786_v17, %s4306_s2  ;;  %v4167_v30 = vpop.eup %4166 }
 0x77f   :  { %v2546_v35 = vpop.xlane.xlu0 %2545  ;;  %v2037_v31 = vmul.f32 %v4167_v30, %v6067_v38  ;;  %v4169_v44 = vpop.eup %4168 }
 0x780   :  { %2713 = vrot.lane.b32.xlu1 %v1096_v10, %s4307_s7  ;;  %v2549_v48 = vpop.xlane.xlu1 %2548  ;;  %4178 = vrcp.f32 %v2546_v35  ;;  %v2038_v50 = vmul.f32 %v4169_v44, %v6072_v9 }
 0x781   :  { %4180 = vrcp.f32 %v2549_v48 }
 0x782   :  { %2715 = vrot.lane.b32.xlu0 %v1097_v12, %s4307_s7  ;;  %v4171_v8 = vpop.eup %4170 }
 0x783   :  { %v2552_v11 = vpop.xlane.xlu0 %2551  ;;  %v2348_v1 = vmul.f32 %v4171_v8, %v6084_v21  ;;  %v4173_v6 = vpop.eup %4172 }
 0x784   :  { %2717 = vrot.lane.b32.xlu1 %v1098_v2, %s4307_s7  ;;  %v2555_v23 = vpop.xlane.xlu1 %2554  ;;  %4182 = vrcp.f32 %v2552_v11  ;;  %v2349_v38 = vmul.f32 %v4173_v6, %v6090_v59  ;;  %v6690_v11 = vld [vmem:[#allocation9_spill] sm:$0xff]  ;;  %v6200_v6 = vld [vmem:[%s6395_s3] ss:$0 sm:$0xff]  ;;  %s4314_s3 = smov 124  }
 0x785   :  { %4184 = vrcp.f32 %v2555_v23 }
 0x786   :  { %2719 = vrot.lane.b32.xlu0 %v1099_v61, %s4307_s7  ;;  %v4175_v43 = vpop.eup %4174  ;;  %4186 = vrcp.f32 %v6683_v62 }
 0x787   :  { %v2350_v42 = vmul.f32 %v4175_v43, %v6082_v22  ;;  %v4177_v9 = vpop.eup %4176  ;;  %v2674_v36 = vpop.permute.xlu0 %2673 }
 0x788   :  { %2745 = vrot.lane.b32.xlu1 %v1409_v16, %s4308_s8  ;;  %v2351_v49 = vmul.f32 %v4177_v9, %v6088_v54  ;;  %v2676_v17 = vpop.permute.xlu1 %2675 }
 0x78a   :  { %2747 = vrot.lane.b32.xlu0 %v1410_v55, %s4308_s8  ;;  %v4179_v21 = vpop.eup %4178  ;;  %v6685_v55 = vld [vmem:[#allocation21_spill] sm:$0xff] }
 0x78b   :  { %v2661_v24 = vmul.f32 %v4179_v21, %v6101_v52  ;;  %v4181_v59 = vpop.eup %4180  ;;  %v2680_v52 = vpop.permute.xlu0 %2679 }
 0x78c   :  { %2749 = vrot.lane.b32.xlu1 %v1411_v13, %s4308_s8  ;;  %v2662_v10 = vmul.f32 %v4181_v59, %v6108_v47  ;;  %v2678_v5 = vpop.permute.xlu1 %2677 }
 0x78e   :  { %2751 = vrot.lane.b32.xlu0 %v1412_v41, %s4308_s8  ;;  %v4183_v22 = vpop.eup %4182 }
 0x78f   :  { %v2663_v32 = vmul.f32 %v4183_v22, %v6097_v56  ;;  %v4185_v54 = vpop.eup %4184  ;;  %v2708_v12 = vpop.permute.xlu0 %2707 }
 0x790   :  { %2777 = vrot.lane.b32.xlu1 %v1722_v45, %s4309_s9  ;;  %v2664_v0 = vmul.f32 %v4185_v54, %v6103_v33  ;;  %v2706_v53 = vpop.permute.xlu1 %2705  ;;  %v6684_v33 = vld [vmem:[#allocation15_spill] sm:$0xff]  ;;  %v4187_v37 = vpop.eup %4186 }
 0x791   :  { %4188 = vrcp.f32 %v6684_v33  ;;  %v462_v41 = vmul.f32 %v4187_v37, %v6687_v34 }
 0x792   :  { %2779 = vrot.lane.b32.xlu0 %v1723_v20, %s4309_s9  ;;  %4190 = vrcp.f32 %v6685_v55 }
 0x793   :  { %v2712_v47 = vpop.permute.xlu0 %2711  ;;  %4192 = vrcp.f32 %v6686_v3  ;;  %v2890_v45 = vsel %vm2889_vm3, %v462_v41, %v2674_v36 }
 0x794   :  { %2781 = vrot.lane.b32.xlu1 %v1724_v15, %s4309_s9  ;;  %v2710_v27 = vpop.permute.xlu1 %2709  ;;  %v2898_v15 = vsel %vm78_vm0, %v2890_v45, %v2706_v53 }
 0x796   :  { %2783 = vrot.lane.b32.xlu0 %v1725_v25, %s4309_s9 }
 0x797   :  { %v2740_v2 = vpop.permute.xlu0 %2739 }
 0x798   :  { %2809 = vrot.lane.b32.xlu1 %v2035_v26, %s4310_s10  ;;  %v2738_v40 = vpop.permute.xlu1 %2737  ;;  %v6689_v26 = vld [vmem:[#allocation8_spill] sm:$0xff] }
 0x799   :  { %v2907_v48 = vsel %vm2906_vm4, %v2898_v15, %v2738_v40 }
 0x79a   :  { %2811 = vrot.lane.b32.xlu0 %v2036_v46, %s4310_s10 }
 0x79b   :  { %v2744_v61 = vpop.permute.xlu0 %2743  ;;  %v4189_v19 = vpop.eup %4188 }
 0x79c   :  { %2813 = vrot.lane.b32.xlu1 %v2037_v31, %s4310_s10  ;;  %v2742_v39 = vpop.permute.xlu1 %2741  ;;  %v4191_v4 = vpop.eup %4190  ;;  %v463_v25 = vmul.f32 %v4189_v19, %v6688_v51 }
 0x79d   :  { %v464_v58 = vmul.f32 %v4191_v4, %v6689_v26  ;;  %v4193_v30 = vpop.eup %4192 }
 0x79e   :  { %2815 = vrot.lane.b32.xlu0 %v2038_v50, %s4310_s10  ;;  %v2891_v35 = vsel %vm2889_vm3, %v463_v25, %v2676_v17  ;;  %v465_v50 = vmul.f32 %v4193_v30, %v6690_v11 }
 0x79f   :  { %v2772_v29 = vpop.permute.xlu0 %2771  ;;  %v2899_v31 = vsel %vm78_vm0, %v2891_v35, %v2708_v12  ;;  %v2892_v8 = vsel %vm2889_vm3, %v464_v58, %v2678_v5 }
 0x7a0   :  { %2841 = vrot.lane.b32.xlu1 %v2348_v1, %s4311_s11  ;;  %v2770_v56 = vpop.permute.xlu1 %2769  ;;  %v2908_v23 = vsel %vm2906_vm4, %v2899_v31, %v2740_v2 }
 0x7a1   :  { %v2916_v44 = vsel %vm2915_vm5, %v2907_v48, %v2770_v56  ;;  %v2917_v43 = vsel %vm2915_vm5, %v2908_v23, %v2772_v29 }
 0x7a2   :  { %2843 = vrot.lane.b32.xlu0 %v2349_v38, %s4311_s11  ;;  %v2900_v38 = vsel %vm78_vm0, %v2892_v8, %v2710_v27 }
 0x7a3   :  { %v2776_v16 = vpop.permute.xlu0 %2775  ;;  %v2909_v21 = vsel %vm2906_vm4, %v2900_v38, %v2742_v39 }
 0x7a4   :  { %2845 = vrot.lane.b32.xlu1 %v2350_v42, %s4311_s11  ;;  %v2774_v28 = vpop.permute.xlu1 %2773 }
 0x7a5   :  { %v2918_v36 = vsel %vm2915_vm5, %v2909_v21, %v2774_v28  ;;  %v6693_v21 = vld [vmem:[#allocation35_spill] sm:$0xff] }
 0x7a6   :  { %2847 = vrot.lane.b32.xlu0 %v2351_v49, %s4311_s11  ;;  %v2893_v49 = vsel %vm2889_vm3, %v465_v50, %v2680_v52 }
 0x7a7   :  { %v2901_v59 = vsel %vm78_vm0, %v2893_v49, %v2712_v47  ;;  %v6692_v49 = vld [vmem:[#allocation26_spill] sm:$0xff] }
 0x7a8   :  { %2873 = vrot.lane.b32.xlu1 %v2661_v24, %s4312_s12  ;;  %v2910_v54 = vsel %vm2906_vm4, %v2901_v59, %v2744_v61  ;;  %v6694_v59 = vld [vmem:[#allocation18_spill] sm:$0xff] }
 0x7a9   :  { %v2919_v52 = vsel %vm2915_vm5, %v2910_v54, %v2776_v16 }
 0x7aa   :  { %2875 = vrot.lane.b32.xlu0 %v2662_v10, %s4312_s12 }
 0x7ac   :  { %2877 = vrot.lane.b32.xlu1 %v2663_v32, %s4312_s12 }
 0x7ae   :  { %2879 = vrot.lane.b32.xlu0 %v2664_v0, %s4312_s12 }
 0x7d1   :  { %v2802_v18 = vpop.permute.xlu1 %2801 }
 0x7d2   :  { %v2925_v1 = vsel %vm2924_vm7, %v2916_v44, %v2802_v18 }
 0x7d3   :  { %v2804_v60 = vpop.permute.xlu0 %2803 }
 0x7d4   :  { %v2926_v17 = vsel %vm2924_vm7, %v2917_v43, %v2804_v60  ;;  %v6691_v43 = vld [vmem:[#allocation24_spill] sm:$0xff] }
 0x7d5   :  { %v2806_v13 = vpop.permute.xlu1 %2805 }
 0x7d6   :  { %v2927_v5 = vsel %vm2924_vm7, %v2918_v36, %v2806_v13 }
 0x7d7   :  { %v2808_v57 = vpop.permute.xlu0 %2807 }
 0x7d8   :  { %v2928_v40 = vsel %vm2924_vm7, %v2919_v52, %v2808_v57 }
 0x7d9   :  { %v2834_v14 = vpop.permute.xlu1 %2833 }
 0x7da   :  { %v2934_v42 = vsel %vm2933_vm8, %v2925_v1, %v2834_v14 }
 0x7db   :  { %v2836_v20 = vpop.permute.xlu0 %2835 }
 0x7dc   :  { %v2935_v10 = vsel %vm2933_vm8, %v2926_v17, %v2836_v20 }
 0x7dd   :  { %v2838_v63 = vpop.permute.xlu1 %2837 }
 0x7de   :  { %v2936_v53 = vsel %vm2933_vm8, %v2927_v5, %v2838_v63  ;;  %v6695_v5 = vld [vmem:[#allocation4_spill] sm:$0xff] }
 0x7df   :  { %v2840_v46 = vpop.permute.xlu0 %2839 }
 0x7e0   :  { %v2937_v39 = vsel %vm2933_vm8, %v2928_v40, %v2840_v46 }
 0x7e2   :  { %v2866_v9 = vpop.permute.xlu1 %2865 }
 0x7e3   :  { %v2943_v24 = vsel %vm2942_vm9, %v2934_v42, %v2866_v9 }
 0x7e4   :  { %v2958_v22 = vadd.f32 %v6200_v6, %v2943_v24  ;;  %v2868_v32 = vpop.permute.xlu0 %2867 }
 0x7e5   :  { %v2944_v0 = vsel %vm2942_vm9, %v2935_v10, %v2868_v32 }
 0x7e6   :  { %v2974_v12 = vmin.f32 %v2958_v22, 0.0  ;;  %v2959_v27 = vadd.f32 %v6200_v6, %v2944_v0  ;;  %v2870_v47 = vpop.permute.xlu1 %2869  ;;  %vm2966_vm10 = vcmp.gt.f32.partialorder %v2958_v22, 0.0 }
 0x7e7   :  { %v2945_v2 = vsel %vm2942_vm9, %v2936_v53, %v2870_v47 }
 0x7e8   :  { %v2982_v56 = vmul.f32 1.442695, %v2974_v12  ;;  %v2975_v61 = vmin.f32 %v2959_v27, 0.0  ;;  %v2960_v29 = vadd.f32 %v6200_v6, %v2945_v2  ;;  %v2872_v62 = vpop.permute.xlu0 %2871  ;;  %vm2967_vm11 = vcmp.gt.f32.partialorder %v2959_v27, 0.0  ;;  %v6696_v12 = vld [vmem:[#allocation13_spill] sm:$0xff] }
 0x7e9   :  { %v2946_v28 = vsel %vm2942_vm9, %v2937_v39, %v2872_v62 }
 0x7ea   :  { %4194 = vpow2.f32 %v2982_v56  ;;  %v2984_v16 = vmul.f32 1.442695, %v2975_v61  ;;  %v2976_v33 = vmin.f32 %v2960_v29, 0.0  ;;  %v2682_v18 = vpop.permute.xlu1 %2681  ;;  %v2961_v55 = vadd.f32 %v6200_v6, %v2946_v28  ;;  %v6697_v56 = vld [vmem:[#allocation3_spill] sm:$0xff] }
 0x7eb   :  { %vm2968_vm12 = vcmp.gt.f32.partialorder %v2960_v29, 0.0 }
 0x7ec   :  { %4196 = vpow2.f32 %v2984_v16  ;;  %v2986_v60 = vmul.f32 1.442695, %v2976_v33  ;;  %v2684_v37 = vpop.permute.xlu0 %2683  ;;  %v2977_v13 = vmin.f32 %v2961_v55, 0.0  ;;  %vm2969_vm13 = vcmp.gt.f32.partialorder %v2961_v55, 0.0 }
 0x7ee   :  { %4198 = vpow2.f32 %v2986_v60  ;;  %v6225_v3 = vpop.permute.xlu1 %2685  ;;  %v2988_v34 = vmul.f32 1.442695, %v2977_v13 }
 0x7f0   :  { %v6227_v41 = vpop.permute.xlu0 %2687  ;;  %4200 = vpow2.f32 %v2988_v34 }
 0x7f1   :  { %4202 = vrcp.f32 %v6691_v43 }
 0x7f2   :  { %v2714_v57 = vpop.permute.xlu1 %2713  ;;  %4204 = vrcp.f32 %v6692_v49 }
 0x7f3   :  { %4206 = vrcp.f32 %v6693_v21 }
 0x7f4   :  { %v4195_v45 = vpop.eup %4194  ;;  %v2716_v14 = vpop.permute.xlu0 %2715  ;;  %4208 = vrcp.f32 %v6694_v59 }
 0x7f5   :  { %v3602_v19 = vadd.f32 -1.0, %v4195_v45 }
 0x7f6   :  { %v4197_v20 = vpop.eup %4196  ;;  %v2718_v4 = vpop.permute.xlu1 %2717 }
 0x7f7   :  { %v3603_v15 = vadd.f32 -1.0, %v4197_v20  ;;  %v3006_v63 = vsel %vm2966_vm10, %v2958_v22, %v3602_v19 }
 0x7f8   :  { %v4199_v51 = vpop.eup %4198  ;;  %v2720_v25 = vpop.permute.xlu0 %2719 }
 0x7f9   :  { %v3007_v35 = vsel %vm2967_vm11, %v2959_v27, %v3603_v15  ;;  %v3604_v26 = vadd.f32 -1.0, %v4199_v51 }
 0x7fa   :  { %v2746_v58 = vpop.permute.xlu1 %2745  ;;  %v3014_v48 = vpack.c.bf16 %v3007_v35, %v3006_v63  ;;  %v4201_v46 = vpop.eup %4200 }
 0x7fb   :  { %v3605_v30 = vadd.f32 -1.0, %v4201_v46  ;;  %v3008_v44 = vsel %vm2968_vm12, %v2960_v29, %v3604_v26  ;;  %v4203_v10 = vpop.eup %4202 }
 0x7fc   :  { %3854 = vmatprep.mubr.msk.bf16.mxu1 %vm300_vm6, %v3014_v48  ;;  %v2748_v31 = vpop.permute.xlu0 %2747  ;;  %v4205_v54 = vpop.eup %4204  ;;  %v466_v0 = vmul.f32 %v4203_v10, %v6695_v5 }
 0x7fd   :  { %v3009_v11 = vsel %vm2969_vm13, %v2961_v55, %v3605_v30  ;;  %v4207_v52 = vpop.eup %4206  ;;  %v467_v27 = vmul.f32 %v4205_v54, %v6696_v12  ;;  %v6698_v55 = vld [vmem:[#allocation14_spill] sm:$0xff] }
 0x7fe   :  { %v2750_v50 = vpop.permute.xlu1 %2749  ;;  %v3015_v8 = vpack.c.bf16 %v3009_v11, %v3008_v44  ;;  %v2894_v47 = vsel %vm2889_vm3, %v466_v0, %v2682_v18  ;;  %v468_v61 = vmul.f32 %v4207_v52, %v6697_v56  ;;  %v4209_v62 = vpop.eup %4208 }
 0x7ff   :  { %v2902_v40 = vsel %vm78_vm0, %v2894_v47, %v2714_v57  ;;  %v2895_v39 = vsel %vm2889_vm3, %v467_v27, %v2684_v37  ;;  %v469_v60 = vmul.f32 %v4209_v62, %v6698_v55 }
 0x800   :  { %v2752_v23 = vpop.permute.xlu0 %2751  ;;  %3855 = vmatmul.mubr.msk.bf16.vlgmr.msra.gmra.mrb[32].mxu1 %vm300_vm6, %v3015_v8  ;;  %v2911_v29 = vsel %vm2906_vm4, %v2902_v40, %v2746_v58  ;;  %v2903_v28 = vsel %vm78_vm0, %v2895_v39, %v2716_v14  ;;  %v2896_v18 = vsel %vm2889_vm3, %v468_v61, %v6225_v3 }
 0x801   :  { %v2912_v13 = vsel %vm2906_vm4, %v2903_v28, %v2748_v31  ;;  %v2904_v37 = vsel %vm78_vm0, %v2896_v18, %v2718_v4  ;;  %v2897_v14 = vsel %vm2889_vm3, %v469_v60, %v6227_v41 }
 0x802   :  { %v2778_v1 = vpop.permute.xlu1 %2777  ;;  %v2913_v20 = vsel %vm2906_vm4, %v2904_v37, %v2750_v50  ;;  %v2905_v51 = vsel %vm78_vm0, %v2897_v14, %v2720_v25 }
 0x803   :  { %v2920_v16 = vsel %vm2915_vm5, %v2911_v29, %v2778_v1  ;;  %v2914_v58 = vsel %vm2906_vm4, %v2905_v51, %v2752_v23 }
 0x804   :  { %v2780_v38 = vpop.permute.xlu0 %2779 }
 0x805   :  { %v2921_v57 = vsel %vm2915_vm5, %v2912_v13, %v2780_v38 }
 0x806   :  { %v2782_v42 = vpop.permute.xlu1 %2781 }
 0x807   :  { %v2922_v63 = vsel %vm2915_vm5, %v2913_v20, %v2782_v42 }
 0x808   :  { %v2784_v9 = vpop.permute.xlu0 %2783 }
 0x809   :  { %v2923_v46 = vsel %vm2915_vm5, %v2914_v58, %v2784_v9  ;;  %v6699_v58 = vld [vmem:[#allocation46_spill] sm:$0xff] }
 0x80a   :  { %v2810_v17 = vpop.permute.xlu1 %2809 }
 0x80b   :  { %v2929_v34 = vsel %vm2924_vm7, %v2920_v16, %v2810_v17 }
 0x80c   :  { %v2812_v24 = vpop.permute.xlu0 %2811 }
 0x80d   :  { %v2930_v15 = vsel %vm2924_vm7, %v2921_v57, %v2812_v24 }
 0x80e   :  { %v2814_v36 = vpop.permute.xlu1 %2813 }
 0x80f   :  { %v2931_v48 = vsel %vm2924_vm7, %v2922_v63, %v2814_v36 }
 0x810   :  { %v2816_v22 = vpop.permute.xlu0 %2815 }
 0x811   :  { %v2932_v11 = vsel %vm2924_vm7, %v2923_v46, %v2816_v22 }
 0x812   :  { %v2842_v32 = vpop.permute.xlu1 %2841 }
 0x813   :  { %v2938_v45 = vsel %vm2933_vm8, %v2929_v34, %v2842_v32 }
 0x814   :  { %v2844_v53 = vpop.permute.xlu0 %2843 }
 0x815   :  { %v2939_v4 = vsel %vm2933_vm8, %v2930_v15, %v2844_v53 }
 0x816   :  { %v2846_v2 = vpop.permute.xlu1 %2845 }
 0x817   :  { %v2940_v30 = vsel %vm2933_vm8, %v2931_v48, %v2846_v2  ;;  %v4313_v2 = vmov 5  }
 0x818   :  { %v2848_v33 = vpop.permute.xlu0 %2847  ;;  %3939 = vset.pattern.permute.xlu1 %v4313_v2  ;;  %3940 = vset.pattern.permute.xlu0 %v4313_v2 }
 0x819   :  { %v2941_v8 = vsel %vm2933_vm8, %v2932_v11, %v2848_v33 }
 0x81a   :  { %v2874_v19 = vpop.permute.xlu1 %2873 }
 0x81b   :  { %v2947_v3 = vsel %vm2942_vm9, %v2938_v45, %v2874_v19 }
 0x81c   :  { %v2962_v35 = vadd.f32 %v6200_v6, %v2947_v3  ;;  %v2876_v26 = vpop.permute.xlu0 %2875 }
 0x81d   :  { %v2948_v41 = vsel %vm2942_vm9, %v2939_v4, %v2876_v26 }
 0x81e   :  { %v2978_v31 = vmin.f32 %v2962_v35, 0.0  ;;  %v2963_v25 = vadd.f32 %v6200_v6, %v2948_v41  ;;  %v2878_v44 = vpop.permute.xlu1 %2877  ;;  %vm2970_vm0 = vcmp.gt.f32.partialorder %v2962_v35, 0.0 }
 0x81f   :  { %v2949_v50 = vsel %vm2942_vm9, %v2940_v30, %v2878_v44 }
 0x820   :  { %v2990_v1 = vmul.f32 1.442695, %v2978_v31  ;;  %v2979_v23 = vmin.f32 %v2963_v25, 0.0  ;;  %v2964_v38 = vadd.f32 %v6200_v6, %v2949_v50  ;;  %v2880_v43 = vpop.permute.xlu0 %2879  ;;  %vm2971_vm14 = vcmp.gt.f32.partialorder %v2963_v25, 0.0 }
 0x821   :  { %v2950_v42 = vsel %vm2942_vm9, %v2941_v8, %v2880_v43  ;;  %v6700_v43 = vld [vmem:[#allocation53_spill] sm:$0xff] }
 0x822   :  { %4210 = vpow2.f32 %v2990_v1  ;;  %v2992_v9 = vmul.f32 1.442695, %v2979_v23  ;;  %v2980_v49 = vmin.f32 %v2964_v38, 0.0  ;;  %v2965_v21 = vadd.f32 %v6200_v6, %v2950_v42 }
 0x823   :  { %vm2972_vm15 = vcmp.gt.f32.partialorder %v2964_v38, 0.0 }
 0x824   :  { %4212 = vpow2.f32 %v2992_v9  ;;  %v2994_v17 = vmul.f32 1.442695, %v2980_v49  ;;  %v2981_v24 = vmin.f32 %v2965_v21, 0.0  ;;  %vm2973_vm1 = vcmp.gt.f32.partialorder %v2965_v21, 0.0  ;;  %v6701_v9 = vld [vmem:[#allocation48_spill] sm:$0xff] }
 0x826   :  { %4214 = vpow2.f32 %v2994_v17  ;;  %v2996_v59 = vmul.f32 1.442695, %v2981_v24 }
 0x828   :  { %4216 = vpow2.f32 %v2996_v59  ;;  %v6702_v59 = vld [vmem:[#allocation47_spill] sm:$0xff] }
 0x82c   :  { %v4211_v36 = vpop.eup %4210 }
 0x82d   :  { %v3606_v10 = vadd.f32 -1.0, %v4211_v36 }
 0x82e   :  { %v4213_v22 = vpop.eup %4212 }
 0x82f   :  { %v3607_v32 = vadd.f32 -1.0, %v4213_v22  ;;  %v3010_v5 = vsel %vm2970_vm0, %v2962_v35, %v3606_v10 }
 0x830   :  { %v4215_v54 = vpop.eup %4214 }
 0x831   :  { %v3011_v0 = vsel %vm2971_vm14, %v2963_v25, %v3607_v32  ;;  %v3608_v52 = vadd.f32 -1.0, %v4215_v54 }
 0x832   :  { %v3016_v53 = vpack.c.bf16 %v3011_v0, %v3010_v5  ;;  %v4217_v12 = vpop.eup %4216  ;;  %v6703_v0 = vld [vmem:[#allocation49_spill] sm:$0xff] }
 0x833   :  { %v3609_v27 = vadd.f32 -1.0, %v4217_v12  ;;  %v3012_v6 = vsel %vm2972_vm15, %v2964_v38, %v3608_v52 }
 0x834   :  { %3858 = vmatprep.mubr.msk.bf16.mxu1 %vm300_vm6, %v3016_v53 }
 0x835   :  { %v3013_v47 = vsel %vm2973_vm1, %v2965_v21, %v3609_v27 }
 0x836   :  { %v3017_v40 = vpack.c.bf16 %v3013_v47, %v3012_v6 }
 0x838   :  { %3859 = vmatmul.mubr.msk.bf16.gmra.mrb[36].mxu1 %vm300_vm6, %v3017_v40  ;;  %v6704_v40 = vld [vmem:[#allocation50_spill] sm:$0xff] }
 0x8d3   :  { %v3856_v39 = vpop.f32.mrb[32].mxu1 }
 0x8d4   :  { %v3096_v56 = vpop.f32.mrb[33].mxu1 }
 0x8d5   :  { %3139 = vrot.lane.b32.xlu1 %v3096_v56, %s4314_s3  ;;  %v3857_v61 = vpop.f32.mrb[34].mxu1 }
 0x8d6   :  { %v3128_v29 = vpack.c.bf16 %v3857_v61, %v3856_v39  ;;  %v3099_v62 = vpop.f32.mrb[35].mxu1 }
 0x8d7   :  { %v3127_v28 = vpack.c.bf16 %v3099_v62, %v3096_v56  ;;  %3141 = vrot.lane.b32.xlu0 %v3099_v62, %s4314_s3 }
 0x8d9   :  { %3143 = vrot.lane.b32.xlu1 %v3856_v39, %s4314_s3  ;;  %3862 = vmatprep.subr.bf16.mxu0 %v3127_v28 }
 0x8da   :  { %3863 = vmatpush3.bf16.msra.mxu0 %v3127_v28 }
 0x8db   :  { %3864 = vmatprep.subr.bf16.mxu0 %v3128_v29  ;;  %3145 = vrot.lane.b32.xlu0 %v3857_v61, %s4314_s3 }
 0x8de   :  { %3865 = vmatpush3.bf16.msra.mxu0 %v3128_v29 }
 0x90b   :  { %v3860_v16 = vpop.f32.mrb[36].mxu1 }
 0x90c   :  { %v3112_v33 = vpop.f32.mrb[37].mxu1 }
 0x90d   :  { %3147 = vrot.lane.b32.xlu1 %v3112_v33, %s4314_s3  ;;  %v3861_v55 = vpop.f32.mrb[38].mxu1 }
 0x90e   :  { %v3130_v60 = vpack.c.bf16 %v3861_v55, %v3860_v16  ;;  %v3115_v18 = vpop.f32.mrb[39].mxu1 }
 0x90f   :  { %v3129_v13 = vpack.c.bf16 %v3115_v18, %v3112_v33  ;;  %3149 = vrot.lane.b32.xlu0 %v3115_v18, %s4314_s3 }
 0x911   :  { %3151 = vrot.lane.b32.xlu1 %v3860_v16, %s4314_s3  ;;  %3866 = vmatprep.subr.bf16.mxu0 %v3129_v13 }
 0x912   :  { %3867 = vmatpush3.bf16.msra.mxu0 %v3129_v13 }
 0x913   :  { %3153 = vrot.lane.b32.xlu0 %v3861_v55, %s4314_s3  ;;  %3868 = vmatprep.subr.bf16.mxu0 %v3130_v60 }
 0x915   :  { %3196 = vperm.xlu1 %3939, %v3096_v56  }
 0x916   :  { %3869 = vmatpush3.bf16.msra.mxu0 %v3130_v60  ;;  %v6706_v60 = vld [vmem:[#allocation52_spill] sm:$0xff] }
 0x917   :  { %3200 = vperm.xlu0 %3940, %v3099_v62   ;;  %v6705_v62 = vld [vmem:[#allocation51_spill] sm:$0xff] }
 0x919   :  { %3204 = vperm.xlu1 %3939, %v3856_v39  }
 0x91b   :  { %3212 = vperm.xlu0 %3940, %v3112_v33  }
 0x91d   :  { %3208 = vperm.xlu1 %3939, %v3857_v61  }
 0x91f   :  { %3220 = vperm.xlu0 %3940, %v3860_v16  }
 0x921   :  { %3216 = vperm.xlu1 %3939, %v3115_v18  }
 0x925   :  { %3224 = vperm.xlu1 %3939, %v3861_v55  }
 0x947   :  { %v3140_v34 = vpop.permute.xlu1 %3139 }
 0x948   :  { %3163 = vxpose.xlu0.b32.start [1/8] (short) (narrow) %v3140_v34, 8 }
 0x949   :  { %v3142_v37 = vpop.permute.xlu0 %3141 }
 0x94b   :  { %v3144_v57 = vpop.permute.xlu1 %3143 }
 0x94c   :  { %3164 = vxpose.xlu0.b32.cont [2/8] (short) (narrow) %v3142_v37, 8 }
 0x94d   :  { %v3146_v45 = vpop.permute.xlu0 %3145 }
 0x950   :  { %3165 = vxpose.xlu0.b32.cont [3/8] (short) (narrow) %v3144_v57, 8 }
 0x954   :  { %3166 = vxpose.xlu0.b32.cont [4/8] (short) (narrow) %v3146_v45, 8 }
 0x97f   :  { %v3148_v19 = vpop.permute.xlu1 %3147 }
 0x980   :  { %3167 = vxpose.xlu0.b32.cont [5/8] (short) (narrow) %v3148_v19, 8 }
 0x981   :  { %v3150_v14 = vpop.permute.xlu0 %3149 }
 0x983   :  { %v3152_v20 = vpop.permute.xlu1 %3151 }
 0x984   :  { %3168 = vxpose.xlu0.b32.cont [6/8] (short) (narrow) %v3150_v14, 8 }
 0x985   :  { %v3154_v15 = vpop.permute.xlu0 %3153 }
 0x988   :  { %3169 = vxpose.xlu0.b32.cont [7/8] (short) (narrow) %v3152_v20, 8 }
 0x98c   :  { %3170 = vxpose.xlu0.b32.end [8/8] (short) (narrow) %v3154_v15, 8 }
 0x994   :  { %v3197_v63 = vpop.permute.xlu1 %3196 }
 0x996   :  { %v3201_v3 = vpop.permute.xlu0 %3200 }
 0x998   :  { %v3205_v35 = vpop.permute.xlu1 %3204 }
 0x99a   :  { %v3213_v51 = vpop.permute.xlu0 %3212 }
 0x99c   :  { %v3209_v11 = vpop.permute.xlu1 %3208 }
 0x99e   :  { %v3221_v4 = vpop.permute.xlu0 %3220 }
 0x9a0   :  { %v3217_v54 = vpop.permute.xlu1 %3216 }
 0x9a4   :  { %v3225_v6 = vpop.permute.xlu1 %3224 }
 0x9f0   :  { %v3179_v26 = vpop.trf.xlu0 }
 0x9f1   :  { %v3230_v48 = vrot.slane %v3179_v26, %v6699_v58 }
 0x9f3   :  { %v3237_v41 = vadd.f32 %v3230_v48, %v3221_v4  ;;  %v3231_v46 = vadd.f32 %v3230_v48, %v3197_v63  ;;  %v3232_v30 = vadd.f32 %v3230_v48, %v3201_v3  ;;  %v3233_v31 = vadd.f32 %v3230_v48, %v3205_v35 }
 0x9f4   :  { %v3234_v38 = vadd.f32 %v3230_v48, %v3209_v11  ;;  %v3235_v32 = vadd.f32 %v3230_v48, %v3213_v51  ;;  %v3236_v27 = vadd.f32 %v3230_v48, %v3217_v54  ;;  %v3238_v61 = vadd.f32 %v3230_v48, %v3225_v6 }
 0x9f5   :  { %vm3245_vm2 = vcmp.gt.f32.partialorder %v3237_v41, 0.0  ;;  %v3253_v25 = vmul.f32 0.2, %v3237_v41  ;;  %vm3239_vm3 = vcmp.gt.f32.partialorder %v3231_v46, 0.0  ;;  %v3247_v44 = vmul.f32 0.2, %v3231_v46 }
 0x9f6   :  { %vm3240_vm4 = vcmp.gt.f32.partialorder %v3232_v30, 0.0  ;;  %v3248_v50 = vmul.f32 0.2, %v3232_v30  ;;  %v3249_v23 = vmul.f32 0.2, %v3233_v31  ;;  %vm3241_vm5 = vcmp.gt.f32.partialorder %v3233_v31, 0.0 }
 0x9f7   :  { %v3261_v8 = vsel %vm3245_vm2, %v3237_v41, %v3253_v25  ;;  %v3255_v1 = vsel %vm3239_vm3, %v3231_v46, %v3247_v44  ;;  %v3250_v22 = vmul.f32 0.2, %v3234_v38  ;;  %vm3242_vm7 = vcmp.gt.f32.partialorder %v3234_v38, 0.0 }
 0x9f8   :  { %v6277_v42 = vadd.f32 %v3261_v8, %v6700_v43  ;;  %v3263_v49 = vadd.f32 %v3255_v1, %v6701_v9  ;;  %v3256_v21 = vsel %vm3240_vm4, %v3232_v30, %v3248_v50  ;;  %v3257_v10 = vsel %vm3241_vm5, %v3233_v31, %v3249_v23 }
 0x9f9   :  { %v3264_v36 = vadd.f32 %v3256_v21, %v6702_v59  ;;  %v3265_v52 = vadd.f32 %v3257_v10, %v6703_v0  ;;  %v3258_v53 = vsel %vm3242_vm7, %v3234_v38, %v3250_v22  ;;  %v3251_v12 = vmul.f32 0.2, %v3235_v32 }
 0x9fa   :  { %v3289_v17 = vsel %vm300_vm6, %v6277_v42, -inf  ;;  %v3271_v24 = vsel %vm300_vm6, %v3263_v49, -inf  ;;  %vm3243_vm8 = vcmp.gt.f32.partialorder %v3235_v32, 0.0  ;;  %v3266_v2 = vadd.f32 %v3258_v53, %v6704_v40 }
 0x9fb   :  { %3290 = vmax.xlane.f32.xlu0 %v3289_v17  ;;  %3272 = vmax.xlane.f32.xlu1 %v3271_v24  ;;  %v3274_v5 = vsel %vm300_vm6, %v3264_v36, -inf  ;;  %v3277_v47 = vsel %vm300_vm6, %v3265_v52, -inf  ;;  %v3259_v39 = vsel %vm3243_vm8, %v3235_v32, %v3251_v12  ;;  %v3252_v56 = vmul.f32 0.2, %v3236_v27 }
 0x9fc   :  { %vm3244_vm9 = vcmp.gt.f32.partialorder %v3236_v27, 0.0  ;;  %v3280_v29 = vsel %vm300_vm6, %v3266_v2, -inf  ;;  %v3267_v28 = vadd.f32 %v3259_v39, %v6705_v62  ;;  %v3254_v33 = vmul.f32 0.2, %v3238_v61  ;;  %v3622_v62 = vld [vmem:[%s6396_s5] ss:$0 sm:$0xff] }
 0x9fd   :  { %v3260_v16 = vsel %vm3244_vm9, %v3236_v27, %v3252_v56  ;;  %vm3246_vm10 = vcmp.gt.f32.partialorder %v3238_v61, 0.0 }
 0x9fe   :  { %v3283_v55 = vsel %vm300_vm6, %v3267_v28, -inf  ;;  %v3268_v18 = vadd.f32 %v3260_v16, %v6706_v60  ;;  %v3262_v13 = vsel %vm3246_vm10, %v3238_v61, %v3254_v33 }
 0x9ff   :  { %3275 = vmax.xlane.f32.xlu1 %v3274_v5  ;;  %v3270_v37 = vadd.f32 %v3262_v13, %v4842_v7 }
 0xa00   :  { %v3286_v34 = vsel %vm300_vm6, %v3268_v18, -inf }
 0xa01   :  { %v3292_v57 = vsel %vm300_vm6, %v3270_v37, -inf }
 0xa03   :  { %3278 = vmax.xlane.f32.xlu1 %v3277_v47 }
 0xa07   :  { %3281 = vmax.xlane.f32.xlu1 %v3280_v29 }
 0xa0b   :  { %3284 = vmax.xlane.f32.xlu1 %v3283_v55 }
 0xa0f   :  { %3287 = vmax.xlane.f32.xlu1 %v3286_v34 }
 0xa13   :  { %3293 = vmax.xlane.f32.xlu1 %v3292_v57 }
 0xa88   :  { %v3273_v45 = vpop.xlane.xlu1 %3272  ;;  %v3291_v41 = vpop.xlane.xlu0 %3290 }
 0xa89   :  { %v3295_v19 = vsub.f32 %v3263_v49, %v3273_v45  ;;  %v3301_v44 = vsub.f32 %v6277_v42, %v3291_v41 }
 0xa8b   :  { %v3303_v14 = vmul.f32 1.442695, %v3295_v19  ;;  %v3315_v43 = vmul.f32 1.442695, %v3301_v44 }
 0xa8c   :  { %v3276_v20 = vpop.xlane.xlu1 %3275 }
 0xa8d   :  { %v3296_v15 = vsub.f32 %v3264_v36, %v3276_v20  ;;  %4218 = vpow2.f32 %v3303_v14 }
 0xa8f   :  { %v3305_v3 = vmul.f32 1.442695, %v3296_v15 }
 0xa90   :  { %v3279_v51 = vpop.xlane.xlu1 %3278 }
 0xa91   :  { %4220 = vpow2.f32 %v3305_v3  ;;  %v3297_v63 = vsub.f32 %v3265_v52, %v3279_v51 }
 0xa93   :  { %v3307_v4 = vmul.f32 1.442695, %v3297_v63 }
 0xa94   :  { %v3282_v35 = vpop.xlane.xlu1 %3281 }
 0xa95   :  { %4222 = vpow2.f32 %v3307_v4  ;;  %v3298_v26 = vsub.f32 %v3266_v2, %v3282_v35 }
 0xa97   :  { %v3309_v58 = vmul.f32 1.442695, %v3298_v26  ;;  %v4219_v7 = vpop.eup %4218 }
 0xa98   :  { %v3285_v48 = vpop.xlane.xlu1 %3284  ;;  %v3319_v30 = vsel %vm300_vm6, %v4219_v7, 0.0 }
 0xa99   :  { %4224 = vpow2.f32 %v3309_v58  ;;  %v3299_v46 = vsub.f32 %v3267_v28, %v3285_v48  ;;  %3320 = vadd.xlane.f32.xlu1 %v3319_v30 }
 0xa9b   :  { %v4221_v31 = vpop.eup %4220  ;;  %v3311_v25 = vmul.f32 1.442695, %v3299_v46 }
 0xa9c   :  { %v3288_v11 = vpop.xlane.xlu1 %3287  ;;  %v3322_v50 = vsel %vm300_vm6, %v4221_v31, 0.0  ;;  %v3343_v8 = vpack.c.bf16 %v4221_v31, %v4219_v7 }
 0xa9d   :  { %4226 = vpow2.f32 %v3311_v25  ;;  %v3300_v1 = vsub.f32 %v3268_v18, %v3288_v11  ;;  %3323 = vadd.xlane.f32.xlu1 %v3322_v50 }
 0xa9e   :  { %3870 = vmatprep.mubr.msk.bf16.mxu0 %vm300_vm6, %v3343_v8 }
 0xa9f   :  { %v4223_v23 = vpop.eup %4222  ;;  %v3313_v38 = vmul.f32 1.442695, %v3300_v1 }
 0xaa0   :  { %v3294_v9 = vpop.xlane.xlu1 %3293  ;;  %v3325_v49 = vsel %vm300_vm6, %v4223_v23, 0.0 }
 0xaa1   :  { %4228 = vpow2.f32 %v3313_v38  ;;  %v3302_v21 = vsub.f32 %v3270_v37, %v3294_v9  ;;  %3326 = vadd.xlane.f32.xlu1 %v3325_v49 }
 0xaa2   :  { %4230 = vpow2.f32 %v3315_v43 }
 0xaa3   :  { %v4225_v17 = vpop.eup %4224  ;;  %v3317_v42 = vmul.f32 1.442695, %v3302_v21 }
 0xaa4   :  { %v3344_v24 = vpack.c.bf16 %v4225_v17, %v4223_v23  ;;  %v3328_v59 = vsel %vm300_vm6, %v4225_v17, 0.0 }
 0xaa5   :  { %4232 = vpow2.f32 %v3317_v42  ;;  %3329 = vadd.xlane.f32.xlu1 %v3328_v59 }
 0xaa6   :  { %3871 = vmatmul.mubr.msk.bf16.vlgmr.msra.gmra.mrb[40].mxu0 %vm300_vm6, %v3344_v24 }
 0xaa7   :  { %v4227_v36 = vpop.eup %4226 }
 0xaa8   :  { %v3331_v10 = vsel %vm300_vm6, %v4227_v36, 0.0 }
 0xaa9   :  { %3332 = vadd.xlane.f32.xlu1 %v3331_v10 }
 0xaab   :  { %v4229_v22 = vpop.eup %4228 }
 0xaac   :  { %v3334_v32 = vsel %vm300_vm6, %v4229_v22, 0.0  ;;  %v3345_v54 = vpack.c.bf16 %v4229_v22, %v4227_v36  ;;  %v4231_v5 = vpop.eup %4230 }
 0xaad   :  { %3335 = vadd.xlane.f32.xlu1 %v3334_v32  ;;  %v3337_v53 = vsel %vm300_vm6, %v4231_v5, 0.0 }
 0xaae   :  { %3874 = vmatprep.mubr.msk.bf16.mxu0 %vm300_vm6, %v3345_v54 }
 0xaaf   :  { %v4233_v0 = vpop.eup %4232 }
 0xab0   :  { %v3346_v52 = vpack.c.bf16 %v4233_v0, %v4231_v5  ;;  %v3340_v12 = vsel %vm300_vm6, %v4233_v0, 0.0 }
 0xab1   :  { %3338 = vadd.xlane.f32.xlu1 %v3337_v53 }
 0xab2   :  { %3875 = vmatmul.mubr.msk.bf16.gmra.mrb[44].mxu0 %vm300_vm6, %v3346_v52  ;;  %vm3455_vm6 = vcmask 31744  }
 0xab5   :  { %3341 = vadd.xlane.f32.xlu1 %v3340_v12 }
 0xb26   :  { %v3321_v27 = vpop.xlane.xlu1 %3320 }
 0xb2a   :  { %v3324_v6 = vpop.xlane.xlu1 %3323 }
 0xb2e   :  { %v3327_v47 = vpop.xlane.xlu1 %3326 }
 0xb2f   :  { %4234 = vrcp.f32 %v3327_v47 }
 0xb30   :  { %4236 = vrcp.f32 %v3321_v27 }
 0xb32   :  { %v3330_v40 = vpop.xlane.xlu1 %3329 }
 0xb33   :  { %4238 = vrcp.f32 %v3330_v40 }
 0xb34   :  { %4240 = vrcp.f32 %v3324_v6 }
 0xb36   :  { %v3333_v2 = vpop.xlane.xlu1 %3332 }
 0xb37   :  { %4242 = vrcp.f32 %v3333_v2 }
 0xb39   :  { %v4235_v61 = vpop.eup %4234 }
 0xb3a   :  { %v3336_v39 = vpop.xlane.xlu1 %3335  ;;  %v4237_v28 = vpop.eup %4236 }
 0xb3b   :  { %4244 = vrcp.f32 %v3336_v39 }
 0xb3d   :  { %v4239_v60 = vpop.eup %4238 }
 0xb3e   :  { %v3339_v56 = vpop.xlane.xlu1 %3338  ;;  %v4241_v45 = vpop.eup %4240 }
 0xb3f   :  { %4246 = vrcp.f32 %v3339_v56 }
 0xb41   :  { %v4243_v4 = vpop.eup %4242 }
 0xb42   :  { %v3342_v16 = vpop.xlane.xlu1 %3341 }
 0xb43   :  { %4248 = vrcp.f32 %v3342_v16 }
 0xb45   :  { %v4245_v35 = vpop.eup %4244 }
 0xb49   :  { %v4247_v58 = vpop.eup %4246 }
 0xb4d   :  { %v4249_v41 = vpop.eup %4248 }
 0xb79   :  { %v3872_v29 = vpop.f32.mrb[40].mxu0 }
 0xb7a   :  { %v3434_v33 = vmul.f32 %v4235_v61, %v3872_v29  ;;  %v3393_v55 = vpop.f32.mrb[41].mxu0 }
 0xb7b   :  { %v3432_v18 = vmul.f32 %v4237_v28, %v3393_v55  ;;  %v3873_v13 = vpop.f32.mrb[42].mxu0 }
 0xb7c   :  { %v3449_v34 = vadd.f32 %v3622_v62, %v3434_v33  ;;  %v3435_v37 = vmul.f32 %v4239_v60, %v3873_v13  ;;  %v3396_v57 = vpop.f32.mrb[43].mxu0 }
 0xb7d   :  { %v3447_v19 = vadd.f32 %v3622_v62, %v3432_v18  ;;  %v3433_v20 = vmul.f32 %v4241_v45, %v3396_v57 }
 0xb7e   :  { %v3450_v14 = vadd.f32 %v3622_v62, %v3435_v37  ;;  %v3462_v15 = vsel %vm3455_vm6, %v3449_v34, -inf }
 0xb7f   :  { %3463 = vmax.xlane.f32.xlu1 %v3462_v15  ;;  %v3448_v51 = vadd.f32 %v3622_v62, %v3433_v20  ;;  %v3456_v63 = vsel %vm3455_vm6, %v3447_v19, -inf }
 0xb80   :  { %v3465_v3 = vsel %vm3455_vm6, %v3450_v14, -inf }
 0xb81   :  { %3466 = vmax.xlane.f32.xlu0 %v3465_v3  ;;  %v3459_v48 = vsel %vm3455_vm6, %v3448_v51, -inf }
 0xb83   :  { %3457 = vmax.xlane.f32.xlu1 %v3456_v63 }
 0xb85   :  { %v3876_v26 = vpop.f32.mrb[44].mxu0 }
 0xb86   :  { %v3409_v7 = vpop.f32.mrb[45].mxu0  ;;  %v3438_v46 = vmul.f32 %v4247_v58, %v3876_v26 }
 0xb87   :  { %v3436_v30 = vmul.f32 %v4243_v4, %v3409_v7  ;;  %3460 = vmax.xlane.f32.xlu1 %v3459_v48  ;;  %v3877_v31 = vpop.f32.mrb[46].mxu0 }
 0xb88   :  { %v3412_v25 = vpop.f32.mrb[47].mxu0  ;;  %v3439_v11 = vmul.f32 %v4249_v41, %v3877_v31  ;;  %v3453_v8 = vadd.f32 %v3622_v62, %v3438_v46 }
 0xb89   :  { %v3451_v44 = vadd.f32 %v3622_v62, %v3436_v30  ;;  %v3437_v50 = vmul.f32 %v4245_v35, %v3412_v25 }
 0xb8a   :  { %v3454_v38 = vadd.f32 %v3622_v62, %v3439_v11  ;;  %v3474_v9 = vsel %vm3455_vm6, %v3453_v8, -inf }
 0xb8b   :  { %v3452_v1 = vadd.f32 %v3622_v62, %v3437_v50  ;;  %v3468_v23 = vsel %vm3455_vm6, %v3451_v44, -inf }
 0xb8c   :  { %3469 = vmax.xlane.f32.xlu1 %v3468_v23  ;;  %v3477_v49 = vsel %vm3455_vm6, %v3454_v38, -inf }
 0xb8d   :  { %v3471_v43 = vsel %vm3455_vm6, %v3452_v1, -inf }
 0xb8e   :  { %3472 = vmax.xlane.f32.xlu0 %v3471_v43 }
 0xb90   :  { %3475 = vmax.xlane.f32.xlu1 %v3474_v9 }
 0xb92   :  { %3478 = vmax.xlane.f32.xlu0 %v3477_v49 }
 0xc0c   :  { %v3464_v21 = vpop.xlane.xlu1 %3463 }
 0xc0d   :  { %v6319_v17 = vsub.f32 %v3449_v34, %v3464_v21 }
 0xc0e   :  { %v3467_v42 = vpop.xlane.xlu0 %3466 }
 0xc0f   :  { %v3492_v24 = vmul.f32 1.442695, %v6319_v17  ;;  %v6322_v59 = vsub.f32 %v3450_v14, %v3467_v42 }
 0xc10   :  { %v3458_v36 = vpop.xlane.xlu1 %3457 }
 0xc11   :  { %4250 = vpow2.f32 %v3492_v24  ;;  %v3494_v10 = vmul.f32 1.442695, %v6322_v59  ;;  %v6325_v22 = vsub.f32 %v3447_v19, %v3458_v36 }
 0xc13   :  { %4252 = vpow2.f32 %v3494_v10  ;;  %v3488_v32 = vmul.f32 1.442695, %v6325_v22 }
 0xc14   :  { %v3461_v54 = vpop.xlane.xlu1 %3460 }
 0xc15   :  { %4254 = vpow2.f32 %v3488_v32  ;;  %v6328_v5 = vsub.f32 %v3448_v51, %v3461_v54 }
 0xc17   :  { %v3490_v0 = vmul.f32 1.442695, %v6328_v5 }
 0xc19   :  { %4256 = vpow2.f32 %v3490_v0  ;;  %v3470_v52 = vpop.xlane.xlu1 %3469 }
 0xc1a   :  { %v6331_v53 = vsub.f32 %v3451_v44, %v3470_v52 }
 0xc1b   :  { %v4251_v12 = vpop.eup %4250  ;;  %v3473_v27 = vpop.xlane.xlu0 %3472 }
 0xc1c   :  { %v3496_v6 = vmul.f32 1.442695, %v6331_v53  ;;  %v6334_v47 = vsub.f32 %v3452_v1, %v3473_v27  ;;  %v3510_v40 = vsel %vm3455_vm6, %v4251_v12, 0.0 }
 0xc1d   :  { %v4253_v2 = vpop.eup %4252  ;;  %3511 = vadd.xlane.f32.xlu1 %v3510_v40  ;;  %v3476_v39 = vpop.xlane.xlu1 %3475 }
 0xc1e   :  { %4258 = vpow2.f32 %v3496_v6  ;;  %v3498_v56 = vmul.f32 1.442695, %v6334_v47  ;;  %v6338_v61 = vsub.f32 %v3453_v8, %v3476_v39  ;;  %v3513_v29 = vsel %vm3455_vm6, %v4253_v2, 0.0 }
 0xc1f   :  { %v4255_v62 = vpop.eup %4254  ;;  %3514 = vadd.xlane.f32.xlu0 %v3513_v29  ;;  %v3479_v28 = vpop.xlane.xlu0 %3478 }
 0xc20   :  { %4260 = vpow2.f32 %v3498_v56  ;;  %v3500_v16 = vmul.f32 1.442695, %v6338_v61  ;;  %v6342_v33 = vsub.f32 %v3454_v38, %v3479_v28  ;;  %v3504_v55 = vsel %vm3455_vm6, %v4255_v62, 0.0 }
 0xc21   :  { %3505 = vadd.xlane.f32.xlu1 %v3504_v55 }
 0xc22   :  { %4262 = vpow2.f32 %v3500_v16  ;;  %v3502_v60 = vmul.f32 1.442695, %v6342_v33 }
 0xc23   :  { %v4257_v18 = vpop.eup %4256 }
 0xc24   :  { %4264 = vpow2.f32 %v3502_v60  ;;  %v3507_v13 = vsel %vm3455_vm6, %v4257_v18, 0.0 }
 0xc25   :  { %3508 = vadd.xlane.f32.xlu0 %v3507_v13 }
 0xc28   :  { %v4259_v34 = vpop.eup %4258 }
 0xc29   :  { %v3516_v37 = vsel %vm3455_vm6, %v4259_v34, 0.0 }
 0xc2a   :  { %v4261_v57 = vpop.eup %4260  ;;  %3517 = vadd.xlane.f32.xlu1 %v3516_v37 }
 0xc2b   :  { %v3519_v45 = vsel %vm3455_vm6, %v4261_v57, 0.0 }
 0xc2c   :  { %v4263_v19 = vpop.eup %4262  ;;  %3520 = vadd.xlane.f32.xlu0 %v3519_v45 }
 0xc2d   :  { %v3522_v14 = vsel %vm3455_vm6, %v4263_v19, 0.0 }
 0xc2e   :  { %v4265_v20 = vpop.eup %4264  ;;  %3523 = vadd.xlane.f32.xlu1 %v3522_v14 }
 0xc2f   :  { %v3525_v15 = vsel %vm3455_vm6, %v4265_v20, 0.0 }
 0xc30   :  { %3526 = vadd.xlane.f32.xlu0 %v3525_v15 }
 0xcaa   :  { %v3512_v3 = vpop.xlane.xlu1 %3511 }
 0xcab   :  { %4266 = vlog2.f32 %v3512_v3 }
 0xcac   :  { %v3515_v51 = vpop.xlane.xlu0 %3514 }
 0xcad   :  { %4268 = vlog2.f32 %v3515_v51 }
 0xcae   :  { %v3506_v63 = vpop.xlane.xlu1 %3505 }
 0xcaf   :  { %4270 = vlog2.f32 %v3506_v63 }
 0xcb2   :  { %v3509_v4 = vpop.xlane.xlu0 %3508 }
 0xcb3   :  { %4272 = vlog2.f32 %v3509_v4 }
 0xcb5   :  { %v4267_v35 = vpop.eup %4266 }
 0xcb6   :  { %v3533_v26 = vmul.f32 0.6931472, %v4267_v35 }
 0xcb7   :  { %v4269_v58 = vpop.eup %4268  ;;  %v3518_v7 = vpop.xlane.xlu1 %3517 }
 0xcb8   :  { %v3546_v48 = vsub.f32 %v6319_v17, %v3533_v26  ;;  %v3535_v41 = vmul.f32 0.6931472, %v4269_v58  ;;  %4274 = vlog2.f32 %v3518_v7 }
 0xcb9   :  { %v4271_v46 = vpop.eup %4270  ;;  %v3521_v30 = vpop.xlane.xlu0 %3520 }
 0xcba   :  { %3554 = vst.msk [vmem:[%s6397_s6 + $0x10] sm:$0xff] %vm3455_vm6, %v3546_v48  ;;  %v3547_v31 = vsub.f32 %v6322_v59, %v3535_v41  ;;  %v3529_v25 = vmul.f32 0.6931472, %v4271_v46  ;;  %4276 = vlog2.f32 %v3521_v30 }
 0xcbb   :  { %v3524_v44 = vpop.xlane.xlu1 %3523 }
 0xcbc   :  { %3555 = vst.msk [vmem:[%s6397_s6 + $0x18] sm:$0xff] %vm3455_vm6, %v3547_v31  ;;  %v3544_v11 = vsub.f32 %v6325_v22, %v3529_v25  ;;  %4278 = vlog2.f32 %v3524_v44 }
 0xcbd   :  { %v4273_v50 = vpop.eup %4272  ;;  %v3527_v8 = vpop.xlane.xlu0 %3526 }
 0xcbe   :  { %3552 = vst.msk [vmem:[%s6397_s6] sm:$0xff] %vm3455_vm6, %v3544_v11  ;;  %v3531_v1 = vmul.f32 0.6931472, %v4273_v50  ;;  %4280 = vlog2.f32 %v3527_v8 }
 0xcc0   :  { %v3545_v23 = vsub.f32 %v6328_v5, %v3531_v1 }
 0xcc2   :  { %v4275_v38 = vpop.eup %4274  ;;  %3553 = vst.msk [vmem:[%s6397_s6 + $0x8] sm:$0xff] %vm3455_vm6, %v3545_v23 }
 0xcc3   :  { %v3537_v43 = vmul.f32 0.6931472, %v4275_v38 }
 0xcc4   :  { %v4277_v9 = vpop.eup %4276 }
 0xcc5   :  { %v3548_v49 = vsub.f32 %v6331_v53, %v3537_v43  ;;  %v3539_v21 = vmul.f32 0.6931472, %v4277_v9 }
 0xcc6   :  { %v4279_v17 = vpop.eup %4278 }
 0xcc7   :  { %3556 = vst.msk [vmem:[%s6397_s6 + $0x20] sm:$0xff] %vm3455_vm6, %v3548_v49  ;;  %v3549_v42 = vsub.f32 %v6334_v47, %v3539_v21  ;;  %v3541_v24 = vmul.f32 0.6931472, %v4279_v17 }
 0xcc8   :  { %v4281_v59 = vpop.eup %4280 }
 0xcc9   :  { %3557 = vst.msk [vmem:[%s6397_s6 + $0x28] sm:$0xff] %vm3455_vm6, %v3549_v42  ;;  %v3550_v36 = vsub.f32 %v6338_v61, %v3541_v24  ;;  %v3543_v10 = vmul.f32 0.6931472, %v4281_v59 }
 0xccb   :  { %3558 = vst.msk [vmem:[%s6397_s6 + $0x30] sm:$0xff] %vm3455_vm6, %v3550_v36  ;;  %v3551_v22 = vsub.f32 %v6342_v33, %v3543_v10 }
 0xccd   :  { %3559 = vst.msk [vmem:[%s6397_s6 + $0x38] sm:$0xff] %vm3455_vm6, %v3551_v22 }

</bundles_post_ra>
